<compile_context>
chip_gen: v7x
topology: tpu7x:2x2x1
jax: 0.10.0
libtpu: 0.0.40
codegen_flags: <defaults>
</compile_context>

<pallas_src>
import functools
import math

import jax
import jax.numpy as jnp
from jax.experimental import pallas as pl
from jax.experimental.pallas import tpu as pltpu


# ------------------------------ Pallas kernel -------------------------------

def _zero_map(rank):
    zeros = (0,) * rank
    return lambda i: zeros


def _make_vit_kernel(*, B, N, S, S_pad, E, H, L, with_scores):
    """Whole ViT forward (patch embed -> L encoder layers -> head), one call."""
    D = E // H
    BS = B * S_pad
    scale = 1.0 / math.sqrt(D)
    neg_inf = -1e30
    gelu_c = math.sqrt(2.0 / math.pi)

    def kernel(patches_ref, wp_ref, bp_ref, cls_ref, pe_ref,
               wqkv_ref, bqkv_ref, wo_ref, bo_ref,
               ln1g_ref, ln1b_ref, w1_ref, b1_ref, w2_ref, b2_ref,
               ln2g_ref, ln2b_ref, wh_ref, bh_ref, *rest):
        if with_scores:
            out_ref, score_ref, xs = rest
        else:
            out_ref, xs = rest
            score_ref = None

        # ---- patch embedding + CLS token + positional encoding ----
        tok = jnp.dot(patches_ref[...].astype(jnp.bfloat16), wp_ref[...],
                      preferred_element_type=jnp.float32) + bp_ref[...]   # (B*N, E)
        pe = pe_ref[...]                                                  # (S_pad, E)
        xs[:, 0:1, :] = jnp.broadcast_to((cls_ref[...] + pe[0:1, :])[None, :, :],
                                         (B, 1, E))
        xs[:, 1:1 + N, :] = tok.reshape(B, N, E) + pe[1:1 + N, :][None, :, :]
        xs[:, 1 + N:, :] = jnp.zeros((B, S_pad - 1 - N, E), jnp.float32)
        x = xs[...].reshape(BS, E)                                        # (B*S_pad, E) f32

        # key-padding mask (padded sequence positions never attended to)
        key_pos = jax.lax.broadcasted_iota(jnp.int32, (1, 1, S_pad), 2)
        key_mask = key_pos < S                                            # (1,1,S_pad)

        for l in range(L):                         # static unroll (L small)
            xb = x.astype(jnp.bfloat16)

            # fused QKV projection: one MXU pass over the whole batch
            qkv = jnp.dot(xb, wqkv_ref[l],
                          preferred_element_type=jnp.float32) + bqkv_ref[l]  # (BS, 3E)
            qkv3 = qkv.reshape(B, S_pad, 3 * E)
            wo_l = wo_ref[l]                                                 # (E, E) bf16

            attn = jnp.zeros((BS, E), jnp.float32)
            for h in range(H):                     # static unroll; batched over B
                q_h = qkv3[:, :, h * D:(h + 1) * D]
                k_h = qkv3[:, :, E + h * D:E + (h + 1) * D]
                v_h = qkv3[:, :, 2 * E + h * D:2 * E + (h + 1) * D]

                s_h = jnp.einsum("bqd,bkd->bqk",
                                 q_h.astype(jnp.bfloat16),
                                 k_h.astype(jnp.bfloat16),
                                 preferred_element_type=jnp.float32) * scale
                s_h = jnp.where(key_mask, s_h, neg_inf)
                m_h = jnp.max(s_h, axis=-1, keepdims=True)
                e_h = jnp.exp(s_h - m_h)
                p_h = e_h / jnp.sum(e_h, axis=-1, keepdims=True)             # exact
                if with_scores:
                    score_ref[l, h] = p_h                                    # (B,S_pad,S_pad)

                ctx_h = jnp.einsum("bqk,bkd->bqd",
                                   p_h.astype(jnp.bfloat16),
                                   v_h.astype(jnp.bfloat16),
                                   preferred_element_type=jnp.float32)       # (B,S_pad,D)
                # fold output projection per head -> no H-way lane concat
                attn = attn + jnp.dot(ctx_h.reshape(BS, D).astype(jnp.bfloat16),
                                      wo_l[h * D:(h + 1) * D, :],
                                      preferred_element_type=jnp.float32)
            attn = attn + bo_ref[l]

            # ---- residual + LayerNorm 1 (post-norm), f32 epilogue ----
            y = x + attn
            mu = jnp.mean(y, axis=-1, keepdims=True)
            var = jnp.mean(jnp.square(y - mu), axis=-1, keepdims=True)
            y = (y - mu) * jax.lax.rsqrt(var + 1e-5) * ln1g_ref[l] + ln1b_ref[l]

            # ---- MLP (tanh-GELU) + residual + LayerNorm 2 ----
            h1 = jnp.dot(y.astype(jnp.bfloat16), w1_ref[l],
                         preferred_element_type=jnp.float32) + b1_ref[l]     # (BS, 4E)
            h1sq = h1 * h1
            h1 = 0.5 * h1 * (1.0 + jnp.tanh(gelu_c * (h1 + 0.044715 * h1sq * h1)))
            h2 = jnp.dot(h1.astype(jnp.bfloat16), w2_ref[l],
                         preferred_element_type=jnp.float32) + b2_ref[l]     # (BS, E)
            z = y + h2
            mu2 = jnp.mean(z, axis=-1, keepdims=True)
            var2 = jnp.mean(jnp.square(z - mu2), axis=-1, keepdims=True)
            x = (z - mu2) * jax.lax.rsqrt(var2 + 1e-5) * ln2g_ref[l] + ln2b_ref[l]

        # ---- classifier head on the CLS token ----
        cls_out = x.reshape(B, S_pad, E)[:, 0, :]                            # (B, E)
        out_ref[...] = (jnp.dot(cls_out.astype(jnp.bfloat16), wh_ref[...],
                                preferred_element_type=jnp.float32) + bh_ref[...])

    return kernel


def pallas_vit_forward(patches, p, *, B, N, S, S_pad, E, num_heads, return_scores):
    L = p["wqkv"].shape[0]
    H = num_heads
    num_classes = p["head_w"].shape[1]
    kernel = _make_vit_kernel(B=B, N=N, S=S, S_pad=S_pad, E=E, H=H, L=L,
                              with_scores=return_scores)

    inputs = (patches, p["patch_w"], p["patch_b"], p["cls"], p["pe"],
              p["wqkv"], p["bqkv"], p["wo"], p["bo"],
              p["ln1_g"], p["ln1_b"], p["w1"], p["b1"],
              p["w2"], p["b2"], p["ln2_g"], p["ln2_b"],
              p["head_w"], p["head_b"])
    in_specs = [pl.BlockSpec(a.shape, _zero_map(a.ndim)) for a in inputs]

    if return_scores:
        out_shape = (jax.ShapeDtypeStruct((B, num_classes), jnp.float32),
                     jax.ShapeDtypeStruct((L, H, B, S_pad, S_pad), jnp.float32))
        out_specs = (pl.BlockSpec((B, num_classes), _zero_map(2)),
                     pl.BlockSpec((L, H, B, S_pad, S_pad), _zero_map(5)))
    else:
        out_shape = jax.ShapeDtypeStruct((B, num_classes), jnp.float32)
        out_specs = pl.BlockSpec((B, num_classes), _zero_map(2))

    return pl.pallas_call(
        kernel,
        out_shape=out_shape,
        grid=(1,),                       # whole batch in one step (see header note)
        in_specs=in_specs,
        out_specs=out_specs,
        scratch_shapes=[pltpu.VMEM((B, S_pad, E), jnp.float32)],
        compiler_params=pltpu.CompilerParams(dimension_semantics=("arbitrary",)),
    )(*inputs)


# ------------------------------- model (glue) --------------------------------

def sin_position_encoding(max_len, embed_size):
    pos = jnp.arange(max_len, dtype=jnp.float32)[:, None]
    div = jnp.exp(jnp.arange(0, embed_size, 2, dtype=jnp.float32)
                  * (-math.log(10000.0) / embed_size))
    pe = jnp.zeros((max_len, embed_size), jnp.float32)
    pe = pe.at[:, 0::2].set(jnp.sin(pos * div))
    pe = pe.at[:, 1::2].set(jnp.cos(pos * div))
    return pe


def init_params(key, in_channel, patch_size, embed_size, num_layers, num_classes):
    hidden = 4 * embed_size

    def dense(k, fan_in, fan_out):
        k1, k2 = jax.random.split(k)
        w = jax.random.normal(k1, (fan_in, fan_out), jnp.float32) * 0.02
        b = jax.random.normal(k2, (fan_out,), jnp.float32) * 0.02
        return w, b

    k_conv, k_cls, k_head, k_layers = jax.random.split(key, 4)
    params = {
        # Conv2d(in_channel, embed_size, patch_size, patch_size)
        "patch_w": jax.random.normal(
            k_conv, (embed_size, in_channel, patch_size, patch_size),
            jnp.float32) * 0.02,
        "patch_b": jnp.zeros((embed_size,), jnp.float32),
        "cls_token": jax.random.normal(k_cls, (1, 1, embed_size), jnp.float32),
    }
    layers = []
    for lk in jax.random.split(k_layers, num_layers):
        ks = jax.random.split(lk, 6)
        wq, bq = dense(ks[0], embed_size, embed_size)
        wk, bk = dense(ks[1], embed_size, embed_size)
        wv, bv = dense(ks[2], embed_size, embed_size)
        wo, bo = dense(ks[3], embed_size, embed_size)
        w1, b1 = dense(ks[4], embed_size, hidden)
        w2, b2 = dense(ks[5], hidden, embed_size)
        layers.append(dict(
            wq=wq, bq=bq, wk=wk, bk=bk, wv=wv, bv=bv, wo=wo, bo=bo,
            w1=w1, b1=b1, w2=w2, b2=b2,
            ln1_g=jnp.ones((embed_size,), jnp.float32),
            ln1_b=jnp.zeros((embed_size,), jnp.float32),
            ln2_g=jnp.ones((embed_size,), jnp.float32),
            ln2_b=jnp.zeros((embed_size,), jnp.float32)))
    params["layers"] = layers
    params["head_w"], params["head_b"] = dense(k_head, embed_size, num_classes)
    return params


def prepare_params(params, *, patch_size, image_size):
    """One-time prep: fuse QKV, cast weights to bf16, stack per-layer weights,
    precompute (padded) positional encoding. Keeps all per-call XLA glue out
    of the forward pass."""
    E, C, P, _ = params["patch_w"].shape
    gh = image_size // P
    N = gh * gh
    S = N + 1
    S_pad = ((S + 15) // 16) * 16          # full bf16 sublane-packed tiles

    pe = sin_position_encoding(S, E)
    pe = jnp.concatenate([pe, jnp.zeros((S_pad - S, E), jnp.float32)], axis=0)

    def stack(name):
        return jnp.stack([lp[name] for lp in params["layers"]], axis=0)

    wqkv = jnp.stack([jnp.concatenate([lp["wq"], lp["wk"], lp["wv"]], axis=1)
                      for lp in params["layers"]], axis=0).astype(jnp.bfloat16)
    bqkv = jnp.stack([jnp.concatenate([lp["bq"], lp["bk"], lp["bv"]], axis=0)
                      for lp in params["layers"]], axis=0)[:, None, :]

    return {
        "patch_w": params["patch_w"].reshape(E, C * P * P).T.astype(jnp.bfloat16),
        "patch_b": params["patch_b"].reshape(1, E),
        "cls": params["cls_token"].reshape(1, E),
        "pe": pe,
        "wqkv": wqkv, "bqkv": bqkv,
        "wo": stack("wo").astype(jnp.bfloat16), "bo": stack("bo")[:, None, :],
        "ln1_g": stack("ln1_g")[:, None, :], "ln1_b": stack("ln1_b")[:, None, :],
        "w1": stack("w1").astype(jnp.bfloat16), "b1": stack("b1")[:, None, :],
        "w2": stack("w2").astype(jnp.bfloat16), "b2": stack("b2")[:, None, :],
        "ln2_g": stack("ln2_g")[:, None, :], "ln2_b": stack("ln2_b")[:, None, :],
        "head_w": params["head_w"].astype(jnp.bfloat16),
        "head_b": params["head_b"].reshape(1, -1),
    }


def vit_classifier_forward(x, prepped, *, patch_size, num_heads,
                           return_attention_score=False):
    B, C, Himg, Wimg = x.shape
    P = patch_size
    gh, gw = Himg // P, Wimg // P
    N = gh * gw
    S = N + 1
    E = prepped["patch_b"].shape[-1]
    S_pad = prepped["pe"].shape[0]

    # Patch extraction: conv(stride=P) == matmul over im2col patches (XLA glue).
    patches = (x.reshape(B, C, gh, P, gw, P)
                 .transpose(0, 2, 4, 1, 3, 5)
                 .reshape(B * N, C * P * P))

    res = pallas_vit_forward(patches, prepped, B=B, N=N, S=S, S_pad=S_pad, E=E,
                             num_heads=num_heads,
                             return_scores=return_attention_score)
    if return_attention_score:
        logits, scores = res
        # (L, H, B, S_pad, S_pad) -> (L, B, H, S, S)  (format of the original
        # Transformer's attention_scores is unspecified; see header TODO)
        scores = jnp.transpose(scores, (0, 2, 1, 3, 4))[:, :, :, :S, :S]
        return logits, scores
    return res


if __name__ == "__main__":
    in_channel, image_size, patch_size = 4, 16, 4
    embed_size, num_layers, num_classes, num_heads = 32, 2, 8, 4

    key = jax.random.PRNGKey(0)
    k_param, k_x = jax.random.split(key)
    params = init_params(k_param, in_channel, patch_size, embed_size,
                         num_layers, num_classes)
    prepped = prepare_params(params, patch_size=patch_size, image_size=image_size)
    x = jax.random.normal(k_x, (2, in_channel, image_size, image_size),
                          jnp.float32)

    fwd = jax.jit(functools.partial(vit_classifier_forward,
                                    patch_size=patch_size, num_heads=num_heads))
    logits = jax.block_until_ready(fwd(x, prepped))

    assert logits.shape == (2, num_classes)
    assert bool(jnp.all(jnp.isfinite(logits)))
    print("KERNEL_OK")
</pallas_src>

<mosaic_0001>
module attributes {stable_mosaic.version = 11 : i64} {
  func.func @kernel(%arg0: i32, %arg1: memref<32x64xf32, #tpu.memory_space<vmem>>, %arg2: memref<64x32xbf16, #tpu.memory_space<vmem>>, %arg3: memref<1x32xf32, #tpu.memory_space<vmem>>, %arg4: memref<1x32xf32, #tpu.memory_space<vmem>>, %arg5: memref<32x32xf32, #tpu.memory_space<vmem>>, %arg6: memref<2x32x96xbf16, #tpu.memory_space<vmem>>, %arg7: memref<2x1x96xf32, #tpu.memory_space<vmem>>, %arg8: memref<2x32x32xbf16, #tpu.memory_space<vmem>>, %arg9: memref<2x1x32xf32, #tpu.memory_space<vmem>>, %arg10: memref<2x1x32xf32, #tpu.memory_space<vmem>>, %arg11: memref<2x1x32xf32, #tpu.memory_space<vmem>>, %arg12: memref<2x32x128xbf16, #tpu.memory_space<vmem>>, %arg13: memref<2x1x128xf32, #tpu.memory_space<vmem>>, %arg14: memref<2x128x32xbf16, #tpu.memory_space<vmem>>, %arg15: memref<2x1x32xf32, #tpu.memory_space<vmem>>, %arg16: memref<2x1x32xf32, #tpu.memory_space<vmem>>, %arg17: memref<2x1x32xf32, #tpu.memory_space<vmem>>, %arg18: memref<32x8xbf16, #tpu.memory_space<vmem>>, %arg19: memref<1x8xf32, #tpu.memory_space<vmem>>, %arg20: memref<2x8xf32, #tpu.memory_space<vmem>>, %arg21: memref<2x32x32xf32, #tpu.memory_space<vmem>>) attributes {dimension_semantics = [#tpu.dimension_semantics<arbitrary>], iteration_bounds = array<i64: 1>, scalar_prefetch = 0 : i64, scratch_operands = 1 : i64, tpu.core_type = #tpu.core_type<tc>, window_params = [{pipeline_mode = #tpu.pipeline_mode<synchronous>, transform_indices = @transform_0, window_bounds = array<i64: 32, 64>}, {pipeline_mode = #tpu.pipeline_mode<synchronous>, transform_indices = @transform_1, window_bounds = array<i64: 64, 32>}, {pipeline_mode = #tpu.pipeline_mode<synchronous>, transform_indices = @transform_2, window_bounds = array<i64: 1, 32>}, {pipeline_mode = #tpu.pipeline_mode<synchronous>, transform_indices = @transform_3, window_bounds = array<i64: 1, 32>}, {pipeline_mode = #tpu.pipeline_mode<synchronous>, transform_indices = @transform_4, window_bounds = array<i64: 32, 32>}, {pipeline_mode = #tpu.pipeline_mode<synchronous>, transform_indices = @transform_5, window_bounds = array<i64: 2, 32, 96>}, {pipeline_mode = #tpu.pipeline_mode<synchronous>, transform_indices = @transform_6, window_bounds = array<i64: 2, 1, 96>}, {pipeline_mode = #tpu.pipeline_mode<synchronous>, transform_indices = @transform_7, window_bounds = array<i64: 2, 32, 32>}, {pipeline_mode = #tpu.pipeline_mode<synchronous>, transform_indices = @transform_8, window_bounds = array<i64: 2, 1, 32>}, {pipeline_mode = #tpu.pipeline_mode<synchronous>, transform_indices = @transform_9, window_bounds = array<i64: 2, 1, 32>}, {pipeline_mode = #tpu.pipeline_mode<synchronous>, transform_indices = @transform_10, window_bounds = array<i64: 2, 1, 32>}, {pipeline_mode = #tpu.pipeline_mode<synchronous>, transform_indices = @transform_11, window_bounds = array<i64: 2, 32, 128>}, {pipeline_mode = #tpu.pipeline_mode<synchronous>, transform_indices = @transform_12, window_bounds = array<i64: 2, 1, 128>}, {pipeline_mode = #tpu.pipeline_mode<synchronous>, transform_indices = @transform_13, window_bounds = array<i64: 2, 128, 32>}, {pipeline_mode = #tpu.pipeline_mode<synchronous>, transform_indices = @transform_14, window_bounds = array<i64: 2, 1, 32>}, {pipeline_mode = #tpu.pipeline_mode<synchronous>, transform_indices = @transform_15, window_bounds = array<i64: 2, 1, 32>}, {pipeline_mode = #tpu.pipeline_mode<synchronous>, transform_indices = @transform_16, window_bounds = array<i64: 2, 1, 32>}, {pipeline_mode = #tpu.pipeline_mode<synchronous>, transform_indices = @transform_17, window_bounds = array<i64: 32, 8>}, {pipeline_mode = #tpu.pipeline_mode<synchronous>, transform_indices = @transform_18, window_bounds = array<i64: 1, 8>}, {pipeline_mode = #tpu.pipeline_mode<synchronous>, transform_indices = @transform_19, window_bounds = array<i64: 2, 8>}]} {
    %c0 = arith.constant 0 : index
    %c0_0 = arith.constant 0 : index
    %0 = vector.load %arg1[%c0, %c0_0] : memref<32x64xf32, #tpu.memory_space<vmem>>, vector<32x64xf32>
    %1 = arith.truncf %0 : vector<32x64xf32> to vector<32x64xbf16>
    %c0_1 = arith.constant 0 : index
    %c0_2 = arith.constant 0 : index
    %2 = vector.load %arg2[%c0_1, %c0_2] : memref<64x32xbf16, #tpu.memory_space<vmem>>, vector<64x32xbf16>
    %cst = arith.constant dense<0.000000e+00> : vector<32x32xf32>
    %3 = tpu.matmul %1, %2, %cst {dimension_numbers = #tpu.dot_dimension_numbers<[1], [0], [0], [1], [0, 0, 1, 1], [], []>} : vector<32x64xbf16>, vector<64x32xbf16>, vector<32x32xf32> -> vector<32x32xf32>
    %c0_3 = arith.constant 0 : index
    %c0_4 = arith.constant 0 : index
    %4 = vector.load %arg3[%c0_3, %c0_4] : memref<1x32xf32, #tpu.memory_space<vmem>>, vector<1x32xf32>
    %5 = vector.broadcast %4 : vector<1x32xf32> to vector<32x32xf32>
    %6 = arith.addf %3, %5 : vector<32x32xf32>
    %c0_5 = arith.constant 0 : index
    %c0_6 = arith.constant 0 : index
    %7 = vector.load %arg5[%c0_5, %c0_6] : memref<32x32xf32, #tpu.memory_space<vmem>>, vector<32x32xf32>
    %c0_7 = arith.constant 0 : index
    %c0_8 = arith.constant 0 : index
    %8 = vector.load %arg4[%c0_7, %c0_8] : memref<1x32xf32, #tpu.memory_space<vmem>>, vector<1x32xf32>
    %9 = vector.extract_strided_slice %7 {offsets = [0, 0], sizes = [1, 32], strides = [1, 1]} : vector<32x32xf32> to vector<1x32xf32>
    %10 = arith.addf %8, %9 : vector<1x32xf32>
    %11 = vector.shape_cast %10 : vector<1x32xf32> to vector<1x1x32xf32>
    %12 = vector.shape_cast %11 : vector<1x1x32xf32> to vector<1x1x32xf32>
    %13 = vector.broadcast %12 : vector<1x1x32xf32> to vector<2x1x32xf32>
    %c0_9 = arith.constant 0 : index
    %c0_10 = arith.constant 0 : index
    %c0_11 = arith.constant 0 : index
    %14 = vector.load %arg21[%c0_9, %c0_10, %c0_11] : memref<2x32x32xf32, #tpu.memory_space<vmem>>, vector<2x1x32xf32>
    tpu.vector_store %arg21[%c0_9, %c0_10, %c0_11], %13 {strides = array<i32>} : memref<2x32x32xf32, #tpu.memory_space<vmem>>, vector<2x1x32xf32>,
    %15 = vector.shape_cast %6 : vector<32x32xf32> to vector<2x16x32xf32>
    %16 = vector.extract_strided_slice %7 {offsets = [1, 0], sizes = [16, 32], strides = [1, 1]} : vector<32x32xf32> to vector<16x32xf32>
    %17 = vector.shape_cast %16 : vector<16x32xf32> to vector<1x16x32xf32>
    %18 = vector.broadcast %17 : vector<1x16x32xf32> to vector<2x16x32xf32>
    %19 = arith.addf %15, %18 : vector<2x16x32xf32>
    %c0_12 = arith.constant 0 : index
    %c1 = arith.constant 1 : index
    %c0_13 = arith.constant 0 : index
    %20 = vector.load %arg21[%c0_12, %c1, %c0_13] : memref<2x32x32xf32, #tpu.memory_space<vmem>>, vector<2x16x32xf32>
    tpu.vector_store %arg21[%c0_12, %c1, %c0_13], %19 {strides = array<i32>} : memref<2x32x32xf32, #tpu.memory_space<vmem>>, vector<2x16x32xf32>,
    %cst_14 = arith.constant 0.000000e+00 : f32
    %21 = vector.broadcast %cst_14 : f32 to vector<2x15x32xf32>
    %c0_15 = arith.constant 0 : index
    %c17 = arith.constant 17 : index
    %c0_16 = arith.constant 0 : index
    %22 = vector.load %arg21[%c0_15, %c17, %c0_16] : memref<2x32x32xf32, #tpu.memory_space<vmem>>, vector<2x15x32xf32>
    tpu.vector_store %arg21[%c0_15, %c17, %c0_16], %21 {strides = array<i32>} : memref<2x32x32xf32, #tpu.memory_space<vmem>>, vector<2x15x32xf32>,
    %c0_17 = arith.constant 0 : index
    %c0_18 = arith.constant 0 : index
    %c0_19 = arith.constant 0 : index
    %23 = vector.load %arg21[%c0_17, %c0_18, %c0_19] : memref<2x32x32xf32, #tpu.memory_space<vmem>>, vector<2x32x32xf32>
    %24 = vector.shape_cast %23 : vector<2x32x32xf32> to vector<64x32xf32>
    %25 = tpu.iota {dimensions = array<i32: 2>} : vector<1x1x32xi32>
    %c17_i32 = arith.constant 17 : i32
    %26 = vector.broadcast %c17_i32 : i32 to vector<1x1x32xi32>
    %27 = arith.cmpi slt, %25, %26 : vector<1x1x32xi32>
    %28 = arith.truncf %24 : vector<64x32xf32> to vector<64x32xbf16>
    %c0_20 = arith.constant 0 : index
    %c0_21 = arith.constant 0 : index
    %c0_22 = arith.constant 0 : index
    %29 = vector.load %arg6[%c0_20, %c0_21, %c0_22] : memref<2x32x96xbf16, #tpu.memory_space<vmem>>, vector<1x32x96xbf16>
    %30 = vector.shape_cast %29 : vector<1x32x96xbf16> to vector<32x96xbf16>
    %cst_23 = arith.constant dense<0.000000e+00> : vector<64x96xf32>
    %31 = tpu.matmul %28, %30, %cst_23 {dimension_numbers = #tpu.dot_dimension_numbers<[1], [0], [0], [1], [0, 0, 1, 1], [], []>} : vector<64x32xbf16>, vector<32x96xbf16>, vector<64x96xf32> -> vector<64x96xf32>
    %c0_24 = arith.constant 0 : index
    %c0_25 = arith.constant 0 : index
    %c0_26 = arith.constant 0 : index
    %32 = vector.load %arg7[%c0_24, %c0_25, %c0_26] : memref<2x1x96xf32, #tpu.memory_space<vmem>>, vector<1x1x96xf32>
    %33 = vector.shape_cast %32 : vector<1x1x96xf32> to vector<1x96xf32>
    %34 = vector.broadcast %33 : vector<1x96xf32> to vector<64x96xf32>
    %35 = arith.addf %31, %34 : vector<64x96xf32>
    %36 = vector.shape_cast %35 : vector<64x96xf32> to vector<2x32x96xf32>
    %c0_27 = arith.constant 0 : index
    %c0_28 = arith.constant 0 : index
    %c0_29 = arith.constant 0 : index
    %37 = vector.load %arg8[%c0_27, %c0_28, %c0_29] : memref<2x32x32xbf16, #tpu.memory_space<vmem>>, vector<1x32x32xbf16>
    %38 = vector.shape_cast %37 : vector<1x32x32xbf16> to vector<32x32xbf16>
    %cst_30 = arith.constant 0.000000e+00 : f32
    %39 = vector.broadcast %cst_30 : f32 to vector<64x32xf32>
    %40 = vector.extract_strided_slice %36 {offsets = [0, 0, 0], sizes = [2, 32, 8], strides = [1, 1, 1]} : vector<2x32x96xf32> to vector<2x32x8xf32>
    %41 = vector.extract_strided_slice %36 {offsets = [0, 0, 32], sizes = [2, 32, 8], strides = [1, 1, 1]} : vector<2x32x96xf32> to vector<2x32x8xf32>
    %42 = vector.extract_strided_slice %36 {offsets = [0, 0, 64], sizes = [2, 32, 8], strides = [1, 1, 1]} : vector<2x32x96xf32> to vector<2x32x8xf32>
    %43 = arith.truncf %40 : vector<2x32x8xf32> to vector<2x32x8xbf16>
    %44 = arith.truncf %41 : vector<2x32x8xf32> to vector<2x32x8xbf16>
    "tpu.trace_start"() <{level = 10 : i32, message = "bqd,bkd->bqk"}> : () -> ()
    %cst_31 = arith.constant dense<0.000000e+00> : vector<2x32x32xf32>
    %45 = tpu.matmul %43, %44, %cst_31 {dimension_numbers = #tpu.dot_dimension_numbers<[2], [2], [1], [1], [0, 0, 0, 1, 1, 1], [0], [0]>} : vector<2x32x8xbf16>, vector<2x32x8xbf16>, vector<2x32x32xf32> -> vector<2x32x32xf32>
    "tpu.trace_stop"() : () -> ()
    %cst_32 = arith.constant 0.353553385 : f32
    %46 = vector.broadcast %cst_32 : f32 to vector<2x32x32xf32>
    %47 = arith.mulf %45, %46 : vector<2x32x32xf32>
    %cst_33 = arith.constant -1.000000e+30 : f32
    %48 = vector.shape_cast %27 : vector<1x1x32xi1> to vector<1x1x32xi1>
    %49 = vector.broadcast %48 : vector<1x1x32xi1> to vector<2x32x32xi1>
    %50 = vector.broadcast %cst_33 : f32 to vector<2x32x32xf32>
    %51 = arith.select %49, %47, %50 : vector<2x32x32xi1>, vector<2x32x32xf32>
    %cst_34 = arith.constant dense<0xFF800000> : vector<2x32xf32>
    %52 = vector.multi_reduction <maximumf>, %51, %cst_34 [2] : vector<2x32x32xf32> to vector<2x32xf32>
    %53 = vector.shape_cast %52 : vector<2x32xf32> to vector<2x32x1xf32>
    %54 = vector.broadcast %53 : vector<2x32x1xf32> to vector<2x32x32xf32>
    %55 = arith.subf %51, %54 : vector<2x32x32xf32>
    %56 = math.exp %55 : vector<2x32x32xf32>
    %cst_35 = arith.constant dense<0.000000e+00> : vector<2x32xf32>
    %57 = vector.multi_reduction <add>, %56, %cst_35 [2] : vector<2x32x32xf32> to vector<2x32xf32>
    %58 = vector.shape_cast %57 : vector<2x32xf32> to vector<2x32x1xf32>
    %59 = vector.broadcast %58 : vector<2x32x1xf32> to vector<2x32x32xf32>
    %60 = arith.divf %56, %59 : vector<2x32x32xf32>
    %61 = arith.truncf %60 : vector<2x32x32xf32> to vector<2x32x32xbf16>
    %62 = arith.truncf %42 : vector<2x32x8xf32> to vector<2x32x8xbf16>
    "tpu.trace_start"() <{level = 10 : i32, message = "bqk,bkd->bqd"}> : () -> ()
    %cst_36 = arith.constant dense<0.000000e+00> : vector<2x32x8xf32>
    %63 = tpu.matmul %61, %62, %cst_36 {dimension_numbers = #tpu.dot_dimension_numbers<[2], [1], [1], [2], [0, 0, 0, 1, 1, 2], [0], [0]>} : vector<2x32x32xbf16>, vector<2x32x8xbf16>, vector<2x32x8xf32> -> vector<2x32x8xf32>
    "tpu.trace_stop"() : () -> ()
    %64 = vector.shape_cast %63 : vector<2x32x8xf32> to vector<64x8xf32>
    %65 = arith.truncf %64 : vector<64x8xf32> to vector<64x8xbf16>
    %66 = vector.extract_strided_slice %38 {offsets = [0, 0], sizes = [8, 32], strides = [1, 1]} : vector<32x32xbf16> to vector<8x32xbf16>
    %cst_37 = arith.constant dense<0.000000e+00> : vector<64x32xf32>
    %67 = tpu.matmul %65, %66, %cst_37 {dimension_numbers = #tpu.dot_dimension_numbers<[1], [0], [0], [1], [0, 0, 1, 1], [], []>} : vector<64x8xbf16>, vector<8x32xbf16>, vector<64x32xf32> -> vector<64x32xf32>
    %68 = arith.addf %39, %67 : vector<64x32xf32>
    %69 = vector.extract_strided_slice %36 {offsets = [0, 0, 8], sizes = [2, 32, 8], strides = [1, 1, 1]} : vector<2x32x96xf32> to vector<2x32x8xf32>
    %70 = vector.extract_strided_slice %36 {offsets = [0, 0, 40], sizes = [2, 32, 8], strides = [1, 1, 1]} : vector<2x32x96xf32> to vector<2x32x8xf32>
    %71 = vector.extract_strided_slice %36 {offsets = [0, 0, 72], sizes = [2, 32, 8], strides = [1, 1, 1]} : vector<2x32x96xf32> to vector<2x32x8xf32>
    %72 = arith.truncf %69 : vector<2x32x8xf32> to vector<2x32x8xbf16>
    %73 = arith.truncf %70 : vector<2x32x8xf32> to vector<2x32x8xbf16>
    "tpu.trace_start"() <{level = 10 : i32, message = "bqd,bkd->bqk"}> : () -> ()
    %cst_38 = arith.constant dense<0.000000e+00> : vector<2x32x32xf32>
    %74 = tpu.matmul %72, %73, %cst_38 {dimension_numbers = #tpu.dot_dimension_numbers<[2], [2], [1], [1], [0, 0, 0, 1, 1, 1], [0], [0]>} : vector<2x32x8xbf16>, vector<2x32x8xbf16>, vector<2x32x32xf32> -> vector<2x32x32xf32>
    "tpu.trace_stop"() : () -> ()
    %cst_39 = arith.constant 0.353553385 : f32
    %75 = vector.broadcast %cst_39 : f32 to vector<2x32x32xf32>
    %76 = arith.mulf %74, %75 : vector<2x32x32xf32>
    %cst_40 = arith.constant -1.000000e+30 : f32
    %77 = vector.shape_cast %27 : vector<1x1x32xi1> to vector<1x1x32xi1>
    %78 = vector.broadcast %77 : vector<1x1x32xi1> to vector<2x32x32xi1>
    %79 = vector.broadcast %cst_40 : f32 to vector<2x32x32xf32>
    %80 = arith.select %78, %76, %79 : vector<2x32x32xi1>, vector<2x32x32xf32>
    %cst_41 = arith.constant dense<0xFF800000> : vector<2x32xf32>
    %81 = vector.multi_reduction <maximumf>, %80, %cst_41 [2] : vector<2x32x32xf32> to vector<2x32xf32>
    %82 = vector.shape_cast %81 : vector<2x32xf32> to vector<2x32x1xf32>
    %83 = vector.broadcast %82 : vector<2x32x1xf32> to vector<2x32x32xf32>
    %84 = arith.subf %80, %83 : vector<2x32x32xf32>
    %85 = math.exp %84 : vector<2x32x32xf32>
    %cst_42 = arith.constant dense<0.000000e+00> : vector<2x32xf32>
    %86 = vector.multi_reduction <add>, %85, %cst_42 [2] : vector<2x32x32xf32> to vector<2x32xf32>
    %87 = vector.shape_cast %86 : vector<2x32xf32> to vector<2x32x1xf32>
    %88 = vector.broadcast %87 : vector<2x32x1xf32> to vector<2x32x32xf32>
    %89 = arith.divf %85, %88 : vector<2x32x32xf32>
    %90 = arith.truncf %89 : vector<2x32x32xf32> to vector<2x32x32xbf16>
    %91 = arith.truncf %71 : vector<2x32x8xf32> to vector<2x32x8xbf16>
    "tpu.trace_start"() <{level = 10 : i32, message = "bqk,bkd->bqd"}> : () -> ()
    %cst_43 = arith.constant dense<0.000000e+00> : vector<2x32x8xf32>
    %92 = tpu.matmul %90, %91, %cst_43 {dimension_numbers = #tpu.dot_dimension_numbers<[2], [1], [1], [2], [0, 0, 0, 1, 1, 2], [0], [0]>} : vector<2x32x32xbf16>, vector<2x32x8xbf16>, vector<2x32x8xf32> -> vector<2x32x8xf32>
    "tpu.trace_stop"() : () -> ()
    %93 = vector.shape_cast %92 : vector<2x32x8xf32> to vector<64x8xf32>
    %94 = arith.truncf %93 : vector<64x8xf32> to vector<64x8xbf16>
    %95 = vector.extract_strided_slice %38 {offsets = [8, 0], sizes = [8, 32], strides = [1, 1]} : vector<32x32xbf16> to vector<8x32xbf16>
    %cst_44 = arith.constant dense<0.000000e+00> : vector<64x32xf32>
    %96 = tpu.matmul %94, %95, %cst_44 {dimension_numbers = #tpu.dot_dimension_numbers<[1], [0], [0], [1], [0, 0, 1, 1], [], []>} : vector<64x8xbf16>, vector<8x32xbf16>, vector<64x32xf32> -> vector<64x32xf32>
    %97 = arith.addf %68, %96 : vector<64x32xf32>
    %98 = vector.extract_strided_slice %36 {offsets = [0, 0, 16], sizes = [2, 32, 8], strides = [1, 1, 1]} : vector<2x32x96xf32> to vector<2x32x8xf32>
    %99 = vector.extract_strided_slice %36 {offsets = [0, 0, 48], sizes = [2, 32, 8], strides = [1, 1, 1]} : vector<2x32x96xf32> to vector<2x32x8xf32>
    %100 = vector.extract_strided_slice %36 {offsets = [0, 0, 80], sizes = [2, 32, 8], strides = [1, 1, 1]} : vector<2x32x96xf32> to vector<2x32x8xf32>
    %101 = arith.truncf %98 : vector<2x32x8xf32> to vector<2x32x8xbf16>
    %102 = arith.truncf %99 : vector<2x32x8xf32> to vector<2x32x8xbf16>
    "tpu.trace_start"() <{level = 10 : i32, message = "bqd,bkd->bqk"}> : () -> ()
    %cst_45 = arith.constant dense<0.000000e+00> : vector<2x32x32xf32>
    %103 = tpu.matmul %101, %102, %cst_45 {dimension_numbers = #tpu.dot_dimension_numbers<[2], [2], [1], [1], [0, 0, 0, 1, 1, 1], [0], [0]>} : vector<2x32x8xbf16>, vector<2x32x8xbf16>, vector<2x32x32xf32> -> vector<2x32x32xf32>
    "tpu.trace_stop"() : () -> ()
    %cst_46 = arith.constant 0.353553385 : f32
    %104 = vector.broadcast %cst_46 : f32 to vector<2x32x32xf32>
    %105 = arith.mulf %103, %104 : vector<2x32x32xf32>
    %cst_47 = arith.constant -1.000000e+30 : f32
    %106 = vector.shape_cast %27 : vector<1x1x32xi1> to vector<1x1x32xi1>
    %107 = vector.broadcast %106 : vector<1x1x32xi1> to vector<2x32x32xi1>
    %108 = vector.broadcast %cst_47 : f32 to vector<2x32x32xf32>
    %109 = arith.select %107, %105, %108 : vector<2x32x32xi1>, vector<2x32x32xf32>
    %cst_48 = arith.constant dense<0xFF800000> : vector<2x32xf32>
    %110 = vector.multi_reduction <maximumf>, %109, %cst_48 [2] : vector<2x32x32xf32> to vector<2x32xf32>
    %111 = vector.shape_cast %110 : vector<2x32xf32> to vector<2x32x1xf32>
    %112 = vector.broadcast %111 : vector<2x32x1xf32> to vector<2x32x32xf32>
    %113 = arith.subf %109, %112 : vector<2x32x32xf32>
    %114 = math.exp %113 : vector<2x32x32xf32>
    %cst_49 = arith.constant dense<0.000000e+00> : vector<2x32xf32>
    %115 = vector.multi_reduction <add>, %114, %cst_49 [2] : vector<2x32x32xf32> to vector<2x32xf32>
    %116 = vector.shape_cast %115 : vector<2x32xf32> to vector<2x32x1xf32>
    %117 = vector.broadcast %116 : vector<2x32x1xf32> to vector<2x32x32xf32>
    %118 = arith.divf %114, %117 : vector<2x32x32xf32>
    %119 = arith.truncf %118 : vector<2x32x32xf32> to vector<2x32x32xbf16>
    %120 = arith.truncf %100 : vector<2x32x8xf32> to vector<2x32x8xbf16>
    "tpu.trace_start"() <{level = 10 : i32, message = "bqk,bkd->bqd"}> : () -> ()
    %cst_50 = arith.constant dense<0.000000e+00> : vector<2x32x8xf32>
    %121 = tpu.matmul %119, %120, %cst_50 {dimension_numbers = #tpu.dot_dimension_numbers<[2], [1], [1], [2], [0, 0, 0, 1, 1, 2], [0], [0]>} : vector<2x32x32xbf16>, vector<2x32x8xbf16>, vector<2x32x8xf32> -> vector<2x32x8xf32>
    "tpu.trace_stop"() : () -> ()
    %122 = vector.shape_cast %121 : vector<2x32x8xf32> to vector<64x8xf32>
    %123 = arith.truncf %122 : vector<64x8xf32> to vector<64x8xbf16>
    %124 = vector.extract_strided_slice %38 {offsets = [16, 0], sizes = [8, 32], strides = [1, 1]} : vector<32x32xbf16> to vector<8x32xbf16>
    %cst_51 = arith.constant dense<0.000000e+00> : vector<64x32xf32>
    %125 = tpu.matmul %123, %124, %cst_51 {dimension_numbers = #tpu.dot_dimension_numbers<[1], [0], [0], [1], [0, 0, 1, 1], [], []>} : vector<64x8xbf16>, vector<8x32xbf16>, vector<64x32xf32> -> vector<64x32xf32>
    %126 = arith.addf %97, %125 : vector<64x32xf32>
    %127 = vector.extract_strided_slice %36 {offsets = [0, 0, 24], sizes = [2, 32, 8], strides = [1, 1, 1]} : vector<2x32x96xf32> to vector<2x32x8xf32>
    %128 = vector.extract_strided_slice %36 {offsets = [0, 0, 56], sizes = [2, 32, 8], strides = [1, 1, 1]} : vector<2x32x96xf32> to vector<2x32x8xf32>
    %129 = vector.extract_strided_slice %36 {offsets = [0, 0, 88], sizes = [2, 32, 8], strides = [1, 1, 1]} : vector<2x32x96xf32> to vector<2x32x8xf32>
    %130 = arith.truncf %127 : vector<2x32x8xf32> to vector<2x32x8xbf16>
    %131 = arith.truncf %128 : vector<2x32x8xf32> to vector<2x32x8xbf16>
    "tpu.trace_start"() <{level = 10 : i32, message = "bqd,bkd->bqk"}> : () -> ()
    %cst_52 = arith.constant dense<0.000000e+00> : vector<2x32x32xf32>
    %132 = tpu.matmul %130, %131, %cst_52 {dimension_numbers = #tpu.dot_dimension_numbers<[2], [2], [1], [1], [0, 0, 0, 1, 1, 1], [0], [0]>} : vector<2x32x8xbf16>, vector<2x32x8xbf16>, vector<2x32x32xf32> -> vector<2x32x32xf32>
    "tpu.trace_stop"() : () -> ()
    %cst_53 = arith.constant 0.353553385 : f32
    %133 = vector.broadcast %cst_53 : f32 to vector<2x32x32xf32>
    %134 = arith.mulf %132, %133 : vector<2x32x32xf32>
    %cst_54 = arith.constant -1.000000e+30 : f32
    %135 = vector.shape_cast %27 : vector<1x1x32xi1> to vector<1x1x32xi1>
    %136 = vector.broadcast %135 : vector<1x1x32xi1> to vector<2x32x32xi1>
    %137 = vector.broadcast %cst_54 : f32 to vector<2x32x32xf32>
    %138 = arith.select %136, %134, %137 : vector<2x32x32xi1>, vector<2x32x32xf32>
    %cst_55 = arith.constant dense<0xFF800000> : vector<2x32xf32>
    %139 = vector.multi_reduction <maximumf>, %138, %cst_55 [2] : vector<2x32x32xf32> to vector<2x32xf32>
    %140 = vector.shape_cast %139 : vector<2x32xf32> to vector<2x32x1xf32>
    %141 = vector.broadcast %140 : vector<2x32x1xf32> to vector<2x32x32xf32>
    %142 = arith.subf %138, %141 : vector<2x32x32xf32>
    %143 = math.exp %142 : vector<2x32x32xf32>
    %cst_56 = arith.constant dense<0.000000e+00> : vector<2x32xf32>
    %144 = vector.multi_reduction <add>, %143, %cst_56 [2] : vector<2x32x32xf32> to vector<2x32xf32>
    %145 = vector.shape_cast %144 : vector<2x32xf32> to vector<2x32x1xf32>
    %146 = vector.broadcast %145 : vector<2x32x1xf32> to vector<2x32x32xf32>
    %147 = arith.divf %143, %146 : vector<2x32x32xf32>
    %148 = arith.truncf %147 : vector<2x32x32xf32> to vector<2x32x32xbf16>
    %149 = arith.truncf %129 : vector<2x32x8xf32> to vector<2x32x8xbf16>
    "tpu.trace_start"() <{level = 10 : i32, message = "bqk,bkd->bqd"}> : () -> ()
    %cst_57 = arith.constant dense<0.000000e+00> : vector<2x32x8xf32>
    %150 = tpu.matmul %148, %149, %cst_57 {dimension_numbers = #tpu.dot_dimension_numbers<[2], [1], [1], [2], [0, 0, 0, 1, 1, 2], [0], [0]>} : vector<2x32x32xbf16>, vector<2x32x8xbf16>, vector<2x32x8xf32> -> vector<2x32x8xf32>
    "tpu.trace_stop"() : () -> ()
    %151 = vector.shape_cast %150 : vector<2x32x8xf32> to vector<64x8xf32>
    %152 = arith.truncf %151 : vector<64x8xf32> to vector<64x8xbf16>
    %153 = vector.extract_strided_slice %38 {offsets = [24, 0], sizes = [8, 32], strides = [1, 1]} : vector<32x32xbf16> to vector<8x32xbf16>
    %cst_58 = arith.constant dense<0.000000e+00> : vector<64x32xf32>
    %154 = tpu.matmul %152, %153, %cst_58 {dimension_numbers = #tpu.dot_dimension_numbers<[1], [0], [0], [1], [0, 0, 1, 1], [], []>} : vector<64x8xbf16>, vector<8x32xbf16>, vector<64x32xf32> -> vector<64x32xf32>
    %155 = arith.addf %126, %154 : vector<64x32xf32>
    %c0_59 = arith.constant 0 : index
    %c0_60 = arith.constant 0 : index
    %c0_61 = arith.constant 0 : index
    %156 = vector.load %arg9[%c0_59, %c0_60, %c0_61] : memref<2x1x32xf32, #tpu.memory_space<vmem>>, vector<1x1x32xf32>
    %157 = vector.shape_cast %156 : vector<1x1x32xf32> to vector<1x32xf32>
    %158 = vector.broadcast %157 : vector<1x32xf32> to vector<64x32xf32>
    %159 = arith.addf %155, %158 : vector<64x32xf32>
    %160 = arith.addf %24, %159 : vector<64x32xf32>
    %cst_62 = arith.constant dense<0.000000e+00> : vector<64xf32>
    %161 = vector.multi_reduction <add>, %160, %cst_62 [1] : vector<64x32xf32> to vector<64xf32>
    %162 = vector.shape_cast %161 : vector<64xf32> to vector<64x1xf32>
    %cst_63 = arith.constant 3.200000e+01 : f32
    %163 = vector.broadcast %cst_63 : f32 to vector<64x1xf32>
    %164 = arith.divf %162, %163 : vector<64x1xf32>
    %165 = vector.broadcast %164 : vector<64x1xf32> to vector<64x32xf32>
    %166 = arith.subf %160, %165 : vector<64x32xf32>
    %167 = arith.mulf %166, %166 : vector<64x32xf32>
    %cst_64 = arith.constant dense<0.000000e+00> : vector<64xf32>
    %168 = vector.multi_reduction <add>, %167, %cst_64 [1] : vector<64x32xf32> to vector<64xf32>
    %169 = vector.shape_cast %168 : vector<64xf32> to vector<64x1xf32>
    %cst_65 = arith.constant 3.200000e+01 : f32
    %170 = vector.broadcast %cst_65 : f32 to vector<64x1xf32>
    %171 = arith.divf %169, %170 : vector<64x1xf32>
    %172 = vector.broadcast %164 : vector<64x1xf32> to vector<64x32xf32>
    %173 = arith.subf %160, %172 : vector<64x32xf32>
    %cst_66 = arith.constant 9.99999974E-6 : f32
    %174 = vector.broadcast %cst_66 : f32 to vector<64x1xf32>
    %175 = arith.addf %171, %174 : vector<64x1xf32>
    %176 = math.rsqrt %175 : vector<64x1xf32>
    %177 = vector.broadcast %176 : vector<64x1xf32> to vector<64x32xf32>
    %178 = arith.mulf %173, %177 : vector<64x32xf32>
    %c0_67 = arith.constant 0 : index
    %c0_68 = arith.constant 0 : index
    %c0_69 = arith.constant 0 : index
    %179 = vector.load %arg10[%c0_67, %c0_68, %c0_69] : memref<2x1x32xf32, #tpu.memory_space<vmem>>, vector<1x1x32xf32>
    %180 = vector.shape_cast %179 : vector<1x1x32xf32> to vector<1x32xf32>
    %181 = vector.broadcast %180 : vector<1x32xf32> to vector<64x32xf32>
    %182 = arith.mulf %178, %181 : vector<64x32xf32>
    %c0_70 = arith.constant 0 : index
    %c0_71 = arith.constant 0 : index
    %c0_72 = arith.constant 0 : index
    %183 = vector.load %arg11[%c0_70, %c0_71, %c0_72] : memref<2x1x32xf32, #tpu.memory_space<vmem>>, vector<1x1x32xf32>
    %184 = vector.shape_cast %183 : vector<1x1x32xf32> to vector<1x32xf32>
    %185 = vector.broadcast %184 : vector<1x32xf32> to vector<64x32xf32>
    %186 = arith.addf %182, %185 : vector<64x32xf32>
    %187 = arith.truncf %186 : vector<64x32xf32> to vector<64x32xbf16>
    %c0_73 = arith.constant 0 : index
    %c0_74 = arith.constant 0 : index
    %c0_75 = arith.constant 0 : index
    %188 = vector.load %arg12[%c0_73, %c0_74, %c0_75] : memref<2x32x128xbf16, #tpu.memory_space<vmem>>, vector<1x32x128xbf16>
    %189 = vector.shape_cast %188 : vector<1x32x128xbf16> to vector<32x128xbf16>
    %cst_76 = arith.constant dense<0.000000e+00> : vector<64x128xf32>
    %190 = tpu.matmul %187, %189, %cst_76 {dimension_numbers = #tpu.dot_dimension_numbers<[1], [0], [0], [1], [0, 0, 1, 1], [], []>} : vector<64x32xbf16>, vector<32x128xbf16>, vector<64x128xf32> -> vector<64x128xf32>
    %c0_77 = arith.constant 0 : index
    %c0_78 = arith.constant 0 : index
    %c0_79 = arith.constant 0 : index
    %191 = vector.load %arg13[%c0_77, %c0_78, %c0_79] : memref<2x1x128xf32, #tpu.memory_space<vmem>>, vector<1x1x128xf32>
    %192 = vector.shape_cast %191 : vector<1x1x128xf32> to vector<1x128xf32>
    %193 = vector.broadcast %192 : vector<1x128xf32> to vector<64x128xf32>
    %194 = arith.addf %190, %193 : vector<64x128xf32>
    %195 = arith.mulf %194, %194 : vector<64x128xf32>
    %cst_80 = arith.constant 5.000000e-01 : f32
    %196 = vector.broadcast %cst_80 : f32 to vector<64x128xf32>
    %197 = arith.mulf %196, %194 : vector<64x128xf32>
    %cst_81 = arith.constant 4.471500e-02 : f32
    %198 = vector.broadcast %cst_81 : f32 to vector<64x128xf32>
    %199 = arith.mulf %198, %195 : vector<64x128xf32>
    %200 = arith.mulf %199, %194 : vector<64x128xf32>
    %201 = arith.addf %194, %200 : vector<64x128xf32>
    %cst_82 = arith.constant 0.797884583 : f32
    %202 = vector.broadcast %cst_82 : f32 to vector<64x128xf32>
    %203 = arith.mulf %202, %201 : vector<64x128xf32>
    %204 = math.tanh %203 : vector<64x128xf32>
    %cst_83 = arith.constant 1.000000e+00 : f32
    %205 = vector.broadcast %cst_83 : f32 to vector<64x128xf32>
    %206 = arith.addf %205, %204 : vector<64x128xf32>
    %207 = arith.mulf %197, %206 : vector<64x128xf32>
    %208 = arith.truncf %207 : vector<64x128xf32> to vector<64x128xbf16>
    %c0_84 = arith.constant 0 : index
    %c0_85 = arith.constant 0 : index
    %c0_86 = arith.constant 0 : index
    %209 = vector.load %arg14[%c0_84, %c0_85, %c0_86] : memref<2x128x32xbf16, #tpu.memory_space<vmem>>, vector<1x128x32xbf16>
    %210 = vector.shape_cast %209 : vector<1x128x32xbf16> to vector<128x32xbf16>
    %cst_87 = arith.constant dense<0.000000e+00> : vector<64x32xf32>
    %211 = tpu.matmul %208, %210, %cst_87 {dimension_numbers = #tpu.dot_dimension_numbers<[1], [0], [0], [1], [0, 0, 1, 1], [], []>} : vector<64x128xbf16>, vector<128x32xbf16>, vector<64x32xf32> -> vector<64x32xf32>
    %c0_88 = arith.constant 0 : index
    %c0_89 = arith.constant 0 : index
    %c0_90 = arith.constant 0 : index
    %212 = vector.load %arg15[%c0_88, %c0_89, %c0_90] : memref<2x1x32xf32, #tpu.memory_space<vmem>>, vector<1x1x32xf32>
    %213 = vector.shape_cast %212 : vector<1x1x32xf32> to vector<1x32xf32>
    %214 = vector.broadcast %213 : vector<1x32xf32> to vector<64x32xf32>
    %215 = arith.addf %211, %214 : vector<64x32xf32>
    %216 = arith.addf %186, %215 : vector<64x32xf32>
    %cst_91 = arith.constant dense<0.000000e+00> : vector<64xf32>
    %217 = vector.multi_reduction <add>, %216, %cst_91 [1] : vector<64x32xf32> to vector<64xf32>
    %218 = vector.shape_cast %217 : vector<64xf32> to vector<64x1xf32>
    %cst_92 = arith.constant 3.200000e+01 : f32
    %219 = vector.broadcast %cst_92 : f32 to vector<64x1xf32>
    %220 = arith.divf %218, %219 : vector<64x1xf32>
    %221 = vector.broadcast %220 : vector<64x1xf32> to vector<64x32xf32>
    %222 = arith.subf %216, %221 : vector<64x32xf32>
    %223 = arith.mulf %222, %222 : vector<64x32xf32>
    %cst_93 = arith.constant dense<0.000000e+00> : vector<64xf32>
    %224 = vector.multi_reduction <add>, %223, %cst_93 [1] : vector<64x32xf32> to vector<64xf32>
    %225 = vector.shape_cast %224 : vector<64xf32> to vector<64x1xf32>
    %cst_94 = arith.constant 3.200000e+01 : f32
    %226 = vector.broadcast %cst_94 : f32 to vector<64x1xf32>
    %227 = arith.divf %225, %226 : vector<64x1xf32>
    %228 = vector.broadcast %220 : vector<64x1xf32> to vector<64x32xf32>
    %229 = arith.subf %216, %228 : vector<64x32xf32>
    %cst_95 = arith.constant 9.99999974E-6 : f32
    %230 = vector.broadcast %cst_95 : f32 to vector<64x1xf32>
    %231 = arith.addf %227, %230 : vector<64x1xf32>
    %232 = math.rsqrt %231 : vector<64x1xf32>
    %233 = vector.broadcast %232 : vector<64x1xf32> to vector<64x32xf32>
    %234 = arith.mulf %229, %233 : vector<64x32xf32>
    %c0_96 = arith.constant 0 : index
    %c0_97 = arith.constant 0 : index
    %c0_98 = arith.constant 0 : index
    %235 = vector.load %arg16[%c0_96, %c0_97, %c0_98] : memref<2x1x32xf32, #tpu.memory_space<vmem>>, vector<1x1x32xf32>
    %236 = vector.shape_cast %235 : vector<1x1x32xf32> to vector<1x32xf32>
    %237 = vector.broadcast %236 : vector<1x32xf32> to vector<64x32xf32>
    %238 = arith.mulf %234, %237 : vector<64x32xf32>
    %c0_99 = arith.constant 0 : index
    %c0_100 = arith.constant 0 : index
    %c0_101 = arith.constant 0 : index
    %239 = vector.load %arg17[%c0_99, %c0_100, %c0_101] : memref<2x1x32xf32, #tpu.memory_space<vmem>>, vector<1x1x32xf32>
    %240 = vector.shape_cast %239 : vector<1x1x32xf32> to vector<1x32xf32>
    %241 = vector.broadcast %240 : vector<1x32xf32> to vector<64x32xf32>
    %242 = arith.addf %238, %241 : vector<64x32xf32>
    %243 = arith.truncf %242 : vector<64x32xf32> to vector<64x32xbf16>
    %c1_102 = arith.constant 1 : index
    %c0_103 = arith.constant 0 : index
    %c0_104 = arith.constant 0 : index
    %244 = vector.load %arg6[%c1_102, %c0_103, %c0_104] : memref<2x32x96xbf16, #tpu.memory_space<vmem>>, vector<1x32x96xbf16>
    %245 = vector.shape_cast %244 : vector<1x32x96xbf16> to vector<32x96xbf16>
    %cst_105 = arith.constant dense<0.000000e+00> : vector<64x96xf32>
    %246 = tpu.matmul %243, %245, %cst_105 {dimension_numbers = #tpu.dot_dimension_numbers<[1], [0], [0], [1], [0, 0, 1, 1], [], []>} : vector<64x32xbf16>, vector<32x96xbf16>, vector<64x96xf32> -> vector<64x96xf32>
    %c1_106 = arith.constant 1 : index
    %c0_107 = arith.constant 0 : index
    %c0_108 = arith.constant 0 : index
    %247 = vector.load %arg7[%c1_106, %c0_107, %c0_108] : memref<2x1x96xf32, #tpu.memory_space<vmem>>, vector<1x1x96xf32>
    %248 = vector.shape_cast %247 : vector<1x1x96xf32> to vector<1x96xf32>
    %249 = vector.broadcast %248 : vector<1x96xf32> to vector<64x96xf32>
    %250 = arith.addf %246, %249 : vector<64x96xf32>
    %251 = vector.shape_cast %250 : vector<64x96xf32> to vector<2x32x96xf32>
    %c1_109 = arith.constant 1 : index
    %c0_110 = arith.constant 0 : index
    %c0_111 = arith.constant 0 : index
    %252 = vector.load %arg8[%c1_109, %c0_110, %c0_111] : memref<2x32x32xbf16, #tpu.memory_space<vmem>>, vector<1x32x32xbf16>
    %253 = vector.shape_cast %252 : vector<1x32x32xbf16> to vector<32x32xbf16>
    %cst_112 = arith.constant 0.000000e+00 : f32
    %254 = vector.broadcast %cst_112 : f32 to vector<64x32xf32>
    %255 = vector.extract_strided_slice %251 {offsets = [0, 0, 0], sizes = [2, 32, 8], strides = [1, 1, 1]} : vector<2x32x96xf32> to vector<2x32x8xf32>
    %256 = vector.extract_strided_slice %251 {offsets = [0, 0, 32], sizes = [2, 32, 8], strides = [1, 1, 1]} : vector<2x32x96xf32> to vector<2x32x8xf32>
    %257 = vector.extract_strided_slice %251 {offsets = [0, 0, 64], sizes = [2, 32, 8], strides = [1, 1, 1]} : vector<2x32x96xf32> to vector<2x32x8xf32>
    %258 = arith.truncf %255 : vector<2x32x8xf32> to vector<2x32x8xbf16>
    %259 = arith.truncf %256 : vector<2x32x8xf32> to vector<2x32x8xbf16>
    "tpu.trace_start"() <{level = 10 : i32, message = "bqd,bkd->bqk"}> : () -> ()
    %cst_113 = arith.constant dense<0.000000e+00> : vector<2x32x32xf32>
    %260 = tpu.matmul %258, %259, %cst_113 {dimension_numbers = #tpu.dot_dimension_numbers<[2], [2], [1], [1], [0, 0, 0, 1, 1, 1], [0], [0]>} : vector<2x32x8xbf16>, vector<2x32x8xbf16>, vector<2x32x32xf32> -> vector<2x32x32xf32>
    "tpu.trace_stop"() : () -> ()
    %cst_114 = arith.constant 0.353553385 : f32
    %261 = vector.broadcast %cst_114 : f32 to vector<2x32x32xf32>
    %262 = arith.mulf %260, %261 : vector<2x32x32xf32>
    %cst_115 = arith.constant -1.000000e+30 : f32
    %263 = vector.shape_cast %27 : vector<1x1x32xi1> to vector<1x1x32xi1>
    %264 = vector.broadcast %263 : vector<1x1x32xi1> to vector<2x32x32xi1>
    %265 = vector.broadcast %cst_115 : f32 to vector<2x32x32xf32>
    %266 = arith.select %264, %262, %265 : vector<2x32x32xi1>, vector<2x32x32xf32>
    %cst_116 = arith.constant dense<0xFF800000> : vector<2x32xf32>
    %267 = vector.multi_reduction <maximumf>, %266, %cst_116 [2] : vector<2x32x32xf32> to vector<2x32xf32>
    %268 = vector.shape_cast %267 : vector<2x32xf32> to vector<2x32x1xf32>
    %269 = vector.broadcast %268 : vector<2x32x1xf32> to vector<2x32x32xf32>
    %270 = arith.subf %266, %269 : vector<2x32x32xf32>
    %271 = math.exp %270 : vector<2x32x32xf32>
    %cst_117 = arith.constant dense<0.000000e+00> : vector<2x32xf32>
    %272 = vector.multi_reduction <add>, %271, %cst_117 [2] : vector<2x32x32xf32> to vector<2x32xf32>
    %273 = vector.shape_cast %272 : vector<2x32xf32> to vector<2x32x1xf32>
    %274 = vector.broadcast %273 : vector<2x32x1xf32> to vector<2x32x32xf32>
    %275 = arith.divf %271, %274 : vector<2x32x32xf32>
    %276 = arith.truncf %275 : vector<2x32x32xf32> to vector<2x32x32xbf16>
    %277 = arith.truncf %257 : vector<2x32x8xf32> to vector<2x32x8xbf16>
    "tpu.trace_start"() <{level = 10 : i32, message = "bqk,bkd->bqd"}> : () -> ()
    %cst_118 = arith.constant dense<0.000000e+00> : vector<2x32x8xf32>
    %278 = tpu.matmul %276, %277, %cst_118 {dimension_numbers = #tpu.dot_dimension_numbers<[2], [1], [1], [2], [0, 0, 0, 1, 1, 2], [0], [0]>} : vector<2x32x32xbf16>, vector<2x32x8xbf16>, vector<2x32x8xf32> -> vector<2x32x8xf32>
    "tpu.trace_stop"() : () -> ()
    %279 = vector.shape_cast %278 : vector<2x32x8xf32> to vector<64x8xf32>
    %280 = arith.truncf %279 : vector<64x8xf32> to vector<64x8xbf16>
    %281 = vector.extract_strided_slice %253 {offsets = [0, 0], sizes = [8, 32], strides = [1, 1]} : vector<32x32xbf16> to vector<8x32xbf16>
    %cst_119 = arith.constant dense<0.000000e+00> : vector<64x32xf32>
    %282 = tpu.matmul %280, %281, %cst_119 {dimension_numbers = #tpu.dot_dimension_numbers<[1], [0], [0], [1], [0, 0, 1, 1], [], []>} : vector<64x8xbf16>, vector<8x32xbf16>, vector<64x32xf32> -> vector<64x32xf32>
    %283 = arith.addf %254, %282 : vector<64x32xf32>
    %284 = vector.extract_strided_slice %251 {offsets = [0, 0, 8], sizes = [2, 32, 8], strides = [1, 1, 1]} : vector<2x32x96xf32> to vector<2x32x8xf32>
    %285 = vector.extract_strided_slice %251 {offsets = [0, 0, 40], sizes = [2, 32, 8], strides = [1, 1, 1]} : vector<2x32x96xf32> to vector<2x32x8xf32>
    %286 = vector.extract_strided_slice %251 {offsets = [0, 0, 72], sizes = [2, 32, 8], strides = [1, 1, 1]} : vector<2x32x96xf32> to vector<2x32x8xf32>
    %287 = arith.truncf %284 : vector<2x32x8xf32> to vector<2x32x8xbf16>
    %288 = arith.truncf %285 : vector<2x32x8xf32> to vector<2x32x8xbf16>
    "tpu.trace_start"() <{level = 10 : i32, message = "bqd,bkd->bqk"}> : () -> ()
    %cst_120 = arith.constant dense<0.000000e+00> : vector<2x32x32xf32>
    %289 = tpu.matmul %287, %288, %cst_120 {dimension_numbers = #tpu.dot_dimension_numbers<[2], [2], [1], [1], [0, 0, 0, 1, 1, 1], [0], [0]>} : vector<2x32x8xbf16>, vector<2x32x8xbf16>, vector<2x32x32xf32> -> vector<2x32x32xf32>
    "tpu.trace_stop"() : () -> ()
    %cst_121 = arith.constant 0.353553385 : f32
    %290 = vector.broadcast %cst_121 : f32 to vector<2x32x32xf32>
    %291 = arith.mulf %289, %290 : vector<2x32x32xf32>
    %cst_122 = arith.constant -1.000000e+30 : f32
    %292 = vector.shape_cast %27 : vector<1x1x32xi1> to vector<1x1x32xi1>
    %293 = vector.broadcast %292 : vector<1x1x32xi1> to vector<2x32x32xi1>
    %294 = vector.broadcast %cst_122 : f32 to vector<2x32x32xf32>
    %295 = arith.select %293, %291, %294 : vector<2x32x32xi1>, vector<2x32x32xf32>
    %cst_123 = arith.constant dense<0xFF800000> : vector<2x32xf32>
    %296 = vector.multi_reduction <maximumf>, %295, %cst_123 [2] : vector<2x32x32xf32> to vector<2x32xf32>
    %297 = vector.shape_cast %296 : vector<2x32xf32> to vector<2x32x1xf32>
    %298 = vector.broadcast %297 : vector<2x32x1xf32> to vector<2x32x32xf32>
    %299 = arith.subf %295, %298 : vector<2x32x32xf32>
    %300 = math.exp %299 : vector<2x32x32xf32>
    %cst_124 = arith.constant dense<0.000000e+00> : vector<2x32xf32>
    %301 = vector.multi_reduction <add>, %300, %cst_124 [2] : vector<2x32x32xf32> to vector<2x32xf32>
    %302 = vector.shape_cast %301 : vector<2x32xf32> to vector<2x32x1xf32>
    %303 = vector.broadcast %302 : vector<2x32x1xf32> to vector<2x32x32xf32>
    %304 = arith.divf %300, %303 : vector<2x32x32xf32>
    %305 = arith.truncf %304 : vector<2x32x32xf32> to vector<2x32x32xbf16>
    %306 = arith.truncf %286 : vector<2x32x8xf32> to vector<2x32x8xbf16>
    "tpu.trace_start"() <{level = 10 : i32, message = "bqk,bkd->bqd"}> : () -> ()
    %cst_125 = arith.constant dense<0.000000e+00> : vector<2x32x8xf32>
    %307 = tpu.matmul %305, %306, %cst_125 {dimension_numbers = #tpu.dot_dimension_numbers<[2], [1], [1], [2], [0, 0, 0, 1, 1, 2], [0], [0]>} : vector<2x32x32xbf16>, vector<2x32x8xbf16>, vector<2x32x8xf32> -> vector<2x32x8xf32>
    "tpu.trace_stop"() : () -> ()
    %308 = vector.shape_cast %307 : vector<2x32x8xf32> to vector<64x8xf32>
    %309 = arith.truncf %308 : vector<64x8xf32> to vector<64x8xbf16>
    %310 = vector.extract_strided_slice %253 {offsets = [8, 0], sizes = [8, 32], strides = [1, 1]} : vector<32x32xbf16> to vector<8x32xbf16>
    %cst_126 = arith.constant dense<0.000000e+00> : vector<64x32xf32>
    %311 = tpu.matmul %309, %310, %cst_126 {dimension_numbers = #tpu.dot_dimension_numbers<[1], [0], [0], [1], [0, 0, 1, 1], [], []>} : vector<64x8xbf16>, vector<8x32xbf16>, vector<64x32xf32> -> vector<64x32xf32>
    %312 = arith.addf %283, %311 : vector<64x32xf32>
    %313 = vector.extract_strided_slice %251 {offsets = [0, 0, 16], sizes = [2, 32, 8], strides = [1, 1, 1]} : vector<2x32x96xf32> to vector<2x32x8xf32>
    %314 = vector.extract_strided_slice %251 {offsets = [0, 0, 48], sizes = [2, 32, 8], strides = [1, 1, 1]} : vector<2x32x96xf32> to vector<2x32x8xf32>
    %315 = vector.extract_strided_slice %251 {offsets = [0, 0, 80], sizes = [2, 32, 8], strides = [1, 1, 1]} : vector<2x32x96xf32> to vector<2x32x8xf32>
    %316 = arith.truncf %313 : vector<2x32x8xf32> to vector<2x32x8xbf16>
    %317 = arith.truncf %314 : vector<2x32x8xf32> to vector<2x32x8xbf16>
    "tpu.trace_start"() <{level = 10 : i32, message = "bqd,bkd->bqk"}> : () -> ()
    %cst_127 = arith.constant dense<0.000000e+00> : vector<2x32x32xf32>
    %318 = tpu.matmul %316, %317, %cst_127 {dimension_numbers = #tpu.dot_dimension_numbers<[2], [2], [1], [1], [0, 0, 0, 1, 1, 1], [0], [0]>} : vector<2x32x8xbf16>, vector<2x32x8xbf16>, vector<2x32x32xf32> -> vector<2x32x32xf32>
    "tpu.trace_stop"() : () -> ()
    %cst_128 = arith.constant 0.353553385 : f32
    %319 = vector.broadcast %cst_128 : f32 to vector<2x32x32xf32>
    %320 = arith.mulf %318, %319 : vector<2x32x32xf32>
    %cst_129 = arith.constant -1.000000e+30 : f32
    %321 = vector.shape_cast %27 : vector<1x1x32xi1> to vector<1x1x32xi1>
    %322 = vector.broadcast %321 : vector<1x1x32xi1> to vector<2x32x32xi1>
    %323 = vector.broadcast %cst_129 : f32 to vector<2x32x32xf32>
    %324 = arith.select %322, %320, %323 : vector<2x32x32xi1>, vector<2x32x32xf32>
    %cst_130 = arith.constant dense<0xFF800000> : vector<2x32xf32>
    %325 = vector.multi_reduction <maximumf>, %324, %cst_130 [2] : vector<2x32x32xf32> to vector<2x32xf32>
    %326 = vector.shape_cast %325 : vector<2x32xf32> to vector<2x32x1xf32>
    %327 = vector.broadcast %326 : vector<2x32x1xf32> to vector<2x32x32xf32>
    %328 = arith.subf %324, %327 : vector<2x32x32xf32>
    %329 = math.exp %328 : vector<2x32x32xf32>
    %cst_131 = arith.constant dense<0.000000e+00> : vector<2x32xf32>
    %330 = vector.multi_reduction <add>, %329, %cst_131 [2] : vector<2x32x32xf32> to vector<2x32xf32>
    %331 = vector.shape_cast %330 : vector<2x32xf32> to vector<2x32x1xf32>
    %332 = vector.broadcast %331 : vector<2x32x1xf32> to vector<2x32x32xf32>
    %333 = arith.divf %329, %332 : vector<2x32x32xf32>
    %334 = arith.truncf %333 : vector<2x32x32xf32> to vector<2x32x32xbf16>
    %335 = arith.truncf %315 : vector<2x32x8xf32> to vector<2x32x8xbf16>
    "tpu.trace_start"() <{level = 10 : i32, message = "bqk,bkd->bqd"}> : () -> ()
    %cst_132 = arith.constant dense<0.000000e+00> : vector<2x32x8xf32>
    %336 = tpu.matmul %334, %335, %cst_132 {dimension_numbers = #tpu.dot_dimension_numbers<[2], [1], [1], [2], [0, 0, 0, 1, 1, 2], [0], [0]>} : vector<2x32x32xbf16>, vector<2x32x8xbf16>, vector<2x32x8xf32> -> vector<2x32x8xf32>
    "tpu.trace_stop"() : () -> ()
    %337 = vector.shape_cast %336 : vector<2x32x8xf32> to vector<64x8xf32>
    %338 = arith.truncf %337 : vector<64x8xf32> to vector<64x8xbf16>
    %339 = vector.extract_strided_slice %253 {offsets = [16, 0], sizes = [8, 32], strides = [1, 1]} : vector<32x32xbf16> to vector<8x32xbf16>
    %cst_133 = arith.constant dense<0.000000e+00> : vector<64x32xf32>
    %340 = tpu.matmul %338, %339, %cst_133 {dimension_numbers = #tpu.dot_dimension_numbers<[1], [0], [0], [1], [0, 0, 1, 1], [], []>} : vector<64x8xbf16>, vector<8x32xbf16>, vector<64x32xf32> -> vector<64x32xf32>
    %341 = arith.addf %312, %340 : vector<64x32xf32>
    %342 = vector.extract_strided_slice %251 {offsets = [0, 0, 24], sizes = [2, 32, 8], strides = [1, 1, 1]} : vector<2x32x96xf32> to vector<2x32x8xf32>
    %343 = vector.extract_strided_slice %251 {offsets = [0, 0, 56], sizes = [2, 32, 8], strides = [1, 1, 1]} : vector<2x32x96xf32> to vector<2x32x8xf32>
    %344 = vector.extract_strided_slice %251 {offsets = [0, 0, 88], sizes = [2, 32, 8], strides = [1, 1, 1]} : vector<2x32x96xf32> to vector<2x32x8xf32>
    %345 = arith.truncf %342 : vector<2x32x8xf32> to vector<2x32x8xbf16>
    %346 = arith.truncf %343 : vector<2x32x8xf32> to vector<2x32x8xbf16>
    "tpu.trace_start"() <{level = 10 : i32, message = "bqd,bkd->bqk"}> : () -> ()
    %cst_134 = arith.constant dense<0.000000e+00> : vector<2x32x32xf32>
    %347 = tpu.matmul %345, %346, %cst_134 {dimension_numbers = #tpu.dot_dimension_numbers<[2], [2], [1], [1], [0, 0, 0, 1, 1, 1], [0], [0]>} : vector<2x32x8xbf16>, vector<2x32x8xbf16>, vector<2x32x32xf32> -> vector<2x32x32xf32>
    "tpu.trace_stop"() : () -> ()
    %cst_135 = arith.constant 0.353553385 : f32
    %348 = vector.broadcast %cst_135 : f32 to vector<2x32x32xf32>
    %349 = arith.mulf %347, %348 : vector<2x32x32xf32>
    %cst_136 = arith.constant -1.000000e+30 : f32
    %350 = vector.shape_cast %27 : vector<1x1x32xi1> to vector<1x1x32xi1>
    %351 = vector.broadcast %350 : vector<1x1x32xi1> to vector<2x32x32xi1>
    %352 = vector.broadcast %cst_136 : f32 to vector<2x32x32xf32>
    %353 = arith.select %351, %349, %352 : vector<2x32x32xi1>, vector<2x32x32xf32>
    %cst_137 = arith.constant dense<0xFF800000> : vector<2x32xf32>
    %354 = vector.multi_reduction <maximumf>, %353, %cst_137 [2] : vector<2x32x32xf32> to vector<2x32xf32>
    %355 = vector.shape_cast %354 : vector<2x32xf32> to vector<2x32x1xf32>
    %356 = vector.broadcast %355 : vector<2x32x1xf32> to vector<2x32x32xf32>
    %357 = arith.subf %353, %356 : vector<2x32x32xf32>
    %358 = math.exp %357 : vector<2x32x32xf32>
    %cst_138 = arith.constant dense<0.000000e+00> : vector<2x32xf32>
    %359 = vector.multi_reduction <add>, %358, %cst_138 [2] : vector<2x32x32xf32> to vector<2x32xf32>
    %360 = vector.shape_cast %359 : vector<2x32xf32> to vector<2x32x1xf32>
    %361 = vector.broadcast %360 : vector<2x32x1xf32> to vector<2x32x32xf32>
    %362 = arith.divf %358, %361 : vector<2x32x32xf32>
    %363 = arith.truncf %362 : vector<2x32x32xf32> to vector<2x32x32xbf16>
    %364 = arith.truncf %344 : vector<2x32x8xf32> to vector<2x32x8xbf16>
    "tpu.trace_start"() <{level = 10 : i32, message = "bqk,bkd->bqd"}> : () -> ()
    %cst_139 = arith.constant dense<0.000000e+00> : vector<2x32x8xf32>
    %365 = tpu.matmul %363, %364, %cst_139 {dimension_numbers = #tpu.dot_dimension_numbers<[2], [1], [1], [2], [0, 0, 0, 1, 1, 2], [0], [0]>} : vector<2x32x32xbf16>, vector<2x32x8xbf16>, vector<2x32x8xf32> -> vector<2x32x8xf32>
    "tpu.trace_stop"() : () -> ()
    %366 = vector.shape_cast %365 : vector<2x32x8xf32> to vector<64x8xf32>
    %367 = arith.truncf %366 : vector<64x8xf32> to vector<64x8xbf16>
    %368 = vector.extract_strided_slice %253 {offsets = [24, 0], sizes = [8, 32], strides = [1, 1]} : vector<32x32xbf16> to vector<8x32xbf16>
    %cst_140 = arith.constant dense<0.000000e+00> : vector<64x32xf32>
    %369 = tpu.matmul %367, %368, %cst_140 {dimension_numbers = #tpu.dot_dimension_numbers<[1], [0], [0], [1], [0, 0, 1, 1], [], []>} : vector<64x8xbf16>, vector<8x32xbf16>, vector<64x32xf32> -> vector<64x32xf32>
    %370 = arith.addf %341, %369 : vector<64x32xf32>
    %c1_141 = arith.constant 1 : index
    %c0_142 = arith.constant 0 : index
    %c0_143 = arith.constant 0 : index
    %371 = vector.load %arg9[%c1_141, %c0_142, %c0_143] : memref<2x1x32xf32, #tpu.memory_space<vmem>>, vector<1x1x32xf32>
    %372 = vector.shape_cast %371 : vector<1x1x32xf32> to vector<1x32xf32>
    %373 = vector.broadcast %372 : vector<1x32xf32> to vector<64x32xf32>
    %374 = arith.addf %370, %373 : vector<64x32xf32>
    %375 = arith.addf %242, %374 : vector<64x32xf32>
    %cst_144 = arith.constant dense<0.000000e+00> : vector<64xf32>
    %376 = vector.multi_reduction <add>, %375, %cst_144 [1] : vector<64x32xf32> to vector<64xf32>
    %377 = vector.shape_cast %376 : vector<64xf32> to vector<64x1xf32>
    %cst_145 = arith.constant 3.200000e+01 : f32
    %378 = vector.broadcast %cst_145 : f32 to vector<64x1xf32>
    %379 = arith.divf %377, %378 : vector<64x1xf32>
    %380 = vector.broadcast %379 : vector<64x1xf32> to vector<64x32xf32>
    %381 = arith.subf %375, %380 : vector<64x32xf32>
    %382 = arith.mulf %381, %381 : vector<64x32xf32>
    %cst_146 = arith.constant dense<0.000000e+00> : vector<64xf32>
    %383 = vector.multi_reduction <add>, %382, %cst_146 [1] : vector<64x32xf32> to vector<64xf32>
    %384 = vector.shape_cast %383 : vector<64xf32> to vector<64x1xf32>
    %cst_147 = arith.constant 3.200000e+01 : f32
    %385 = vector.broadcast %cst_147 : f32 to vector<64x1xf32>
    %386 = arith.divf %384, %385 : vector<64x1xf32>
    %387 = vector.broadcast %379 : vector<64x1xf32> to vector<64x32xf32>
    %388 = arith.subf %375, %387 : vector<64x32xf32>
    %cst_148 = arith.constant 9.99999974E-6 : f32
    %389 = vector.broadcast %cst_148 : f32 to vector<64x1xf32>
    %390 = arith.addf %386, %389 : vector<64x1xf32>
    %391 = math.rsqrt %390 : vector<64x1xf32>
    %392 = vector.broadcast %391 : vector<64x1xf32> to vector<64x32xf32>
    %393 = arith.mulf %388, %392 : vector<64x32xf32>
    %c1_149 = arith.constant 1 : index
    %c0_150 = arith.constant 0 : index
    %c0_151 = arith.constant 0 : index
    %394 = vector.load %arg10[%c1_149, %c0_150, %c0_151] : memref<2x1x32xf32, #tpu.memory_space<vmem>>, vector<1x1x32xf32>
    %395 = vector.shape_cast %394 : vector<1x1x32xf32> to vector<1x32xf32>
    %396 = vector.broadcast %395 : vector<1x32xf32> to vector<64x32xf32>
    %397 = arith.mulf %393, %396 : vector<64x32xf32>
    %c1_152 = arith.constant 1 : index
    %c0_153 = arith.constant 0 : index
    %c0_154 = arith.constant 0 : index
    %398 = vector.load %arg11[%c1_152, %c0_153, %c0_154] : memref<2x1x32xf32, #tpu.memory_space<vmem>>, vector<1x1x32xf32>
    %399 = vector.shape_cast %398 : vector<1x1x32xf32> to vector<1x32xf32>
    %400 = vector.broadcast %399 : vector<1x32xf32> to vector<64x32xf32>
    %401 = arith.addf %397, %400 : vector<64x32xf32>
    %402 = arith.truncf %401 : vector<64x32xf32> to vector<64x32xbf16>
    %c1_155 = arith.constant 1 : index
    %c0_156 = arith.constant 0 : index
    %c0_157 = arith.constant 0 : index
    %403 = vector.load %arg12[%c1_155, %c0_156, %c0_157] : memref<2x32x128xbf16, #tpu.memory_space<vmem>>, vector<1x32x128xbf16>
    %404 = vector.shape_cast %403 : vector<1x32x128xbf16> to vector<32x128xbf16>
    %cst_158 = arith.constant dense<0.000000e+00> : vector<64x128xf32>
    %405 = tpu.matmul %402, %404, %cst_158 {dimension_numbers = #tpu.dot_dimension_numbers<[1], [0], [0], [1], [0, 0, 1, 1], [], []>} : vector<64x32xbf16>, vector<32x128xbf16>, vector<64x128xf32> -> vector<64x128xf32>
    %c1_159 = arith.constant 1 : index
    %c0_160 = arith.constant 0 : index
    %c0_161 = arith.constant 0 : index
    %406 = vector.load %arg13[%c1_159, %c0_160, %c0_161] : memref<2x1x128xf32, #tpu.memory_space<vmem>>, vector<1x1x128xf32>
    %407 = vector.shape_cast %406 : vector<1x1x128xf32> to vector<1x128xf32>
    %408 = vector.broadcast %407 : vector<1x128xf32> to vector<64x128xf32>
    %409 = arith.addf %405, %408 : vector<64x128xf32>
    %410 = arith.mulf %409, %409 : vector<64x128xf32>
    %cst_162 = arith.constant 5.000000e-01 : f32
    %411 = vector.broadcast %cst_162 : f32 to vector<64x128xf32>
    %412 = arith.mulf %411, %409 : vector<64x128xf32>
    %cst_163 = arith.constant 4.471500e-02 : f32
    %413 = vector.broadcast %cst_163 : f32 to vector<64x128xf32>
    %414 = arith.mulf %413, %410 : vector<64x128xf32>
    %415 = arith.mulf %414, %409 : vector<64x128xf32>
    %416 = arith.addf %409, %415 : vector<64x128xf32>
    %cst_164 = arith.constant 0.797884583 : f32
    %417 = vector.broadcast %cst_164 : f32 to vector<64x128xf32>
    %418 = arith.mulf %417, %416 : vector<64x128xf32>
    %419 = math.tanh %418 : vector<64x128xf32>
    %cst_165 = arith.constant 1.000000e+00 : f32
    %420 = vector.broadcast %cst_165 : f32 to vector<64x128xf32>
    %421 = arith.addf %420, %419 : vector<64x128xf32>
    %422 = arith.mulf %412, %421 : vector<64x128xf32>
    %423 = arith.truncf %422 : vector<64x128xf32> to vector<64x128xbf16>
    %c1_166 = arith.constant 1 : index
    %c0_167 = arith.constant 0 : index
    %c0_168 = arith.constant 0 : index
    %424 = vector.load %arg14[%c1_166, %c0_167, %c0_168] : memref<2x128x32xbf16, #tpu.memory_space<vmem>>, vector<1x128x32xbf16>
    %425 = vector.shape_cast %424 : vector<1x128x32xbf16> to vector<128x32xbf16>
    %cst_169 = arith.constant dense<0.000000e+00> : vector<64x32xf32>
    %426 = tpu.matmul %423, %425, %cst_169 {dimension_numbers = #tpu.dot_dimension_numbers<[1], [0], [0], [1], [0, 0, 1, 1], [], []>} : vector<64x128xbf16>, vector<128x32xbf16>, vector<64x32xf32> -> vector<64x32xf32>
    %c1_170 = arith.constant 1 : index
    %c0_171 = arith.constant 0 : index
    %c0_172 = arith.constant 0 : index
    %427 = vector.load %arg15[%c1_170, %c0_171, %c0_172] : memref<2x1x32xf32, #tpu.memory_space<vmem>>, vector<1x1x32xf32>
    %428 = vector.shape_cast %427 : vector<1x1x32xf32> to vector<1x32xf32>
    %429 = vector.broadcast %428 : vector<1x32xf32> to vector<64x32xf32>
    %430 = arith.addf %426, %429 : vector<64x32xf32>
    %431 = arith.addf %401, %430 : vector<64x32xf32>
    %cst_173 = arith.constant dense<0.000000e+00> : vector<64xf32>
    %432 = vector.multi_reduction <add>, %431, %cst_173 [1] : vector<64x32xf32> to vector<64xf32>
    %433 = vector.shape_cast %432 : vector<64xf32> to vector<64x1xf32>
    %cst_174 = arith.constant 3.200000e+01 : f32
    %434 = vector.broadcast %cst_174 : f32 to vector<64x1xf32>
    %435 = arith.divf %433, %434 : vector<64x1xf32>
    %436 = vector.broadcast %435 : vector<64x1xf32> to vector<64x32xf32>
    %437 = arith.subf %431, %436 : vector<64x32xf32>
    %438 = arith.mulf %437, %437 : vector<64x32xf32>
    %cst_175 = arith.constant dense<0.000000e+00> : vector<64xf32>
    %439 = vector.multi_reduction <add>, %438, %cst_175 [1] : vector<64x32xf32> to vector<64xf32>
    %440 = vector.shape_cast %439 : vector<64xf32> to vector<64x1xf32>
    %cst_176 = arith.constant 3.200000e+01 : f32
    %441 = vector.broadcast %cst_176 : f32 to vector<64x1xf32>
    %442 = arith.divf %440, %441 : vector<64x1xf32>
    %443 = vector.broadcast %435 : vector<64x1xf32> to vector<64x32xf32>
    %444 = arith.subf %431, %443 : vector<64x32xf32>
    %cst_177 = arith.constant 9.99999974E-6 : f32
    %445 = vector.broadcast %cst_177 : f32 to vector<64x1xf32>
    %446 = arith.addf %442, %445 : vector<64x1xf32>
    %447 = math.rsqrt %446 : vector<64x1xf32>
    %448 = vector.broadcast %447 : vector<64x1xf32> to vector<64x32xf32>
    %449 = arith.mulf %444, %448 : vector<64x32xf32>
    %c1_178 = arith.constant 1 : index
    %c0_179 = arith.constant 0 : index
    %c0_180 = arith.constant 0 : index
    %450 = vector.load %arg16[%c1_178, %c0_179, %c0_180] : memref<2x1x32xf32, #tpu.memory_space<vmem>>, vector<1x1x32xf32>
    %451 = vector.shape_cast %450 : vector<1x1x32xf32> to vector<1x32xf32>
    %452 = vector.broadcast %451 : vector<1x32xf32> to vector<64x32xf32>
    %453 = arith.mulf %449, %452 : vector<64x32xf32>
    %c1_181 = arith.constant 1 : index
    %c0_182 = arith.constant 0 : index
    %c0_183 = arith.constant 0 : index
    %454 = vector.load %arg17[%c1_181, %c0_182, %c0_183] : memref<2x1x32xf32, #tpu.memory_space<vmem>>, vector<1x1x32xf32>
    %455 = vector.shape_cast %454 : vector<1x1x32xf32> to vector<1x32xf32>
    %456 = vector.broadcast %455 : vector<1x32xf32> to vector<64x32xf32>
    %457 = arith.addf %453, %456 : vector<64x32xf32>
    %458 = vector.shape_cast %457 : vector<64x32xf32> to vector<2x32x32xf32>
    %459 = vector.extract_strided_slice %458 {offsets = [0, 0, 0], sizes = [2, 1, 32], strides = [1, 1, 1]} : vector<2x32x32xf32> to vector<2x1x32xf32>
    %460 = vector.shape_cast %459 : vector<2x1x32xf32> to vector<2x32xf32>
    %461 = arith.truncf %460 : vector<2x32xf32> to vector<2x32xbf16>
    %c0_184 = arith.constant 0 : index
    %c0_185 = arith.constant 0 : index
    %462 = vector.load %arg18[%c0_184, %c0_185] : memref<32x8xbf16, #tpu.memory_space<vmem>>, vector<32x8xbf16>
    %cst_186 = arith.constant dense<0.000000e+00> : vector<2x8xf32>
    %463 = tpu.matmul %461, %462, %cst_186 {dimension_numbers = #tpu.dot_dimension_numbers<[1], [0], [0], [1], [0, 0, 1, 1], [], []>} : vector<2x32xbf16>, vector<32x8xbf16>, vector<2x8xf32> -> vector<2x8xf32>
    %c0_187 = arith.constant 0 : index
    %c0_188 = arith.constant 0 : index
    %464 = vector.load %arg19[%c0_187, %c0_188] : memref<1x8xf32, #tpu.memory_space<vmem>>, vector<1x8xf32>
    %465 = vector.broadcast %464 : vector<1x8xf32> to vector<2x8xf32>
    %466 = arith.addf %463, %465 : vector<2x8xf32>
    %c0_189 = arith.constant 0 : index
    %c0_190 = arith.constant 0 : index
    %467 = vector.load %arg20[%c0_189, %c0_190] : memref<2x8xf32, #tpu.memory_space<vmem>>, vector<2x8xf32>
    tpu.vector_store %arg20[%c0_189, %c0_190], %466 {strides = array<i32>} : memref<2x8xf32, #tpu.memory_space<vmem>>, vector<2x8xf32>,
    return
  }
  func.func @transform_0(%arg0: i32) -> (i32, i32) {
    %c0_i32 = arith.constant 0 : i32
    %c0_i32_0 = arith.constant 0 : i32
    %c0_i32_1 = arith.constant 0 : i32
    return %c0_i32, %c0_i32_0 : i32, i32
  }
  func.func @transform_1(%arg0: i32) -> (i32, i32) {
    %c0_i32 = arith.constant 0 : i32
    %c0_i32_0 = arith.constant 0 : i32
    %c0_i32_1 = arith.constant 0 : i32
    return %c0_i32, %c0_i32_0 : i32, i32
  }
  func.func @transform_2(%arg0: i32) -> (i32, i32) {
    %c0_i32 = arith.constant 0 : i32
    %c0_i32_0 = arith.constant 0 : i32
    %c0_i32_1 = arith.constant 0 : i32
    return %c0_i32, %c0_i32_0 : i32, i32
  }
  func.func @transform_3(%arg0: i32) -> (i32, i32) {
    %c0_i32 = arith.constant 0 : i32
    %c0_i32_0 = arith.constant 0 : i32
    %c0_i32_1 = arith.constant 0 : i32
    return %c0_i32, %c0_i32_0 : i32, i32
  }
  func.func @transform_4(%arg0: i32) -> (i32, i32) {
    %c0_i32 = arith.constant 0 : i32
    %c0_i32_0 = arith.constant 0 : i32
    %c0_i32_1 = arith.constant 0 : i32
    return %c0_i32, %c0_i32_0 : i32, i32
  }
  func.func @transform_5(%arg0: i32) -> (i32, i32, i32) {
    %c0_i32 = arith.constant 0 : i32
    %c0_i32_0 = arith.constant 0 : i32
    %c0_i32_1 = arith.constant 0 : i32
    %c0_i32_2 = arith.constant 0 : i32
    return %c0_i32, %c0_i32_0, %c0_i32_1 : i32, i32, i32
  }
  func.func @transform_6(%arg0: i32) -> (i32, i32, i32) {
    %c0_i32 = arith.constant 0 : i32
    %c0_i32_0 = arith.constant 0 : i32
    %c0_i32_1 = arith.constant 0 : i32
    %c0_i32_2 = arith.constant 0 : i32
    return %c0_i32, %c0_i32_0, %c0_i32_1 : i32, i32, i32
  }
  func.func @transform_7(%arg0: i32) -> (i32, i32, i32) {
    %c0_i32 = arith.constant 0 : i32
    %c0_i32_0 = arith.constant 0 : i32
    %c0_i32_1 = arith.constant 0 : i32
    %c0_i32_2 = arith.constant 0 : i32
    return %c0_i32, %c0_i32_0, %c0_i32_1 : i32, i32, i32
  }
  func.func @transform_8(%arg0: i32) -> (i32, i32, i32) {
    %c0_i32 = arith.constant 0 : i32
    %c0_i32_0 = arith.constant 0 : i32
    %c0_i32_1 = arith.constant 0 : i32
    %c0_i32_2 = arith.constant 0 : i32
    return %c0_i32, %c0_i32_0, %c0_i32_1 : i32, i32, i32
  }
  func.func @transform_9(%arg0: i32) -> (i32, i32, i32) {
    %c0_i32 = arith.constant 0 : i32
    %c0_i32_0 = arith.constant 0 : i32
    %c0_i32_1 = arith.constant 0 : i32
    %c0_i32_2 = arith.constant 0 : i32
    return %c0_i32, %c0_i32_0, %c0_i32_1 : i32, i32, i32
  }
  func.func @transform_10(%arg0: i32) -> (i32, i32, i32) {
    %c0_i32 = arith.constant 0 : i32
    %c0_i32_0 = arith.constant 0 : i32
    %c0_i32_1 = arith.constant 0 : i32
    %c0_i32_2 = arith.constant 0 : i32
    return %c0_i32, %c0_i32_0, %c0_i32_1 : i32, i32, i32
  }
  func.func @transform_11(%arg0: i32) -> (i32, i32, i32) {
    %c0_i32 = arith.constant 0 : i32
    %c0_i32_0 = arith.constant 0 : i32
    %c0_i32_1 = arith.constant 0 : i32
    %c0_i32_2 = arith.constant 0 : i32
    return %c0_i32, %c0_i32_0, %c0_i32_1 : i32, i32, i32
  }
  func.func @transform_12(%arg0: i32) -> (i32, i32, i32) {
    %c0_i32 = arith.constant 0 : i32
    %c0_i32_0 = arith.constant 0 : i32
    %c0_i32_1 = arith.constant 0 : i32
    %c0_i32_2 = arith.constant 0 : i32
    return %c0_i32, %c0_i32_0, %c0_i32_1 : i32, i32, i32
  }
  func.func @transform_13(%arg0: i32) -> (i32, i32, i32) {
    %c0_i32 = arith.constant 0 : i32
    %c0_i32_0 = arith.constant 0 : i32
    %c0_i32_1 = arith.constant 0 : i32
    %c0_i32_2 = arith.constant 0 : i32
    return %c0_i32, %c0_i32_0, %c0_i32_1 : i32, i32, i32
  }
  func.func @transform_14(%arg0: i32) -> (i32, i32, i32) {
    %c0_i32 = arith.constant 0 : i32
    %c0_i32_0 = arith.constant 0 : i32
    %c0_i32_1 = arith.constant 0 : i32
    %c0_i32_2 = arith.constant 0 : i32
    return %c0_i32, %c0_i32_0, %c0_i32_1 : i32, i32, i32
  }
  func.func @transform_15(%arg0: i32) -> (i32, i32, i32) {
    %c0_i32 = arith.constant 0 : i32
    %c0_i32_0 = arith.constant 0 : i32
    %c0_i32_1 = arith.constant 0 : i32
    %c0_i32_2 = arith.constant 0 : i32
    return %c0_i32, %c0_i32_0, %c0_i32_1 : i32, i32, i32
  }
  func.func @transform_16(%arg0: i32) -> (i32, i32, i32) {
    %c0_i32 = arith.constant 0 : i32
    %c0_i32_0 = arith.constant 0 : i32
    %c0_i32_1 = arith.constant 0 : i32
    %c0_i32_2 = arith.constant 0 : i32
    return %c0_i32, %c0_i32_0, %c0_i32_1 : i32, i32, i32
  }
  func.func @transform_17(%arg0: i32) -> (i32, i32) {
    %c0_i32 = arith.constant 0 : i32
    %c0_i32_0 = arith.constant 0 : i32
    %c0_i32_1 = arith.constant 0 : i32
    return %c0_i32, %c0_i32_0 : i32, i32
  }
  func.func @transform_18(%arg0: i32) -> (i32, i32) {
    %c0_i32 = arith.constant 0 : i32
    %c0_i32_0 = arith.constant 0 : i32
    %c0_i32_1 = arith.constant 0 : i32
    return %c0_i32, %c0_i32_0 : i32, i32
  }
  func.func @transform_19(%arg0: i32) -> (i32, i32) {
    %c0_i32 = arith.constant 0 : i32
    %c0_i32_0 = arith.constant 0 : i32
    %c0_i32_1 = arith.constant 0 : i32
    return %c0_i32, %c0_i32_0 : i32, i32
  }
}

</mosaic_0001>

<bundles_post_ra>
// kernel: vit_classifier_forward.1
= control target key start
LH: loop header
LB: loop body
LE: loop exit
PB: predicated region body
PF: predicated region fallthrough
CT: control target
= control target key end

     0   :  { %s8290_s0 = inlined_call_operand.vmem [shape: f32[32,64], index: 0, kind: input, shape index: {}]   ;;  %s8291_s1 = inlined_call_operand.vmem [shape: bf16[64,32], index: 1, kind: input, shape index: {}]   ;;  %s8292_s2 = inlined_call_operand.vmem [shape: f32[1,32], index: 2, kind: input, shape index: {}]   ;;  %s8293_s3 = inlined_call_operand.vmem [shape: f32[1,32], index: 3, kind: input, shape index: {}]   ;;  %s8294_s4 = inlined_call_operand.vmem [shape: f32[32,32], index: 4, kind: input, shape index: {}]   ;;  %s8295_s5 = inlined_call_operand.vmem [shape: bf16[2,32,96], index: 5, kind: input, shape index: {}]   ;;  %s8296_s6 = inlined_call_operand.vmem [shape: f32[2,1,96], index: 6, kind: input, shape index: {}]   ;;  %s8297_s7 = inlined_call_operand.vmem [shape: bf16[2,32,32], index: 7, kind: input, shape index: {}]   ;;  %s8298_s8 = inlined_call_operand.vmem [shape: f32[2,1,32], index: 8, kind: input, shape index: {}]   ;;  %s8299_s9 = inlined_call_operand.vmem [shape: f32[2,1,32], index: 9, kind: input, shape index: {}]   ;;  %s8300_s10 = inlined_call_operand.vmem [shape: f32[2,1,32], index: 10, kind: input, shape index: {}]   ;;  %s8301_s11 = inlined_call_operand.vmem [shape: bf16[2,32,128], index: 11, kind: input, shape index: {}]   ;;  %s8302_s12 = inlined_call_operand.vmem [shape: f32[2,1,128], index: 12, kind: input, shape index: {}]   ;;  %s8303_s13 = inlined_call_operand.vmem [shape: bf16[2,128,32], index: 13, kind: input, shape index: {}]   ;;  %s8304_s14 = inlined_call_operand.vmem [shape: f32[2,1,32], index: 14, kind: input, shape index: {}]   ;;  %s8305_s15 = inlined_call_operand.vmem [shape: f32[2,1,32], index: 15, kind: input, shape index: {}]   ;;  %s8306_s16 = inlined_call_operand.vmem [shape: f32[2,1,32], index: 16, kind: input, shape index: {}]   ;;  %s8307_s17 = inlined_call_operand.vmem [shape: bf16[32,8], index: 17, kind: input, shape index: {}]   ;;  %s8308_s18 = inlined_call_operand.vmem [shape: f32[1,8], index: 18, kind: input, shape index: {}]   ;;  %s8309_s19 = inlined_call_operand.hbm [shape: f32[2,8], index: 19, kind: output, shape index: {}]  }
   0x1   :  { %8318 = sst [smem:[#allocation6_spill]] %s8290_s0 }
   0x2   :  { %8319 = sst [smem:[#allocation7_spill]] %s8291_s1 }
   0x3   :  { %8320 = sst [smem:[#allocation8_spill]] %s8292_s2 }
   0x4   :  { %8321 = sst [smem:[#allocation9_spill]] %s8293_s3 }
   0x5   :  { %s8322_s20 = sld [smem:[#allocation7_spill]]  ;;  %s8323_s25 = sld [smem:[#allocation6_spill]]  ;;  %vm109_vm0 = vcmask 523264  }
   0xb   :  { %v6288_v0 = vld [vmem:[%s8322_s20] sm:$0xff]   ;;  %v6289_v1 = vld [vmem:[%s8322_s20 + $0x8] sm:$0xff]   ;;  %v6290_v2 = vld [vmem:[%s8322_s20 + $0x10] sm:$0xff]  }
   0xc   :  { %5734 = vmatprep.subr.bf16.mxu0 %v6288_v0  ;;  %v64_v3 = vld [vmem:[%s8323_s25] sm:$0xff]  ;;  %v65_v4 = vld [vmem:[%s8323_s25 + $0x8] sm:$0xff]  ;;  %v6291_v6 = vld [vmem:[%s8322_s20 + $0x18] sm:$0xff]  }
   0xd   :  { %5735 = vmatpush3.bf16.msra.mxu0 %v6288_v0  ;;  %v68_v5 = vpack.c.bf16 %v65_v4, %v64_v3  ;;  %v66_v7 = vld [vmem:[%s8323_s25 + $0x10] sm:$0xff]  ;;  %v67_v8 = vld [vmem:[%s8323_s25 + $0x18] sm:$0xff] }
   0xe   :  { %5736 = vmatprep.subr.bf16.mxu0 %v6289_v1  ;;  %v69_v9 = vpack.c.bf16 %v67_v8, %v66_v7 }
   0xf   :  { %5742 = vmatprep.mubr.msk.bf16.mxu0 %vm109_vm0, %v68_v5 }
  0x11   :  { %5737 = vmatpush3.bf16.msra.mxu0 %v6289_v1 }
  0x12   :  { %5738 = vmatprep.subr.bf16.mxu0 %v6290_v2 }
  0x15   :  { %5739 = vmatpush3.bf16.msra.mxu0 %v6290_v2 }
  0x16   :  { %5740 = vmatprep.subr.bf16.mxu0 %v6291_v6 }
  0x19   :  { %5741 = vmatpush3.bf16.msra.mxu0 %v6291_v6 }
  0x1c   :  { %5743 = vmatmul.mubr.msk.bf16.vlgmr.msra.gmra.mrb[0].mxu0 %vm109_vm0, %v69_v9 }
  0x1d   :  { %24 = vsyncpa [#allocation4], 0  ;;  %v165_v10 = vld [vmem:[%s8294_s4] sm:$0xff]  ;;  %s8324_s23 = sld [smem:[#allocation9_spill]]  ;;  %vm170_vm1 = vcmask 253952   ;;  %vm188_vm2 = vcmask 261120  }
  0x1e   :  { %vm194_vm3 = vcmask 260096   ;;  %v6690_v13 = vmov 0.0   ;;  %v6292_v14 = vld [vmem:[%s8295_s5] sm:$0xff]   ;;  %v6293_v15 = vld [vmem:[%s8295_s5 + $0x8] sm:$0xff]   ;;  %v167_v17 = vld [vmem:[%s8294_s4 + $0x10] sm:$0xff]  ;;  %v177_v18 = vrot.slane %v165_v10, 1 }
  0x1f   :  { %193 = vst.msk [vmem:[#allocation2 + $0x11] sm:$0xff] %vm188_vm2, %v6690_v13  ;;  %196 = vst.msk [vmem:[#allocation2 + $0x31] sm:$0xff] %vm188_vm2, %v6690_v13  ;;  %5746 = vmatprep.subr.bf16.mxu0 %v6292_v14  ;;  %v166_v16 = vld [vmem:[%s8294_s4 + $0x8] sm:$0xff]  ;;  %vm176_vm4 = vcmask 1046528   ;;  %s8325_s1 = sld [smem:[#allocation8_spill]]  ;;  %v180_v21 = vrot.slane %v167_v17, 1 }
  0x20   :  { %195 = vst.msk [vmem:[#allocation2 + $0x19] sm:$0x7f] %vm194_vm3, %v6690_v13  ;;  %197 = vst.msk [vmem:[#allocation2 + $0x39] sm:$0x7f] %vm194_vm3, %v6690_v13  ;;  %5747 = vmatpush3.bf16.msra.mxu0 %v6292_v14  ;;  %v178_v19 = vrot.slane %v166_v16, 1  ;;  %vm327_vm5 = vcmask 64512  }
  0x21   :  { %5748 = vmatprep.subr.bf16.mxu0 %v6293_v15  ;;  %v5317_v49 = vld [vmem:[%s8296_s6] ss:$0 sm:$0xff]  ;;  %s6691_s20 = smov 96   ;;  %s6692_s2 = smov 64   ;;  %vm1076_vm7 = vcmask 1043456   ;;  %vm6702_vm8 = vmmov 0  }
  0x22   :  { %v179_v23 = vsel %vm176_vm4, %v177_v18, %v178_v19  ;;  %v181_v28 = vsel %vm176_vm4, %v178_v19, %v180_v21  ;;  %v206_v18 = vlaneseq  ;;  %s6694_s24 = smov 120   ;;  %s6695_s25 = smov 56   ;;  %vm5236_vm9 = vcmask 1041409  }
  0x23   :  { %v168_v11 = vld [vmem:[%s8324_s23] sm:$0x1]  ;;  %s6693_s23 = smov 88   ;;  %s6696_s3 = smov 80   ;;  %vm5294_vm10 = vcmask 58368  }
  0x24   :  { %v169_v12 = vadd.f32 %v168_v11, %v165_v10  ;;  %5749 = vmatpush3.bf16.msra.mxu0 %v6293_v15  ;;  %v6906_v19 = vand.u32 127, %v206_v18  ;;  %s6697_s26 = smov 112   ;;  %s6698_s27 = smov 48  }
  0x25   :  { %v5310_v20 = vld [vmem:[%s8325_s1] ss:$0 sm:$0xff]  ;;  %s8316_s21 = smov 72   ;;  %s8314_s1 = smov 104  }
  0x26   :  { %171 = vst.msk [vmem:[#allocation2] sm:$0x1] %vm170_vm1, %v169_v12  ;;  %172 = vst.msk [vmem:[#allocation2 + $0x20] sm:$0x1] %vm170_vm1, %v169_v12  ;;  %vm208_vm6 = vcmp.lt.s32.totalorder %v6906_v19, 17  ;;  %s8312_s28 = smov 40  }
  0x27   :  { %v201_v36 = vld [vmem:[#allocation2 + $0x18] sm:$0xff] }
  0x28   :  { %v205_v46 = vld [vmem:[#allocation2 + $0x38] sm:$0xff] }
  0xef   :  { %v5744_v22 = vpop.f32.mrb[0].mxu0 }
  0xf0   :  { %v159_v24 = vadd.f32 %v5744_v22, %v5310_v20  ;;  %v150_v25 = vpop.f32.mrb[1].mxu0 }
  0xf1   :  { %v151_v26 = vadd.f32 %v5310_v20, %v150_v25  ;;  %v5745_v27 = vpop.f32.mrb[2].mxu0 }
  0xf2   :  { %v186_v29 = vadd.f32 %v179_v23, %v159_v24  ;;  %v162_v30 = vadd.f32 %v5745_v27, %v5310_v20  ;;  %v153_v31 = vpop.f32.mrb[3].mxu0 }
  0xf3   :  { %v184_v32 = vadd.f32 %v179_v23, %v151_v26  ;;  %v154_v33 = vadd.f32 %v5310_v20, %v153_v31 }
  0xf4   :  { %191 = vst.msk [vmem:[#allocation2 + $0x21] sm:$0xff] %vm188_vm2, %v186_v29  ;;  %v187_v34 = vadd.f32 %v181_v28, %v162_v30 }
  0xf5   :  { %189 = vst.msk [vmem:[#allocation2 + $0x1] sm:$0xff] %vm188_vm2, %v184_v32  ;;  %v185_v35 = vadd.f32 %v181_v28, %v154_v33 }
  0xf6   :  { %192 = vst.msk [vmem:[#allocation2 + $0x29] sm:$0xff] %vm188_vm2, %v187_v34 }
  0xf7   :  { %190 = vst.msk [vmem:[#allocation2 + $0x9] sm:$0xff] %vm188_vm2, %v185_v35 }
  0xfb   :  { %v202_v43 = vld [vmem:[#allocation2 + $0x20] sm:$0xff] }
  0xfc   :  { %v198_v37 = vld [vmem:[#allocation2] sm:$0xff] }
  0xfd   :  { %v203_v40 = vld [vmem:[#allocation2 + $0x28] sm:$0xff]  ;;  %v204_v45 = vld [vmem:[#allocation2 + $0x30] sm:$0xff] }
  0xfe   :  { %v199_v38 = vld [vmem:[#allocation2 + $0x8] sm:$0xff]  ;;  %v200_v39 = vld [vmem:[#allocation2 + $0x10] sm:$0xff]  ;;  %v211_v44 = vpack.c.bf16 %v203_v40, %v202_v43  ;;  %v212_v47 = vpack.c.bf16 %v205_v46, %v204_v45 }
  0xff   :  { %v209_v41 = vpack.c.bf16 %v199_v38, %v198_v37  ;;  %v210_v42 = vpack.c.bf16 %v201_v36, %v200_v39 }
 0x101   :  { %5750 = vmatprep.mubr.msk.bf16.mxu0 %vm188_vm2, %v209_v41 }
 0x102   :  { %5751 = vmatmul.mubr.msk.bf16.vlgmr.msra.gmra.mrb[4].mxu0 %vm188_vm2, %v210_v42 }
 0x103   :  { %5754 = vmatprep.mubr.msk.bf16.mxu0 %vm188_vm2, %v211_v44 }
 0x10a   :  { %5755 = vmatmul.mubr.msk.bf16.gmra.mrb[8].mxu0 %vm188_vm2, %v212_v47 }
 0x1d5   :  { %v5752_v48 = vpop.f32.mrb[4].mxu0 }
 0x1d6   :  { %v282_v50 = vpop.f32.mrb[5].mxu0  ;;  %v291_v52 = vadd.f32 %v5752_v48, %v5317_v49 }
 0x1d7   :  { %v5753_v51 = vpop.f32.mrb[6].mxu0  ;;  %v283_v55 = vadd.f32 %v5317_v49, %v282_v50 }
 0x1d8   :  { %v294_v53 = vadd.f32 %v5753_v51, %v5317_v49  ;;  %v285_v54 = vpop.f32.mrb[7].mxu0 }
 0x1d9   :  { %v286_v56 = vadd.f32 %v5317_v49, %v285_v54 }
 0x1da   :  { %v6866_v57 = vpack.c.bf16 %v294_v53, %v291_v52 }
 0x1db   :  { %v6868_v58 = vpack.c.bf16 %v286_v56, %v283_v55 }
 0x1dd   :  { %v5756_v59 = vpop.f32.mrb[8].mxu0  ;;  %323 = vrot.lane.b32.xlu1 %v6868_v58, %s6691_s20  ;;  %5762 = vmatprep.mubr.msk.bf16.mxu1 %vm327_vm5, %v6868_v58 }
 0x1de   :  { %v298_v60 = vpop.f32.mrb[9].mxu0  ;;  %v307_v62 = vadd.f32 %v5756_v59, %v5317_v49 }
 0x1df   :  { %v5757_v61 = vpop.f32.mrb[10].mxu0  ;;  %v299_v1 = vadd.f32 %v5317_v49, %v298_v60 }
 0x1e0   :  { %v310_v63 = vadd.f32 %v5757_v61, %v5317_v49  ;;  %v301_v0 = vpop.f32.mrb[11].mxu0 }
 0x1e1   :  { %v302_v2 = vadd.f32 %v5317_v49, %v301_v0  ;;  %325 = vrot.lane.b32.xlu1 %v6866_v57, %s6691_s20 }
 0x1e2   :  { %v6876_v3 = vpack.c.bf16 %v310_v63, %v307_v62 }
 0x1e3   :  { %v6878_v4 = vpack.c.bf16 %v302_v2, %v299_v1 }
 0x1e5   :  { %391 = vrot.lane.b32.xlu0 %v6878_v4, %s6691_s20  ;;  %5770 = vmatprep.mubr.msk.bf16.mxu0 %vm327_vm5, %v6878_v4 }
 0x1e9   :  { %393 = vrot.lane.b32.xlu0 %v6876_v3, %s6691_s20 }
 0x24f   :  { %v324_v5 = vpop.permute.xlu1 %323 }
 0x250   :  { %6234 = vmatprep.subr.msk.bf16.mxu1 %vm327_vm5, %v324_v5  ;;  %v335_v6 = vsel %vm327_vm5, %v324_v5, 0 }
 0x251   :  { %5759 = vmatpush3.bf16.xpose.msra.mxu1 %v335_v6 }
 0x253   :  { %v326_v7 = vpop.permute.xlu1 %325 }
 0x254   :  { %6235 = vmatprep.subr.msk.bf16.mxu1 %vm327_vm5, %v326_v7  ;;  %v338_v9 = vsel %vm327_vm5, %v326_v7, 0 }
 0x257   :  { %v392_v8 = vpop.permute.xlu0 %391 }
 0x258   :  { %6236 = vmatprep.subr.msk.bf16.mxu0 %vm327_vm5, %v392_v8  ;;  %v402_v10 = vsel %vm327_vm5, %v392_v8, 0 }
 0x259   :  { %5761 = vmatpush3.bf16.xpose.msra.mxu1 %v338_v9  ;;  %5767 = vmatpush3.bf16.xpose.msra.mxu0 %v402_v10 }
 0x25b   :  { %v394_v11 = vpop.permute.xlu0 %393 }
 0x25c   :  { %6237 = vmatprep.subr.msk.bf16.mxu0 %vm327_vm5, %v394_v11  ;;  %v405_v12 = vsel %vm327_vm5, %v394_v11, 0 }
 0x260   :  { %5763 = vmatmul.mubr.msk.bf16.vlgmr.msra.gmra.mrb[0].mxu1 %vm327_vm5, %v6866_v57 }
 0x261   :  { %5769 = vmatpush3.bf16.xpose.msra.mxu0 %v405_v12 }
 0x268   :  { %5771 = vmatmul.mubr.msk.bf16.vlgmr.msra.gmra.mrb[12].mxu0 %vm327_vm5, %v6876_v3 }
 0x333   :  { %v6898_v14 = vpop.f32.mrb[0].mxu1 }
 0x334   :  { %v6900_v15 = vpop.f32.mrb[1].mxu1  ;;  %v458_v61 = vmul.f32 0.35355338, %v6898_v14 }
 0x335   :  { %v6902_v16 = vpop.f32.mrb[2].mxu1  ;;  %v456_v59 = vmul.f32 0.35355338, %v6900_v15 }
 0x336   :  { %v6904_v17 = vpop.f32.mrb[3].mxu1  ;;  %v459_v2 = vmul.f32 0.35355338, %v6902_v16  ;;  %v468_v5 = vsel %vm208_vm6, %v458_v61, -1e+30 }
 0x337   :  { %v457_v60 = vmul.f32 0.35355338, %v6904_v17  ;;  %v466_v62 = vsel %vm208_vm6, %v456_v59, -1e+30  ;;  %v480_v6 = vsel %vm188_vm2, %v468_v5, -inf }
 0x338   :  { %v474_v0 = vsel %vm188_vm2, %v466_v62, -inf  ;;  %v469_v7 = vsel %vm208_vm6, %v459_v2, -1e+30 }
 0x339   :  { %v467_v63 = vsel %vm208_vm6, %v457_v60, -1e+30  ;;  %v483_v8 = vsel %vm188_vm2, %v469_v7, -inf }
 0x33a   :  { %v477_v1 = vsel %vm188_vm2, %v467_v63, -inf }
 0x33b   :  { %v5772_v20 = vpop.f32.mrb[12].mxu0 }
 0x33c   :  { %v441_v21 = vpop.f32.mrb[13].mxu0  ;;  %v462_v22 = vmul.f32 0.35355338, %v5772_v20 }
 0x33d   :  { %v460_v23 = vmul.f32 0.35355338, %v441_v21  ;;  %v5773_v24 = vpop.f32.mrb[14].mxu0 }
 0x33e   :  { %v444_v25 = vpop.f32.mrb[15].mxu0  ;;  %v463_v29 = vmul.f32 0.35355338, %v5773_v24  ;;  %v472_v31 = vsel %vm208_vm6, %v462_v22, -1e+30 }
 0x33f   :  { %v461_v26 = vmul.f32 0.35355338, %v444_v25  ;;  %v470_v27 = vsel %vm208_vm6, %v460_v23, -1e+30  ;;  %v492_v33 = vsel %vm188_vm2, %v472_v31, -inf }
 0x340   :  { %v486_v28 = vsel %vm188_vm2, %v470_v27, -inf  ;;  %v473_v34 = vsel %vm208_vm6, %v463_v29, -1e+30 }
 0x341   :  { %487 = vmax.xlane.f32.xlu0 %v486_v28  ;;  %v471_v30 = vsel %vm208_vm6, %v461_v26, -1e+30  ;;  %v495_v35 = vsel %vm188_vm2, %v473_v34, -inf }
 0x342   :  { %v489_v32 = vsel %vm188_vm2, %v471_v30, -inf }
 0x343   :  { %490 = vmax.xlane.f32.xlu1 %v489_v32 }
 0x345   :  { %493 = vmax.xlane.f32.xlu0 %v492_v33 }
 0x349   :  { %496 = vmax.xlane.f32.xlu0 %v495_v35 }
 0x354   :  { %627 = vrot.lane.b32.xlu1 %v6878_v4, %s6692_s2 }
 0x3ce   :  { %v488_v36 = vpop.xlane.xlu0 %487 }
 0x3cf   :  { %v502_v38 = vsub.f32 %v470_v27, %v488_v36 }
 0x3d0   :  { %v491_v37 = vpop.xlane.xlu1 %490 }
 0x3d1   :  { %v514_v42 = vmul.f32 1.442695, %v502_v38  ;;  %v503_v43 = vsub.f32 %v471_v30, %v491_v37 }
 0x3d2   :  { %v494_v39 = vpop.xlane.xlu0 %493 }
 0x3d3   :  { %v504_v40 = vsub.f32 %v472_v31, %v494_v39  ;;  %v516_v47 = vmul.f32 1.442695, %v503_v43 }
 0x3d4   :  { %v628_v41 = vpop.permute.xlu1 %627 }
 0x3d5   :  { %v518_v44 = vmul.f32 1.442695, %v504_v40  ;;  %5782 = vmatprep.subr.bf16.mxu0 %v628_v41 }
 0x3d6   :  { %v497_v45 = vpop.xlane.xlu0 %496  ;;  %5783 = vmatpush3.bf16.msra.mxu0 %v628_v41 }
 0x3d7   :  { %6318 = vpow2.f32 %v518_v44  ;;  %v505_v46 = vsub.f32 %v473_v34, %v497_v45 }
 0x3d8   :  { %6320 = vpow2.f32 %v514_v42 }
 0x3d9   :  { %v520_v48 = vmul.f32 1.442695, %v505_v46 }
 0x3db   :  { %6322 = vpow2.f32 %v520_v48 }
 0x3dc   :  { %6324 = vpow2.f32 %v516_v47 }
 0x3e1   :  { %v6319_v49 = vpop.eup %6318 }
 0x3e2   :  { %v540_v50 = vsel %vm188_vm2, %v6319_v49, 0.0  ;;  %v6321_v51 = vpop.eup %6320 }
 0x3e3   :  { %541 = vadd.xlane.f32.xlu1 %v540_v50  ;;  %v534_v54 = vsel %vm188_vm2, %v6321_v51, 0.0 }
 0x3e5   :  { %v6323_v52 = vpop.eup %6322 }
 0x3e6   :  { %v543_v53 = vsel %vm188_vm2, %v6323_v52, 0.0  ;;  %v6325_v55 = vpop.eup %6324 }
 0x3e7   :  { %544 = vadd.xlane.f32.xlu0 %v543_v53  ;;  %535 = vadd.xlane.f32.xlu1 %v534_v54  ;;  %v537_v56 = vsel %vm188_vm2, %v6325_v55, 0.0 }
 0x3eb   :  { %538 = vadd.xlane.f32.xlu0 %v537_v56 }
 0x3f8   :  { %765 = vrot.lane.b32.xlu1 %v6878_v4, %s6693_s23 }
 0x3fc   :  { %767 = vrot.lane.b32.xlu1 %v6876_v3, %s6693_s23 }
 0x400   :  { %763 = vrot.lane.b32.xlu1 %v6876_v3, %s6694_s24 }
 0x401   :  { %629 = vrot.lane.b32.xlu0 %v6876_v3, %s6692_s2 }
 0x405   :  { %761 = vrot.lane.b32.xlu0 %v6878_v4, %s6694_s24 }
 0x424   :  { %475 = vmax.xlane.f32.xlu0 %v474_v0  ;;  %478 = vmax.xlane.f32.xlu1 %v477_v1 }
 0x428   :  { %481 = vmax.xlane.f32.xlu0 %v480_v6 }
 0x42c   :  { %484 = vmax.xlane.f32.xlu0 %v483_v8 }
 0x470   :  { %v542_v9 = vpop.xlane.xlu1 %541 }
 0x474   :  { %v545_v10 = vpop.xlane.xlu0 %544  ;;  %v536_v11 = vpop.xlane.xlu1 %535 }
 0x475   :  { %6326 = vrcp.f32 %v545_v10 }
 0x476   :  { %6328 = vrcp.f32 %v536_v11 }
 0x477   :  { %6330 = vrcp.f32 %v542_v9 }
 0x478   :  { %v539_v12 = vpop.xlane.xlu0 %538  ;;  %v766_v15 = vpop.permute.xlu1 %765 }
 0x479   :  { %6332 = vrcp.f32 %v539_v12  ;;  %v776_v28 = vsel %vm327_vm5, %v766_v15, 0 }
 0x47c   :  { %v630_v14 = vpop.permute.xlu0 %629  ;;  %v768_v29 = vpop.permute.xlu1 %767 }
 0x47d   :  { %5784 = vmatprep.subr.bf16.mxu0 %v630_v14  ;;  %v779_v30 = vsel %vm327_vm5, %v768_v29, 0 }
 0x47e   :  { %5785 = vmatpush3.bf16.msra.mxu0 %v630_v14 }
 0x47f   :  { %6240 = vmatprep.subr.msk.bf16.mxu0 %vm327_vm5, %v766_v15  ;;  %v6327_v16 = vpop.eup %6326 }
 0x480   :  { %v6329_v17 = vpop.eup %6328  ;;  %v561_v21 = vmul.f32 %v6327_v16, %v6323_v52  ;;  %v762_v27 = vpop.permute.xlu0 %761 }
 0x481   :  { %v6331_v18 = vpop.eup %6330  ;;  %v555_v22 = vmul.f32 %v6329_v17, %v6321_v51  ;;  %v764_v31 = vpop.permute.xlu1 %763 }
 0x482   :  { %v559_v24 = vmul.f32 %v6331_v18, %v6319_v49 }
 0x483   :  { %v6333_v20 = vpop.eup %6332 }
 0x484   :  { %v557_v23 = vmul.f32 %v6333_v20, %v6325_v55  ;;  %v565_v26 = vpack.c.bf16 %v561_v21, %v559_v24 }
 0x486   :  { %v564_v25 = vpack.c.bf16 %v557_v23, %v555_v22 }
 0x488   :  { %5786 = vmatprep.mubr.msk.bf16.mxu0 %vm188_vm2, %v564_v25 }
 0x489   :  { %5787 = vmatmul.mubr.msk.bf16.vlgmr.msra.gmra.mrb[16].mxu0 %vm188_vm2, %v565_v26 }
 0x48a   :  { %5799 = vmatpush3.bf16.xpose.msra.mxu0 %v776_v28  ;;  %5802 = vmatprep.mubr.msk.bf16.mxu0 %vm327_vm5, %v762_v27 }
 0x48b   :  { %6241 = vmatprep.subr.msk.bf16.mxu0 %vm327_vm5, %v768_v29 }
 0x492   :  { %5801 = vmatpush3.bf16.xpose.msra.mxu0 %v779_v30 }
 0x499   :  { %5803 = vmatmul.mubr.msk.bf16.vlgmr.msra.gmra.mrb[20].mxu0 %vm327_vm5, %v764_v31 }
 0x4b1   :  { %v476_v32 = vpop.xlane.xlu0 %475  ;;  %v479_v33 = vpop.xlane.xlu1 %478 }
 0x4b2   :  { %v498_v34 = vsub.f32 %v466_v62, %v476_v32  ;;  %v499_v35 = vsub.f32 %v467_v63, %v479_v33 }
 0x4b4   :  { %v506_v36 = vmul.f32 1.442695, %v498_v34  ;;  %v508_v37 = vmul.f32 1.442695, %v499_v35 }
 0x4b5   :  { %v482_v38 = vpop.xlane.xlu0 %481 }
 0x4b6   :  { %6334 = vpow2.f32 %v506_v36  ;;  %v500_v39 = vsub.f32 %v468_v5, %v482_v38 }
 0x4b7   :  { %6336 = vpow2.f32 %v508_v37 }
 0x4b8   :  { %v510_v40 = vmul.f32 1.442695, %v500_v39 }
 0x4b9   :  { %v485_v41 = vpop.xlane.xlu0 %484 }
 0x4ba   :  { %6338 = vpow2.f32 %v510_v40  ;;  %v501_v42 = vsub.f32 %v469_v7, %v485_v41 }
 0x4bc   :  { %v512_v43 = vmul.f32 1.442695, %v501_v42 }
 0x4be   :  { %6340 = vpow2.f32 %v512_v43 }
 0x4c0   :  { %v6335_v44 = vpop.eup %6334 }
 0x4c1   :  { %v6337_v45 = vpop.eup %6336  ;;  %v522_v46 = vsel %vm188_vm2, %v6335_v44, 0.0 }
 0x4c2   :  { %523 = vadd.xlane.f32.xlu1 %v522_v46  ;;  %v525_v47 = vsel %vm188_vm2, %v6337_v45, 0.0 }
 0x4c3   :  { %526 = vadd.xlane.f32.xlu0 %v525_v47 }
 0x4c4   :  { %v6339_v48 = vpop.eup %6338 }
 0x4c5   :  { %v528_v49 = vsel %vm188_vm2, %v6339_v48, 0.0 }
 0x4c6   :  { %529 = vadd.xlane.f32.xlu1 %v528_v49 }
 0x4c8   :  { %v6341_v50 = vpop.eup %6340 }
 0x4c9   :  { %v531_v51 = vsel %vm188_vm2, %v6341_v50, 0.0 }
 0x4ca   :  { %532 = vadd.xlane.f32.xlu0 %v531_v51 }
 0x4d7   :  { %566 = vrot.lane.b32.xlu1 %v6868_v58, %s6692_s2 }
 0x4db   :  { %696 = vrot.lane.b32.xlu1 %v6868_v58, %s6693_s23 }
 0x4df   :  { %698 = vrot.lane.b32.xlu1 %v6866_v57, %s6693_s23 }
 0x4e0   :  { %568 = vrot.lane.b32.xlu0 %v6866_v57, %s6692_s2 }
 0x4e3   :  { %694 = vrot.lane.b32.xlu1 %v6866_v57, %s6694_s24 }
 0x4e4   :  { %692 = vrot.lane.b32.xlu0 %v6868_v58, %s6694_s24 }
 0x54f   :  { %v524_v52 = vpop.xlane.xlu1 %523 }
 0x550   :  { %v527_v53 = vpop.xlane.xlu0 %526  ;;  %6342 = vrcp.f32 %v524_v52 }
 0x551   :  { %6344 = vrcp.f32 %v527_v53 }
 0x553   :  { %v530_v54 = vpop.xlane.xlu1 %529 }
 0x554   :  { %6346 = vrcp.f32 %v530_v54 }
 0x557   :  { %v533_v55 = vpop.xlane.xlu0 %532  ;;  %v567_v56 = vpop.permute.xlu1 %566 }
 0x558   :  { %6348 = vrcp.f32 %v533_v55  ;;  %5774 = vmatprep.subr.bf16.mxu1 %v567_v56 }
 0x559   :  { %5775 = vmatpush3.bf16.msra.mxu1 %v567_v56 }
 0x55a   :  { %v6343_v59 = vpop.eup %6342 }
 0x55b   :  { %v6345_v60 = vpop.eup %6344  ;;  %v569_v61 = vpop.permute.xlu0 %568  ;;  %v547_v62 = vmul.f32 %v6343_v59, %v6335_v44 }
 0x55c   :  { %5776 = vmatprep.subr.bf16.mxu1 %v569_v61  ;;  %v6977_v63 = vpop.f32.mrb[16].mxu0  ;;  %v549_v0 = vmul.f32 %v6345_v60, %v6337_v45  ;;  %v697_v1 = vpop.permute.xlu1 %696 }
 0x55d   :  { %5777 = vmatpush3.bf16.msra.mxu1 %v569_v61  ;;  %v6979_v2 = vpop.f32.mrb[17].mxu0  ;;  %v707_v17 = vsel %vm327_vm5, %v697_v1, 0 }
 0x55e   :  { %v6981_v5 = vpop.f32.mrb[18].mxu0  ;;  %6238 = vmatprep.subr.msk.bf16.mxu1 %vm327_vm5, %v697_v1  ;;  %v562_v6 = vpack.c.bf16 %v549_v0, %v547_v62  ;;  %v6347_v9 = vpop.eup %6346 }
 0x55f   :  { %v691_v7 = vpack.c.bf16 %v6981_v5, %v6977_v63  ;;  %v6986_v8 = vpop.f32.mrb[19].mxu0  ;;  %v551_v12 = vmul.f32 %v6347_v9, %v6339_v48  ;;  %v693_v16 = vpop.permute.xlu0 %692 }
 0x560   :  { %v690_v10 = vpack.c.bf16 %v6986_v8, %v6979_v2  ;;  %5778 = vmatprep.mubr.msk.bf16.mxu1 %vm188_vm2, %v562_v6  ;;  %v699_v18 = vpop.permute.xlu1 %698 }
 0x561   :  { %v710_v26 = vsel %vm327_vm5, %v699_v18, 0 }
 0x562   :  { %v6349_v11 = vpop.eup %6348 }
 0x563   :  { %v553_v14 = vmul.f32 %v6349_v11, %v6341_v50 }
 0x564   :  { %v695_v35 = vpop.permute.xlu1 %694 }
 0x565   :  { %v563_v15 = vpack.c.bf16 %v553_v14, %v551_v12 }
 0x567   :  { %5779 = vmatmul.mubr.msk.bf16.vlgmr.msra.gmra.mrb[4].mxu1 %vm188_vm2, %v563_v15 }
 0x568   :  { %5791 = vmatpush3.bf16.xpose.msra.mxu1 %v707_v17  ;;  %5794 = vmatprep.mubr.msk.bf16.mxu1 %vm327_vm5, %v693_v16 }
 0x569   :  { %6239 = vmatprep.subr.msk.bf16.mxu1 %vm327_vm5, %v699_v18 }
 0x56c   :  { %v5804_v20 = vpop.f32.mrb[20].mxu0 }
 0x56d   :  { %v815_v21 = vpop.f32.mrb[21].mxu0  ;;  %v836_v22 = vmul.f32 0.35355338, %v5804_v20 }
 0x56e   :  { %v834_v23 = vmul.f32 0.35355338, %v815_v21  ;;  %v5805_v24 = vpop.f32.mrb[22].mxu0 }
 0x56f   :  { %v818_v25 = vpop.f32.mrb[23].mxu0  ;;  %v837_v30 = vmul.f32 0.35355338, %v5805_v24  ;;  %v844_v32 = vsel %vm208_vm6, %v836_v22, -1e+30 }
 0x570   :  { %v835_v27 = vmul.f32 0.35355338, %v818_v25  ;;  %5793 = vmatpush3.bf16.xpose.msra.mxu1 %v710_v26  ;;  %v842_v28 = vsel %vm208_vm6, %v834_v23, -1e+30  ;;  %v864_v34 = vsel %vm188_vm2, %v844_v32, -inf }
 0x571   :  { %v858_v29 = vsel %vm188_vm2, %v842_v28, -inf  ;;  %v845_v36 = vsel %vm208_vm6, %v837_v30, -1e+30 }
 0x572   :  { %859 = vmax.xlane.f32.xlu0 %v858_v29  ;;  %v843_v31 = vsel %vm208_vm6, %v835_v27, -1e+30  ;;  %v867_v37 = vsel %vm188_vm2, %v845_v36, -inf }
 0x573   :  { %v861_v33 = vsel %vm188_vm2, %v843_v31, -inf }
 0x574   :  { %862 = vmax.xlane.f32.xlu1 %v861_v33 }
 0x576   :  { %865 = vmax.xlane.f32.xlu0 %v864_v34 }
 0x577   :  { %5795 = vmatmul.mubr.msk.bf16.vlgmr.msra.gmra.mrb[8].mxu1 %vm327_vm5, %v695_v35 }
 0x57a   :  { %868 = vmax.xlane.f32.xlu0 %v867_v37 }
 0x585   :  { %999 = vrot.lane.b32.xlu1 %v6878_v4, %s6695_s25 }
 0x5ff   :  { %v860_v38 = vpop.xlane.xlu0 %859 }
 0x600   :  { %v874_v40 = vsub.f32 %v842_v28, %v860_v38 }
 0x601   :  { %v863_v39 = vpop.xlane.xlu1 %862 }
 0x602   :  { %v886_v44 = vmul.f32 1.442695, %v874_v40  ;;  %v875_v45 = vsub.f32 %v843_v31, %v863_v39 }
 0x603   :  { %v866_v41 = vpop.xlane.xlu0 %865 }
 0x604   :  { %v876_v42 = vsub.f32 %v844_v32, %v866_v41  ;;  %v888_v49 = vmul.f32 1.442695, %v875_v45 }
 0x605   :  { %v1000_v43 = vpop.permute.xlu1 %999 }
 0x606   :  { %v890_v46 = vmul.f32 1.442695, %v876_v42  ;;  %5814 = vmatprep.subr.bf16.mxu0 %v1000_v43 }
 0x607   :  { %v869_v47 = vpop.xlane.xlu0 %868  ;;  %5815 = vmatpush3.bf16.msra.mxu0 %v1000_v43 }
 0x608   :  { %6350 = vpow2.f32 %v890_v46  ;;  %v877_v48 = vsub.f32 %v845_v36, %v869_v47 }
 0x609   :  { %6352 = vpow2.f32 %v886_v44 }
 0x60a   :  { %v892_v50 = vmul.f32 1.442695, %v877_v48 }
 0x60c   :  { %6354 = vpow2.f32 %v892_v50 }
 0x60d   :  { %6356 = vpow2.f32 %v888_v49 }
 0x612   :  { %v7011_v51 = vpop.eup %6350 }
 0x613   :  { %v912_v52 = vsel %vm188_vm2, %v7011_v51, 0.0  ;;  %v7015_v53 = vpop.eup %6352 }
 0x614   :  { %913 = vadd.xlane.f32.xlu1 %v912_v52  ;;  %v906_v55 = vsel %vm188_vm2, %v7015_v53, 0.0 }
 0x616   :  { %v6355_v54 = vpop.eup %6354 }
 0x617   :  { %v915_v56 = vsel %vm188_vm2, %v6355_v54, 0.0  ;;  %v6357_v59 = vpop.eup %6356 }
 0x618   :  { %907 = vadd.xlane.f32.xlu1 %v906_v55  ;;  %916 = vadd.xlane.f32.xlu0 %v915_v56  ;;  %v909_v60 = vsel %vm188_vm2, %v6357_v59, 0.0 }
 0x61c   :  { %910 = vadd.xlane.f32.xlu0 %v909_v60 }
 0x629   :  { %1229 = vrot.lane.b32.xlu1 %v6868_v58, %s6696_s3 }
 0x62d   :  { %1231 = vrot.lane.b32.xlu1 %v6866_v57, %s6696_s3 }
 0x631   :  { %1298 = vrot.lane.b32.xlu1 %v6878_v4, %s6696_s3 }
 0x632   :  { %1001 = vrot.lane.b32.xlu0 %v6876_v3, %s6695_s25 }
 0x635   :  { %1300 = vrot.lane.b32.xlu1 %v6876_v3, %s6696_s3 }
 0x636   :  { %1225 = vrot.lane.b32.xlu0 %v6868_v58, %s6697_s26 }
 0x639   :  { %1296 = vrot.lane.b32.xlu1 %v6876_v3, %s6697_s26 }
 0x63a   :  { %1227 = vrot.lane.b32.xlu0 %v6866_v57, %s6697_s26  ;;  %v7037_v61 = vpop.f32.mrb[4].mxu1 }
 0x63b   :  { %v7039_v62 = vpop.f32.mrb[5].mxu1 }
 0x63c   :  { %v7041_v0 = vpop.f32.mrb[6].mxu1 }
 0x63d   :  { %v689_v1 = vpack.c.bf16 %v7041_v0, %v7037_v61  ;;  %v7045_v6 = vpop.f32.mrb[7].mxu1 }
 0x63e   :  { %v688_v9 = vpack.c.bf16 %v7045_v6, %v7039_v62  ;;  %1294 = vrot.lane.b32.xlu0 %v6878_v4, %s6697_s26 }
 0x64a   :  { %v5796_v11 = vpop.f32.mrb[8].mxu1 }
 0x64b   :  { %v746_v12 = vpop.f32.mrb[9].mxu1  ;;  %v832_v18 = vmul.f32 0.35355338, %v5796_v11 }
 0x64c   :  { %v5797_v14 = vpop.f32.mrb[10].mxu1  ;;  %v830_v16 = vmul.f32 0.35355338, %v746_v12 }
 0x64d   :  { %v749_v15 = vpop.f32.mrb[11].mxu1  ;;  %v833_v24 = vmul.f32 0.35355338, %v5797_v14  ;;  %v7065_v25 = vsel %vm208_vm6, %v832_v18, -1e+30 }
 0x64e   :  { %v831_v17 = vmul.f32 0.35355338, %v749_v15  ;;  %v7057_v21 = vsel %vm208_vm6, %v830_v16, -1e+30  ;;  %v852_v26 = vsel %vm188_vm2, %v7065_v25, -inf }
 0x64f   :  { %v846_v23 = vsel %vm188_vm2, %v7057_v21, -inf  ;;  %v7071_v27 = vsel %vm208_vm6, %v833_v24, -1e+30 }
 0x650   :  { %v7053_v20 = vsel %vm208_vm6, %v831_v17, -1e+30  ;;  %v855_v28 = vsel %vm188_vm2, %v7071_v27, -inf }
 0x651   :  { %v849_v22 = vsel %vm188_vm2, %v7053_v20, -inf }
 0x65d   :  { %850 = vmax.xlane.f32.xlu1 %v849_v22  ;;  %847 = vmax.xlane.f32.xlu0 %v846_v23 }
 0x661   :  { %853 = vmax.xlane.f32.xlu0 %v852_v26 }
 0x665   :  { %856 = vmax.xlane.f32.xlu0 %v855_v28 }
 0x6a1   :  { %v914_v29 = vpop.xlane.xlu1 %913 }
 0x6a5   :  { %v917_v30 = vpop.xlane.xlu0 %916  ;;  %v908_v31 = vpop.xlane.xlu1 %907 }
 0x6a6   :  { %6358 = vrcp.f32 %v917_v30 }
 0x6a7   :  { %6360 = vrcp.f32 %v908_v31 }
 0x6a8   :  { %6362 = vrcp.f32 %v914_v29 }
 0x6a9   :  { %v911_v32 = vpop.xlane.xlu0 %910  ;;  %v1230_v34 = vpop.permute.xlu1 %1229 }
 0x6aa   :  { %6364 = vrcp.f32 %v911_v32  ;;  %v1240_v46 = vsel %vm327_vm5, %v1230_v34, 0 }
 0x6ad   :  { %v1002_v33 = vpop.permute.xlu0 %1001  ;;  %v1232_v47 = vpop.permute.xlu1 %1231 }
 0x6ae   :  { %5816 = vmatprep.subr.bf16.mxu0 %v1002_v33  ;;  %v1243_v48 = vsel %vm327_vm5, %v1232_v47, 0 }
 0x6af   :  { %5817 = vmatpush3.bf16.msra.mxu0 %v1002_v33 }
 0x6b0   :  { %6244 = vmatprep.subr.msk.bf16.mxu0 %vm327_vm5, %v1230_v34  ;;  %v6359_v35 = vpop.eup %6358 }
 0x6b1   :  { %v6361_v36 = vpop.eup %6360  ;;  %v933_v39 = vmul.f32 %v6359_v35, %v6355_v54  ;;  %v1226_v45 = vpop.permute.xlu0 %1225 }
 0x6b2   :  { %v6363_v37 = vpop.eup %6362  ;;  %v927_v40 = vmul.f32 %v6361_v36, %v7015_v53  ;;  %v1299_v49 = vpop.permute.xlu1 %1298 }
 0x6b3   :  { %v931_v42 = vmul.f32 %v6363_v37, %v7011_v51  ;;  %v1309_v52 = vsel %vm327_vm5, %v1299_v49, 0 }
 0x6b4   :  { %v6365_v38 = vpop.eup %6364 }
 0x6b5   :  { %v929_v41 = vmul.f32 %v6365_v38, %v6357_v59  ;;  %v937_v44 = vpack.c.bf16 %v933_v39, %v931_v42  ;;  %v1228_v50 = vpop.permute.xlu0 %1227 }
 0x6b6   :  { %v1301_v53 = vpop.permute.xlu1 %1300 }
 0x6b7   :  { %v936_v43 = vpack.c.bf16 %v929_v41, %v927_v40  ;;  %v1312_v54 = vsel %vm327_vm5, %v1301_v53, 0 }
 0x6b9   :  { %5818 = vmatprep.mubr.msk.bf16.mxu0 %vm188_vm2, %v936_v43  ;;  %v1295_v51 = vpop.permute.xlu0 %1294 }
 0x6ba   :  { %5819 = vmatmul.mubr.msk.bf16.vlgmr.msra.gmra.mrb[24].mxu0 %vm188_vm2, %v937_v44  ;;  %v1297_v55 = vpop.permute.xlu1 %1296 }
 0x6bb   :  { %5843 = vmatpush3.bf16.xpose.msra.mxu0 %v1240_v46  ;;  %5846 = vmatprep.mubr.msk.bf16.mxu0 %vm327_vm5, %v1226_v45 }
 0x6bc   :  { %6245 = vmatprep.subr.msk.bf16.mxu0 %vm327_vm5, %v1232_v47 }
 0x6c3   :  { %5845 = vmatpush3.bf16.xpose.msra.mxu0 %v1243_v48 }
 0x6c4   :  { %6246 = vmatprep.subr.msk.bf16.mxu0 %vm327_vm5, %v1299_v49 }
 0x6ca   :  { %5847 = vmatmul.mubr.msk.bf16.vlgmr.msra.gmra.mrb[28].mxu0 %vm327_vm5, %v1228_v50 }
 0x6cb   :  { %5851 = vmatpush3.bf16.xpose.msra.mxu0 %v1309_v52  ;;  %5854 = vmatprep.mubr.msk.bf16.mxu0 %vm327_vm5, %v1295_v51 }
 0x6cc   :  { %6247 = vmatprep.subr.msk.bf16.mxu0 %vm327_vm5, %v1301_v53 }
 0x6d3   :  { %5853 = vmatpush3.bf16.xpose.msra.mxu0 %v1312_v54 }
 0x6da   :  { %5855 = vmatmul.mubr.msk.bf16.vlgmr.msra.gmra.mrb[32].mxu0 %vm327_vm5, %v1297_v55 }
 0x6ea   :  { %v848_v56 = vpop.xlane.xlu0 %847  ;;  %v851_v59 = vpop.xlane.xlu1 %850 }
 0x6eb   :  { %v870_v60 = vsub.f32 %v7057_v21, %v848_v56  ;;  %v871_v11 = vsub.f32 %v7053_v20, %v851_v59 }
 0x6ed   :  { %v878_v12 = vmul.f32 1.442695, %v870_v60  ;;  %v880_v14 = vmul.f32 1.442695, %v871_v11 }
 0x6ee   :  { %v854_v15 = vpop.xlane.xlu0 %853 }
 0x6ef   :  { %6366 = vpow2.f32 %v878_v12  ;;  %v872_v16 = vsub.f32 %v7065_v25, %v854_v15 }
 0x6f0   :  { %6368 = vpow2.f32 %v880_v14 }
 0x6f1   :  { %v882_v17 = vmul.f32 1.442695, %v872_v16 }
 0x6f2   :  { %v857_v18 = vpop.xlane.xlu0 %856 }
 0x6f3   :  { %6370 = vpow2.f32 %v882_v17  ;;  %v873_v22 = vsub.f32 %v7071_v27, %v857_v18 }
 0x6f5   :  { %v884_v23 = vmul.f32 1.442695, %v873_v22 }
 0x6f7   :  { %6372 = vpow2.f32 %v884_v23 }
 0x6f9   :  { %v6367_v24 = vpop.eup %6366 }
 0x6fa   :  { %v6369_v26 = vpop.eup %6368  ;;  %v894_v21 = vsel %vm188_vm2, %v6367_v24, 0.0 }
 0x6fb   :  { %895 = vadd.xlane.f32.xlu1 %v894_v21  ;;  %v897_v20 = vsel %vm188_vm2, %v6369_v26, 0.0 }
 0x6fc   :  { %898 = vadd.xlane.f32.xlu0 %v897_v20 }
 0x6fd   :  { %v6371_v28 = vpop.eup %6370 }
 0x6fe   :  { %v900_v29 = vsel %vm188_vm2, %v6371_v28, 0.0 }
 0x6ff   :  { %901 = vadd.xlane.f32.xlu1 %v900_v29 }
 0x701   :  { %v6373_v25 = vpop.eup %6372 }
 0x702   :  { %v903_v30 = vsel %vm188_vm2, %v6373_v25, 0.0 }
 0x703   :  { %904 = vadd.xlane.f32.xlu0 %v903_v30 }
 0x710   :  { %938 = vrot.lane.b32.xlu1 %v6868_v58, %s6695_s25 }
 0x719   :  { %940 = vrot.lane.b32.xlu0 %v6866_v57, %s6695_s25 }
 0x788   :  { %v896_v27 = vpop.xlane.xlu1 %895 }
 0x789   :  { %v899_v31 = vpop.xlane.xlu0 %898  ;;  %6374 = vrcp.f32 %v896_v27 }
 0x78a   :  { %6376 = vrcp.f32 %v899_v31 }
 0x78c   :  { %v902_v32 = vpop.xlane.xlu1 %901 }
 0x78d   :  { %v7103_v33 = vpop.f32.mrb[24].mxu0  ;;  %6378 = vrcp.f32 %v902_v32 }
 0x78e   :  { %v7105_v34 = vpop.f32.mrb[25].mxu0 }
 0x78f   :  { %v7107_v35 = vpop.f32.mrb[26].mxu0 }
 0x790   :  { %v1063_v36 = vpack.c.bf16 %v7107_v35, %v7103_v33  ;;  %v7111_v37 = vpop.f32.mrb[27].mxu0  ;;  %v905_v38 = vpop.xlane.xlu0 %904 }
 0x791   :  { %v1062_v39 = vpack.c.bf16 %v7111_v37, %v7105_v34  ;;  %6380 = vrcp.f32 %v905_v38  ;;  %v939_v40 = vpop.permute.xlu1 %938 }
 0x792   :  { %5806 = vmatprep.subr.bf16.mxu1 %v939_v40 }
 0x793   :  { %v6375_v41 = vpop.eup %6374  ;;  %5807 = vmatpush3.bf16.msra.mxu1 %v939_v40 }
 0x794   :  { %v6377_v42 = vpop.eup %6376  ;;  %v941_v43 = vpop.permute.xlu0 %940  ;;  %v919_v44 = vmul.f32 %v6375_v41, %v6367_v24 }
 0x795   :  { %5808 = vmatprep.subr.bf16.mxu1 %v941_v43  ;;  %v921_v45 = vmul.f32 %v6377_v42, %v6369_v26 }
 0x797   :  { %5809 = vmatpush3.bf16.msra.mxu1 %v941_v43  ;;  %v934_v46 = vpack.c.bf16 %v921_v45, %v919_v44  ;;  %v6379_v47 = vpop.eup %6378  ;;  %v314_v44 = vld [vmem:[%s8297_s7 + $0x4] sm:$0xf] }
 0x798   :  { %v923_v49 = vmul.f32 %v6379_v47, %v6371_v28  ;;  %6242 = vmatprep.subr.msk.bf16.mxu1 %vm1076_vm7, %v314_v44  ;;  %v1078_v45 = vsel %vm1076_vm7, %v314_v44, 0 }
 0x799   :  { %5810 = vmatprep.mubr.msk.bf16.mxu1 %vm188_vm2, %v934_v46  ;;  %v7151_v46 = vld [vmem:[%s8297_s7] sm:$0xf] }
 0x79b   :  { %v6381_v48 = vpop.eup %6380 }
 0x79c   :  { %v925_v50 = vmul.f32 %v6381_v48, %v6373_v25 }
 0x79d   :  { %v5848_v51 = vpop.f32.mrb[28].mxu0 }
 0x79e   :  { %v1279_v52 = vpop.f32.mrb[29].mxu0  ;;  %v935_v53 = vpack.c.bf16 %v925_v50, %v923_v49  ;;  %v1365_v54 = vmul.f32 0.35355338, %v5848_v51 }
 0x79f   :  { %v1363_v55 = vmul.f32 0.35355338, %v1279_v52  ;;  %v5849_v56 = vpop.f32.mrb[30].mxu0 }
 0x7a0   :  { %v1282_v59 = vpop.f32.mrb[31].mxu0  ;;  %5811 = vmatmul.mubr.msk.bf16.vlgmr.msra.gmra.mrb[12].mxu1 %vm188_vm2, %v935_v53  ;;  %v1366_v60 = vmul.f32 0.35355338, %v5849_v56  ;;  %v1373_v16 = vsel %vm208_vm6, %v1365_v54, -1e+30 }
 0x7a1   :  { %v1364_v11 = vmul.f32 0.35355338, %v1282_v59  ;;  %v1371_v12 = vsel %vm208_vm6, %v1363_v55, -1e+30  ;;  %v1385_v22 = vsel %vm188_vm2, %v1373_v16, -inf  ;;  %5823 = vmatpush3.bf16.msra.mxu1 %v1078_v45 }
 0x7a2   :  { %v1379_v14 = vsel %vm188_vm2, %v1371_v12, -inf  ;;  %v1374_v18 = vsel %vm208_vm6, %v1366_v60, -1e+30  ;;  %6243 = vmatprep.subr.msk.bf16.mxu1 %vm1076_vm7, %v7151_v46 }
 0x7a3   :  { %1380 = vmax.xlane.f32.xlu1 %v1379_v14  ;;  %v1372_v15 = vsel %vm208_vm6, %v1364_v11, -1e+30  ;;  %v1388_v23 = vsel %vm188_vm2, %v1374_v18, -inf }
 0x7a4   :  { %v1382_v17 = vsel %vm188_vm2, %v1372_v15, -inf }
 0x7a5   :  { %1383 = vmax.xlane.f32.xlu0 %v1382_v17 }
 0x7a7   :  { %1386 = vmax.xlane.f32.xlu1 %v1385_v22 }
 0x7a9   :  { %1389 = vmax.xlane.f32.xlu0 %v1388_v23 }
 0x7ad   :  { %v5856_v24 = vpop.f32.mrb[32].mxu0 }
 0x7ae   :  { %v1348_v26 = vpop.f32.mrb[33].mxu0  ;;  %v1369_v21 = vmul.f32 0.35355338, %v5856_v24 }
 0x7af   :  { %v1367_v20 = vmul.f32 0.35355338, %v1348_v26  ;;  %v5857_v28 = vpop.f32.mrb[34].mxu0 }
 0x7b0   :  { %v1351_v29 = vpop.f32.mrb[35].mxu0  ;;  %v1370_v25 = vmul.f32 0.35355338, %v5857_v28  ;;  %v1377_v38 = vsel %vm208_vm6, %v1369_v21, -1e+30 }
 0x7b1   :  { %v1368_v30 = vmul.f32 0.35355338, %v1351_v29  ;;  %v1375_v27 = vsel %vm208_vm6, %v1367_v20, -1e+30  ;;  %v1397_v42 = vsel %vm188_vm2, %v1377_v38, -inf }
 0x7b2   :  { %v1391_v31 = vsel %vm188_vm2, %v1375_v27, -inf  ;;  %v1378_v41 = vsel %vm208_vm6, %v1370_v25, -1e+30 }
 0x7b3   :  { %1392 = vmax.xlane.f32.xlu1 %v1391_v31  ;;  %v1376_v32 = vsel %vm208_vm6, %v1368_v30, -1e+30  ;;  %v1400_v43 = vsel %vm188_vm2, %v1378_v41, -inf }
 0x7b4   :  { %v1394_v40 = vsel %vm188_vm2, %v1376_v32, -inf }
 0x7b5   :  { %1395 = vmax.xlane.f32.xlu0 %v1394_v40 }
 0x7b7   :  { %1398 = vmax.xlane.f32.xlu1 %v1397_v42 }
 0x7b9   :  { %1401 = vmax.xlane.f32.xlu0 %v1400_v43 }
 0x7c8   :  { %1471 = vrot.lane.b32.xlu1 %v6868_v58, %s6698_s27 }
 0x830   :  { %v1381_v47 = vpop.xlane.xlu1 %1380 }
 0x831   :  { %v1403_v48 = vsub.f32 %v1371_v12, %v1381_v47 }
 0x832   :  { %v1384_v49 = vpop.xlane.xlu0 %1383 }
 0x833   :  { %v1404_v51 = vsub.f32 %v1372_v15, %v1384_v49  ;;  %v1411_v53 = vmul.f32 1.442695, %v1403_v48 }
 0x834   :  { %v1387_v50 = vpop.xlane.xlu1 %1386 }
 0x835   :  { %v1405_v52 = vsub.f32 %v1373_v16, %v1387_v50  ;;  %v1413_v59 = vmul.f32 1.442695, %v1404_v51 }
 0x836   :  { %v1390_v54 = vpop.xlane.xlu0 %1389 }
 0x837   :  { %v1415_v55 = vmul.f32 1.442695, %v1405_v52  ;;  %v1406_v56 = vsub.f32 %v1374_v18, %v1390_v54  ;;  %v1158_v54 = vsel %vm1076_vm7, %v7151_v46, 0  ;;  %v315_v46 = vld [vmem:[%s8297_s7 + $0x8] sm:$0xf] }
 0x839   :  { %6382 = vpow2.f32 %v1415_v55  ;;  %v1417_v60 = vmul.f32 1.442695, %v1406_v56 }
 0x83a   :  { %6384 = vpow2.f32 %v1411_v53 }
 0x83b   :  { %6386 = vpow2.f32 %v1417_v60 }
 0x83c   :  { %6388 = vpow2.f32 %v1413_v59 }
 0x840   :  { %v1393_v11 = vpop.xlane.xlu1 %1392 }
 0x841   :  { %v1407_v14 = vsub.f32 %v1375_v27, %v1393_v11  ;;  %v1610_v11 = vsel %vm1076_vm7, %v315_v46, 0 }
 0x842   :  { %v1396_v17 = vpop.xlane.xlu0 %1395 }
 0x843   :  { %v7155_v22 = vpop.eup %6382  ;;  %v1408_v18 = vsub.f32 %v1376_v32, %v1396_v17  ;;  %v1419_v26 = vmul.f32 1.442695, %v1407_v14 }
 0x844   :  { %v7157_v12 = vpop.eup %6384  ;;  %v1399_v23 = vpop.xlane.xlu1 %1398  ;;  %v1433_v15 = vsel %vm188_vm2, %v7155_v22, 0.0 }
 0x845   :  { %v7161_v16 = vpop.eup %6386  ;;  %v1409_v24 = vsub.f32 %v1377_v38, %v1399_v23  ;;  %1434 = vadd.xlane.f32.xlu1 %v1433_v15  ;;  %v1427_v30 = vsel %vm188_vm2, %v7157_v12, 0.0  ;;  %v1421_v27 = vmul.f32 1.442695, %v1408_v18 }
 0x846   :  { %v1402_v21 = vpop.xlane.xlu0 %1401  ;;  %v1436_v20 = vsel %vm188_vm2, %v7161_v16, 0.0  ;;  %v7165_v28 = vpop.eup %6388 }
 0x847   :  { %v1423_v29 = vmul.f32 1.442695, %v1409_v24  ;;  %v1410_v25 = vsub.f32 %v1378_v41, %v1402_v21  ;;  %1437 = vadd.xlane.f32.xlu0 %v1436_v20  ;;  %v1430_v32 = vsel %vm188_vm2, %v7165_v28, 0.0 }
 0x848   :  { %v1472_v55 = vpop.permute.xlu1 %1471 }
 0x849   :  { %6390 = vpow2.f32 %v1423_v29  ;;  %v1425_v31 = vmul.f32 1.442695, %v1410_v25  ;;  %1428 = vadd.xlane.f32.xlu1 %v1427_v30 }
 0x84a   :  { %6392 = vpow2.f32 %v1419_v26 }
 0x84b   :  { %6394 = vpow2.f32 %v1425_v31  ;;  %1431 = vadd.xlane.f32.xlu0 %v1430_v32 }
 0x84c   :  { %6396 = vpow2.f32 %v1421_v27 }
 0x853   :  { %v7171_v38 = vpop.eup %6390 }
 0x854   :  { %v7173_v40 = vpop.eup %6392  ;;  %v1445_v41 = vsel %vm188_vm2, %v7171_v38, 0.0 }
 0x855   :  { %v7177_v42 = vpop.eup %6394  ;;  %1446 = vadd.xlane.f32.xlu1 %v1445_v41  ;;  %v1439_v45 = vsel %vm188_vm2, %v7173_v40, 0.0 }
 0x856   :  { %v1448_v43 = vsel %vm188_vm2, %v7177_v42, 0.0  ;;  %v7181_v44 = vpop.eup %6396 }
 0x857   :  { %1449 = vadd.xlane.f32.xlu0 %v1448_v43  ;;  %v1442_v47 = vsel %vm188_vm2, %v7181_v44, 0.0 }
 0x859   :  { %1440 = vadd.xlane.f32.xlu1 %v1439_v45 }
 0x85b   :  { %1443 = vadd.xlane.f32.xlu0 %v1442_v47 }
 0x86a   :  { %1532 = vrot.lane.b32.xlu1 %v6878_v4, %s6698_s27 }
 0x86e   :  { %1534 = vrot.lane.b32.xlu1 %v6876_v3, %s6698_s27 }
 0x871   :  { %1473 = vrot.lane.b32.xlu0 %v6866_v57, %s6698_s27 }
 0x872   :  { %1691 = vrot.lane.b32.xlu1 %v6866_v57, %s8316_s21 }
 0x873   :  { %v5812_v48 = vpop.f32.mrb[12].mxu1 }
 0x874   :  { %v984_v49 = vpop.f32.mrb[13].mxu1 }
 0x875   :  { %1689 = vrot.lane.b32.xlu0 %v6868_v58, %s8316_s21  ;;  %v5813_v50 = vpop.f32.mrb[14].mxu1 }
 0x876   :  { %v1061_v51 = vpack.c.bf16 %v5813_v50, %v5812_v48  ;;  %1685 = vrot.lane.b32.xlu1 %v6868_v58, %s8314_s1  ;;  %v987_v52 = vpop.f32.mrb[15].mxu1 }
 0x877   :  { %v1060_v53 = vpack.c.bf16 %v987_v52, %v984_v49 }
 0x879   :  { %1758 = vrot.lane.b32.xlu0 %v6878_v4, %s8316_s21  ;;  %5824 = vmatprep.mubr.msk.bf16.mxu1 %vm327_vm5, %v1060_v53 }
 0x87a   :  { %1760 = vrot.lane.b32.xlu1 %v6876_v3, %s8316_s21  ;;  %5825 = vmatmul.mubr.msk.bf16.vlgmr.msra.gmra.mrb[16].mxu1 %vm327_vm5, %v1061_v51 }
 0x87b   :  { %5833 = vmatpush3.bf16.msra.mxu1 %v1158_v54  ;;  %5828 = vmatprep.mubr.msk.bf16.mxu1 %vm327_vm5, %v1062_v39 }
 0x87c   :  { %5858 = vmatprep.subr.bf16.mxu1 %v1472_v55 }
 0x87d   :  { %1687 = vrot.lane.b32.xlu0 %v6866_v57, %s8314_s1 }
 0x87e   :  { %1756 = vrot.lane.b32.xlu1 %v6876_v3, %s8314_s1 }
 0x881   :  { %1754 = vrot.lane.b32.xlu0 %v6878_v4, %s8314_s1 }
 0x882   :  { %5829 = vmatmul.mubr.msk.bf16.gmra.mrb[20].mxu1 %vm327_vm5, %v1063_v36 }
 0x883   :  { %5834 = vmatprep.mubr.msk.bf16.mxu1 %vm327_vm5, %v688_v9 }
 0x88a   :  { %5835 = vmatmul.mubr.msk.bf16.vlgmr.msra.gmra.mrb[16].mxu1 %vm327_vm5, %v689_v1 }
 0x88b   :  { %5859 = vmatpush3.bf16.msra.mxu1 %v1472_v55  ;;  %5838 = vmatprep.mubr.msk.bf16.mxu1 %vm327_vm5, %v690_v10 }
 0x892   :  { %5839 = vmatmul.mubr.msk.bf16.gmra.mrb[20].mxu1 %vm327_vm5, %v691_v7 }
 0x8d2   :  { %v1435_v33 = vpop.xlane.xlu1 %1434 }
 0x8d4   :  { %v1438_v62 = vpop.xlane.xlu0 %1437 }
 0x8d6   :  { %v1429_v6 = vpop.xlane.xlu1 %1428 }
 0x8d7   :  { %6398 = vrcp.f32 %v1429_v6 }
 0x8d8   :  { %v1432_v9 = vpop.xlane.xlu0 %1431 }
 0x8d9   :  { %6400 = vrcp.f32 %v1432_v9 }
 0x8da   :  { %6402 = vrcp.f32 %v1438_v62 }
 0x8db   :  { %6404 = vrcp.f32 %v1435_v33 }
 0x8e1   :  { %v6399_v61 = vpop.eup %6398 }
 0x8e2   :  { %v1447_v0 = vpop.xlane.xlu1 %1446  ;;  %v1452_v2 = vmul.f32 %v6399_v61, %v7157_v12 }
 0x8e3   :  { %v6401_v1 = vpop.eup %6400 }
 0x8e4   :  { %v1450_v34 = vpop.xlane.xlu0 %1449  ;;  %v1454_v8 = vmul.f32 %v6401_v1, %v7165_v28  ;;  %v6403_v7 = vpop.eup %6402 }
 0x8e5   :  { %6406 = vrcp.f32 %v1450_v34  ;;  %v6405_v35 = vpop.eup %6404  ;;  %v1458_v37 = vmul.f32 %v6403_v7, %v7161_v16 }
 0x8e6   :  { %v1441_v63 = vpop.xlane.xlu1 %1440  ;;  %v1467_v5 = vpack.c.bf16 %v1454_v8, %v1452_v2  ;;  %v1456_v56 = vmul.f32 %v6405_v35, %v7155_v22 }
 0x8e7   :  { %6408 = vrcp.f32 %v1441_v63 }
 0x8e8   :  { %6410 = vrcp.f32 %v1447_v0  ;;  %v1444_v10 = vpop.xlane.xlu0 %1443  ;;  %5862 = vmatprep.mubr.msk.bf16.mxu1 %vm188_vm2, %v1467_v5  ;;  %v1468_v60 = vpack.c.bf16 %v1458_v37, %v1456_v56 }
 0x8e9   :  { %6412 = vrcp.f32 %v1444_v10 }
 0x8ea   :  { %v1533_v36 = vpop.permute.xlu1 %1532 }
 0x8eb   :  { %5866 = vmatprep.subr.bf16.mxu0 %v1533_v36 }
 0x8ec   :  { %v1474_v39 = vpop.permute.xlu0 %1473  ;;  %5867 = vmatpush3.bf16.msra.mxu0 %v1533_v36 }
 0x8ed   :  { %5860 = vmatprep.subr.bf16.mxu1 %v1474_v39 }
 0x8ee   :  { %5861 = vmatpush3.bf16.msra.mxu1 %v1474_v39  ;;  %v1535_v59 = vpop.permute.xlu1 %1534 }
 0x8ef   :  { %5868 = vmatprep.subr.bf16.mxu0 %v1535_v59  ;;  %6248 = vmatprep.subr.msk.bf16.mxu1 %vm1076_vm7, %v315_v46  ;;  %v6407_v14 = vpop.eup %6406 }
 0x8f0   :  { %v1690_v17 = vpop.permute.xlu0 %1689  ;;  %5869 = vmatpush3.bf16.msra.mxu0 %v1535_v59  ;;  %v1466_v15 = vmul.f32 %v6407_v14, %v7177_v42 }
 0x8f1   :  { %v6409_v12 = vpop.eup %6408  ;;  %5863 = vmatmul.mubr.msk.bf16.vlgmr.msra.gmra.mrb[24].mxu1 %vm188_vm2, %v1468_v60  ;;  %6249 = vmatprep.subr.msk.bf16.mxu0 %vm327_vm5, %v1690_v17  ;;  %v1700_v25 = vsel %vm327_vm5, %v1690_v17, 0 }
 0x8f2   :  { %v6411_v23 = vpop.eup %6410  ;;  %5875 = vmatpush3.bf16.msra.mxu1 %v1610_v11  ;;  %v1692_v16 = vpop.permute.xlu1 %1691  ;;  %v1460_v24 = vmul.f32 %v6409_v12, %v7173_v40 }
 0x8f3   :  { %v6413_v22 = vpop.eup %6412  ;;  %v1464_v21 = vmul.f32 %v6411_v23, %v7171_v38  ;;  %v1703_v30 = vsel %vm327_vm5, %v1692_v16, 0 }
 0x8f4   :  { %v1759_v18 = vpop.permute.xlu0 %1758  ;;  %v1462_v26 = vmul.f32 %v6413_v22, %v7181_v44 }
 0x8f5   :  { %6251 = vmatprep.subr.msk.bf16.mxu1 %vm327_vm5, %v1759_v18  ;;  %v1470_v28 = vpack.c.bf16 %v1466_v15, %v1464_v21  ;;  %v1769_v43 = vsel %vm327_vm5, %v1759_v18, 0 }
 0x8f6   :  { %v1469_v20 = vpack.c.bf16 %v1462_v26, %v1460_v24  ;;  %v1686_v29 = vpop.permute.xlu1 %1685 }
 0x8f8   :  { %5870 = vmatprep.mubr.msk.bf16.mxu0 %vm188_vm2, %v1469_v20  ;;  %v1688_v27 = vpop.permute.xlu0 %1687 }
 0x8f9   :  { %5871 = vmatmul.mubr.msk.bf16.vlgmr.msra.gmra.mrb[36].mxu0 %vm188_vm2, %v1470_v28 }
 0x8fa   :  { %5885 = vmatpush3.bf16.xpose.msra.mxu0 %v1700_v25  ;;  %5888 = vmatprep.mubr.msk.bf16.mxu0 %vm327_vm5, %v1686_v29  ;;  %v1761_v44 = vpop.permute.xlu1 %1760 }
 0x8fb   :  { %6250 = vmatprep.subr.msk.bf16.mxu0 %vm327_vm5, %v1692_v16  ;;  %v1772_v53 = vsel %vm327_vm5, %v1761_v44, 0 }
 0x8fc   :  { %v1755_v52 = vpop.permute.xlu0 %1754 }
 0x8fe   :  { %v1757_v54 = vpop.permute.xlu1 %1756 }
 0x902   :  { %5887 = vmatpush3.bf16.xpose.msra.mxu0 %v1703_v30 }
 0x909   :  { %5889 = vmatmul.mubr.msk.bf16.vlgmr.msra.gmra.mrb[40].mxu0 %vm327_vm5, %v1688_v27 }
 0x9c4   :  { %v5864_v31 = vpop.f32.mrb[24].mxu1 }
 0x9c5   :  { %v1517_v32 = vpop.f32.mrb[25].mxu1 }
 0x9c6   :  { %v5865_v38 = vpop.f32.mrb[26].mxu1 }
 0x9c7   :  { %v1594_v40 = vpack.c.bf16 %v5865_v38, %v5864_v31  ;;  %v1520_v41 = vpop.f32.mrb[27].mxu1 }
 0x9c8   :  { %v1593_v42 = vpack.c.bf16 %v1520_v41, %v1517_v32 }
 0x9ca   :  { %5876 = vmatprep.mubr.msk.bf16.mxu1 %vm327_vm5, %v1593_v42 }
 0x9cb   :  { %5877 = vmatmul.mubr.msk.bf16.vlgmr.msra.gmra.mrb[16].mxu1 %vm327_vm5, %v1594_v40 }
 0x9cc   :  { %5893 = vmatpush3.bf16.xpose.msra.mxu1 %v1769_v43  ;;  %v5872_v45 = vpop.f32.mrb[36].mxu0 }
 0x9cd   :  { %6252 = vmatprep.subr.msk.bf16.mxu1 %vm327_vm5, %v1761_v44  ;;  %v1578_v47 = vpop.f32.mrb[37].mxu0 }
 0x9ce   :  { %v5873_v48 = vpop.f32.mrb[38].mxu0 }
 0x9cf   :  { %v1596_v49 = vpack.c.bf16 %v5873_v48, %v5872_v45  ;;  %v1581_v50 = vpop.f32.mrb[39].mxu0 }
 0x9d0   :  { %v1595_v51 = vpack.c.bf16 %v1581_v50, %v1578_v47 }
 0x9d2   :  { %5880 = vmatprep.mubr.msk.bf16.mxu1 %vm327_vm5, %v1595_v51 }
 0x9d3   :  { %5881 = vmatmul.mubr.msk.bf16.gmra.mrb[20].mxu1 %vm327_vm5, %v1596_v49 }
 0x9d4   :  { %5895 = vmatpush3.bf16.xpose.msra.mxu1 %v1772_v53  ;;  %5896 = vmatprep.mubr.msk.bf16.mxu1 %vm327_vm5, %v1755_v52 }
 0x9db   :  { %5897 = vmatmul.mubr.msk.bf16.vlgmr.msra.gmra.mrb[28].mxu1 %vm327_vm5, %v1757_v54 }
 0x9dc   :  { %v5890_v55 = vpop.f32.mrb[40].mxu0 }
 0x9dd   :  { %v1739_v33 = vpop.f32.mrb[41].mxu0  ;;  %v1825_v62 = vmul.f32 0.35355338, %v5890_v55 }
 0x9de   :  { %v1823_v6 = vmul.f32 0.35355338, %v1739_v33  ;;  %v5891_v9 = vpop.f32.mrb[42].mxu0 }
 0x9df   :  { %v1742_v61 = vpop.f32.mrb[43].mxu0  ;;  %v1826_v2 = vmul.f32 0.35355338, %v5891_v9  ;;  %v1833_v63 = vsel %vm208_vm6, %v1825_v62, -1e+30 }
 0x9e0   :  { %v1824_v0 = vmul.f32 0.35355338, %v1742_v61  ;;  %v1831_v1 = vsel %vm208_vm6, %v1823_v6, -1e+30  ;;  %v1845_v7 = vsel %vm188_vm2, %v1833_v63, -inf }
 0x9e1   :  { %v1839_v34 = vsel %vm188_vm2, %v1831_v1, -inf  ;;  %v1834_v10 = vsel %vm208_vm6, %v1826_v2, -1e+30 }
 0x9e2   :  { %1840 = vmax.xlane.f32.xlu0 %v1839_v34  ;;  %v1832_v8 = vsel %vm208_vm6, %v1824_v0, -1e+30  ;;  %v1848_v35 = vsel %vm188_vm2, %v1834_v10, -inf }
 0x9e3   :  { %v1842_v5 = vsel %vm188_vm2, %v1832_v8, -inf }
 0x9e4   :  { %1843 = vmax.xlane.f32.xlu1 %v1842_v5 }
 0x9e6   :  { %1846 = vmax.xlane.f32.xlu0 %v1845_v7 }
 0x9ea   :  { %1849 = vmax.xlane.f32.xlu0 %v1848_v35 }
 0xa6f   :  { %v1841_v36 = vpop.xlane.xlu0 %1840 }
 0xa70   :  { %v1863_v46 = vsub.f32 %v1831_v1, %v1841_v36 }
 0xa71   :  { %v1844_v39 = vpop.xlane.xlu1 %1843 }
 0xa72   :  { %v1864_v56 = vsub.f32 %v1832_v8, %v1844_v39  ;;  %v1871_v60 = vmul.f32 1.442695, %v1863_v46 }
 0xa73   :  { %v1847_v37 = vpop.xlane.xlu0 %1846 }
 0xa74   :  { %v1865_v11 = vsub.f32 %v1833_v63, %v1847_v37  ;;  %v1873_v17 = vmul.f32 1.442695, %v1864_v56  ;;  %6414 = vpow2.f32 %v1871_v60 }
 0xa76   :  { %v1875_v12 = vmul.f32 1.442695, %v1865_v11  ;;  %6416 = vpow2.f32 %v1873_v17 }
 0xa77   :  { %v1850_v59 = vpop.xlane.xlu0 %1849 }
 0xa78   :  { %v1866_v14 = vsub.f32 %v1834_v10, %v1850_v59  ;;  %6418 = vpow2.f32 %v1875_v12 }
 0xa7a   :  { %v1877_v22 = vmul.f32 1.442695, %v1866_v14 }
 0xa7c   :  { %6420 = vpow2.f32 %v1877_v22 }
 0xa7e   :  { %v6415_v38 = vpop.eup %6414 }
 0xa7f   :  { %v1887_v42 = vsel %vm188_vm2, %v6415_v38, 0.0 }
 0xa80   :  { %v6417_v41 = vpop.eup %6416 }
 0xa81   :  { %v1890_v44 = vsel %vm188_vm2, %v6417_v41, 0.0 }
 0xa82   :  { %v7295_v43 = vpop.eup %6418 }
 0xa83   :  { %v1893_v47 = vsel %vm188_vm2, %v7295_v43, 0.0 }
 0xa86   :  { %v7298_v45 = vpop.eup %6420 }
 0xa87   :  { %v1896_v48 = vsel %vm188_vm2, %v7298_v45, 0.0 }
 0xaae   :  { %v5898_v23 = vpop.f32.mrb[28].mxu1 }
 0xaaf   :  { %v1808_v15 = vpop.f32.mrb[29].mxu1  ;;  %v1829_v16 = vmul.f32 0.35355338, %v5898_v23 }
 0xab0   :  { %v1827_v18 = vmul.f32 0.35355338, %v1808_v15  ;;  %v5899_v24 = vpop.f32.mrb[30].mxu1 }
 0xab1   :  { %v1811_v26 = vpop.f32.mrb[31].mxu1  ;;  %v1830_v21 = vmul.f32 0.35355338, %v5899_v24  ;;  %v1837_v30 = vsel %vm208_vm6, %v1829_v16, -1e+30 }
 0xab2   :  { %v1828_v20 = vmul.f32 0.35355338, %v1811_v26  ;;  %v1835_v28 = vsel %vm208_vm6, %v1827_v18, -1e+30  ;;  %v1857_v32 = vsel %vm188_vm2, %v1837_v30, -inf }
 0xab3   :  { %v1851_v29 = vsel %vm188_vm2, %v1835_v28, -inf  ;;  %v1838_v31 = vsel %vm208_vm6, %v1830_v21, -1e+30 }
 0xab4   :  { %1852 = vmax.xlane.f32.xlu1 %v1851_v29  ;;  %v1836_v25 = vsel %vm208_vm6, %v1828_v20, -1e+30  ;;  %v1860_v40 = vsel %vm188_vm2, %v1838_v31, -inf }
 0xab5   :  { %v1854_v27 = vsel %vm188_vm2, %v1836_v25, -inf }
 0xab6   :  { %1855 = vmax.xlane.f32.xlu0 %v1854_v27 }
 0xab8   :  { %1858 = vmax.xlane.f32.xlu1 %v1857_v32  ;;  %v316_v32 = vld [vmem:[%s8297_s7 + $0xc] sm:$0xf] }
 0xaba   :  { %1861 = vmax.xlane.f32.xlu0 %v1860_v40 }
 0xabc   :  { %1888 = vadd.xlane.f32.xlu1 %v1887_v42 }
 0xabe   :  { %1891 = vadd.xlane.f32.xlu0 %v1890_v44 }
 0xac0   :  { %1894 = vadd.xlane.f32.xlu1 %v1893_v47 }
 0xac2   :  { %1897 = vadd.xlane.f32.xlu0 %v1896_v48 }
 0xad1   :  { %1931 = vrot.lane.b32.xlu1 %v6868_v58, %s8312_s28 }
 0xb41   :  { %v1853_v49 = vpop.xlane.xlu1 %1852 }
 0xb42   :  { %v1867_v50 = vsub.f32 %v1835_v28, %v1853_v49 }
 0xb43   :  { %v1856_v51 = vpop.xlane.xlu0 %1855 }
 0xb44   :  { %v1879_v52 = vmul.f32 1.442695, %v1867_v50  ;;  %v1868_v54 = vsub.f32 %v1836_v25, %v1856_v51 }
 0xb45   :  { %v1859_v53 = vpop.xlane.xlu1 %1858 }
 0xb46   :  { %v1869_v55 = vsub.f32 %v1837_v30, %v1859_v53  ;;  %6422 = vpow2.f32 %v1879_v52  ;;  %v1881_v61 = vmul.f32 1.442695, %v1868_v54  ;;  %v5372_v53 = vld [vmem:[%s8298_s8] ss:$0 sm:$0xff] }
 0xb47   :  { %v1862_v33 = vpop.xlane.xlu0 %1861 }
 0xb48   :  { %v1883_v62 = vmul.f32 1.442695, %v1869_v55  ;;  %v1870_v6 = vsub.f32 %v1838_v31, %v1862_v33 }
 0xb49   :  { %v1889_v9 = vpop.xlane.xlu1 %1888 }
 0xb4a   :  { %6424 = vpow2.f32 %v1883_v62  ;;  %v1885_v0 = vmul.f32 1.442695, %v1870_v6 }
 0xb4b   :  { %6426 = vrcp.f32 %v1889_v9  ;;  %v1892_v1 = vpop.xlane.xlu0 %1891 }
 0xb4c   :  { %6428 = vpow2.f32 %v1885_v0 }
 0xb4d   :  { %6430 = vrcp.f32 %v1892_v1  ;;  %v1895_v58 = vpop.xlane.xlu1 %1894 }
 0xb4e   :  { %6432 = vpow2.f32 %v1881_v61  ;;  %v6658_v61 = vld [vmem:[#allocation2] sm:$0xff] }
 0xb4f   :  { %v1898_v60 = vpop.xlane.xlu0 %1897 }
 0xb50   :  { %v6423_v2 = vpop.eup %6422  ;;  %6434 = vrcp.f32 %v1898_v60 }
 0xb51   :  { %v1932_v34 = vpop.permute.xlu1 %1931  ;;  %v1899_v46 = vsel %vm188_vm2, %v6423_v2, 0.0  ;;  %6436 = vrcp.f32 %v1895_v58 }
 0xb52   :  { %5900 = vmatprep.subr.bf16.mxu0 %v1932_v34 }
 0xb53   :  { %5901 = vmatpush3.bf16.msra.mxu0 %v1932_v34  ;;  %v6659_v34 = vld [vmem:[#allocation2 + $0x10] sm:$0xff] }
 0xb54   :  { %v6425_v8 = vpop.eup %6424 }
 0xb55   :  { %v6427_v63 = vpop.eup %6426  ;;  %v1905_v5 = vsel %vm188_vm2, %v6425_v8, 0.0 }
 0xb56   :  { %v6429_v7 = vpop.eup %6428  ;;  %1906 = vadd.xlane.f32.xlu1 %v1905_v5  ;;  %v1912_v37 = vmul.f32 %v6427_v63, %v6415_v38  ;;  %v2070_v38 = vsel %vm1076_vm7, %v316_v32, 0 }
 0xb57   :  { %v6431_v10 = vpop.eup %6430  ;;  %v1908_v35 = vsel %vm188_vm2, %v6429_v7, 0.0 }
 0xb58   :  { %v6433_v36 = vpop.eup %6432  ;;  %1909 = vadd.xlane.f32.xlu0 %v1908_v35  ;;  %v1914_v39 = vmul.f32 %v6431_v10, %v6417_v41  ;;  %v6661_v35 = vld [vmem:[#allocation2 + $0x18] sm:$0xff] }
 0xb59   :  { %v1902_v59 = vsel %vm188_vm2, %v6433_v36, 0.0 }
 0xb5a   :  { %1900 = vadd.xlane.f32.xlu1 %v1899_v46  ;;  %v1927_v56 = vpack.c.bf16 %v1914_v39, %v1912_v37  ;;  %v6435_v12 = vpop.eup %6434 }
 0xb5b   :  { %v6437_v22 = vpop.eup %6436  ;;  %v1918_v15 = vmul.f32 %v6435_v12, %v7298_v45 }
 0xb5c   :  { %5904 = vmatprep.mubr.msk.bf16.mxu0 %vm188_vm2, %v1927_v56  ;;  %1903 = vadd.xlane.f32.xlu0 %v1902_v59 }
 0xb6b   :  { %1992 = vrot.lane.b32.xlu1 %v6878_v4, %s8312_s28 }
 0xb6f   :  { %1994 = vrot.lane.b32.xlu1 %v6876_v3, %s8312_s28 }
 0xb72   :  { %1933 = vrot.lane.b32.xlu0 %v6866_v57, %s8312_s28  ;;  %v1916_v57 = vmul.f32 %v6437_v22, %v7295_v43 }
 0xb74   :  { %v1928_v18 = vpack.c.bf16 %v1918_v15, %v1916_v57  ;;  %v6664_v15 = vld [vmem:[#allocation2 + $0x28] sm:$0xff] }
 0xbe3   :  { %v1907_v11 = vpop.xlane.xlu1 %1906 }
 0xbe5   :  { %v1910_v14 = vpop.xlane.xlu0 %1909 }
 0xbe6   :  { %6438 = vrcp.f32 %v1910_v14 }
 0xbe7   :  { %v1901_v17 = vpop.xlane.xlu1 %1900 }
 0xbe8   :  { %6440 = vrcp.f32 %v1901_v17 }
 0xbe9   :  { %6442 = vrcp.f32 %v1907_v11  ;;  %v1904_v23 = vpop.xlane.xlu0 %1903  ;;  %v6662_v11 = vld [vmem:[#allocation2 + $0x20] sm:$0xff] }
 0xbea   :  { %6444 = vrcp.f32 %v1904_v23  ;;  %v6663_v23 = vld [vmem:[#allocation2 + $0x30] sm:$0xff] }
 0xbeb   :  { %v1993_v4 = vpop.permute.xlu1 %1992 }
 0xbec   :  { %5908 = vmatprep.subr.bf16.mxu1 %v1993_v4 }
 0xbed   :  { %v1934_v3 = vpop.permute.xlu0 %1933  ;;  %5909 = vmatpush3.bf16.msra.mxu1 %v1993_v4 }
 0xbee   :  { %5902 = vmatprep.subr.bf16.mxu0 %v1934_v3 }
 0xbef   :  { %5903 = vmatpush3.bf16.msra.mxu0 %v1934_v3  ;;  %v1995_v16 = vpop.permute.xlu1 %1994 }
 0xbf0   :  { %5910 = vmatprep.subr.bf16.mxu1 %v1995_v16  ;;  %v6439_v24 = vpop.eup %6438 }
 0xbf1   :  { %5911 = vmatpush3.bf16.msra.mxu1 %v1995_v16  ;;  %v1926_v28 = vmul.f32 %v6439_v24, %v6429_v7  ;;  %v6665_v16 = vld [vmem:[#allocation2 + $0x38] sm:$0xff] }
 0xbf2   :  { %v6441_v26 = vpop.eup %6440  ;;  %5905 = vmatmul.mubr.msk.bf16.vlgmr.msra.gmra.mrb[44].mxu0 %vm188_vm2, %v1928_v18  ;;  %6253 = vmatprep.subr.msk.bf16.mxu1 %vm1076_vm7, %v316_v32 }
 0xbf3   :  { %v6443_v21 = vpop.eup %6442  ;;  %v1920_v29 = vmul.f32 %v6441_v26, %v6423_v2 }
 0xbf4   :  { %v6445_v20 = vpop.eup %6444  ;;  %v1924_v30 = vmul.f32 %v6443_v21, %v6425_v8  ;;  %v6660_v8 = vld [vmem:[#allocation2 + $0x8] sm:$0xff] }
 0xbf5   :  { %v1922_v25 = vmul.f32 %v6445_v20, %v6433_v36 }
 0xbf6   :  { %v1930_v31 = vpack.c.bf16 %v1926_v28, %v1924_v30 }
 0xbf7   :  { %v1929_v27 = vpack.c.bf16 %v1922_v25, %v1920_v29 }
 0xbf9   :  { %5912 = vmatprep.mubr.msk.bf16.mxu1 %vm188_vm2, %v1929_v27 }
 0xbfa   :  { %5913 = vmatmul.mubr.msk.bf16.vlgmr.msra.gmra.mrb[32].mxu1 %vm188_vm2, %v1930_v31 }
 0xbfb   :  { %5917 = vmatpush3.bf16.msra.mxu1 %v2070_v38 }
 0xcc5   :  { %v5906_v40 = vpop.f32.mrb[44].mxu0 }
 0xcc6   :  { %v1977_v41 = vpop.f32.mrb[45].mxu0 }
 0xcc7   :  { %v5907_v42 = vpop.f32.mrb[46].mxu0 }
 0xcc8   :  { %v2054_v43 = vpack.c.bf16 %v5907_v42, %v5906_v40  ;;  %v1980_v44 = vpop.f32.mrb[47].mxu0 }
 0xcc9   :  { %v2053_v45 = vpack.c.bf16 %v1980_v44, %v1977_v41 }
 0xccb   :  { %5918 = vmatprep.mubr.msk.bf16.mxu1 %vm327_vm5, %v2053_v45 }
 0xccc   :  { %5919 = vmatmul.mubr.msk.bf16.vlgmr.msra.gmra.mrb[16].mxu1 %vm327_vm5, %v2054_v43 }
 0xccd   :  { %v5914_v47 = vpop.f32.mrb[32].mxu1 }
 0xcce   :  { %v2038_v48 = vpop.f32.mrb[33].mxu1 }
 0xccf   :  { %v5915_v49 = vpop.f32.mrb[34].mxu1 }
 0xcd0   :  { %v2056_v50 = vpack.c.bf16 %v5915_v49, %v5914_v47  ;;  %v2041_v51 = vpop.f32.mrb[35].mxu1 }
 0xcd1   :  { %v2055_v52 = vpack.c.bf16 %v2041_v51, %v2038_v48 }
 0xcd3   :  { %5922 = vmatprep.mubr.msk.bf16.mxu1 %vm327_vm5, %v2055_v52 }
 0xcd4   :  { %5923 = vmatmul.mubr.msk.bf16.gmra.mrb[20].mxu1 %vm327_vm5, %v2056_v50 }
 0xd9f   :  { %v5920_v54 = vpop.f32.mrb[16].mxu1 }
 0xda0   :  { %v2106_v55 = vpop.f32.mrb[17].mxu1  ;;  %v2154_v33 = vadd.f32 %v5920_v54, %v5372_v53 }
 0xda1   :  { %v2152_v62 = vadd.f32 %v5372_v53, %v2106_v55  ;;  %v5921_v6 = vpop.f32.mrb[18].mxu1 }
 0xda2   :  { %v2109_v9 = vpop.f32.mrb[19].mxu1  ;;  %v2155_v58 = vadd.f32 %v5921_v6, %v5372_v53  ;;  %v2162_v2 = vadd.f32 %v6659_v34, %v2154_v33 }
 0xda3   :  { %v2160_v0 = vadd.f32 %v6658_v61, %v2152_v62  ;;  %v2153_v1 = vadd.f32 %v5372_v53, %v2109_v9 }
 0xda4   :  { %v2163_v36 = vadd.f32 %v6661_v35, %v2155_v58  ;;  %v2174_v59 = vsel %vm188_vm2, %v2162_v2, 0.0 }
 0xda5   :  { %v2161_v63 = vadd.f32 %v6660_v8, %v2153_v1  ;;  %v2168_v5 = vsel %vm188_vm2, %v2160_v0, 0.0 }
 0xda6   :  { %2169 = vadd.xlane.f32.xlu0 %v2168_v5  ;;  %v2177_v12 = vsel %vm188_vm2, %v2163_v36, 0.0 }
 0xda7   :  { %v5924_v7 = vpop.f32.mrb[20].mxu1  ;;  %v2171_v10 = vsel %vm188_vm2, %v2161_v63, 0.0 }
 0xda8   :  { %2172 = vadd.xlane.f32.xlu1 %v2171_v10  ;;  %v2122_v37 = vpop.f32.mrb[21].mxu1  ;;  %v2158_v39 = vadd.f32 %v5924_v7, %v5372_v53 }
 0xda9   :  { %v2156_v46 = vadd.f32 %v5372_v53, %v2122_v37  ;;  %v5925_v56 = vpop.f32.mrb[22].mxu1  ;;  %v6295_v37 = vld [vmem:[%s8301_s11 + $0x8] sm:$0xff]  }
 0xdaa   :  { %2175 = vadd.xlane.f32.xlu0 %v2174_v59  ;;  %v2125_v60 = vpop.f32.mrb[23].mxu1  ;;  %v2166_v22 = vadd.f32 %v6663_v23, %v2158_v39  ;;  %v2159_v4 = vadd.f32 %v5925_v56, %v5372_v53 }
 0xdab   :  { %v2164_v14 = vadd.f32 %v6662_v11, %v2156_v46  ;;  %v2157_v17 = vadd.f32 %v5372_v53, %v2125_v60 }
 0xdac   :  { %v2167_v18 = vadd.f32 %v6665_v16, %v2159_v4  ;;  %v2186_v24 = vsel %vm188_vm2, %v2166_v22, 0.0 }
 0xdad   :  { %v2165_v3 = vadd.f32 %v6664_v15, %v2157_v17  ;;  %v2180_v57 = vsel %vm188_vm2, %v2164_v14, 0.0 }
 0xdae   :  { %2178 = vadd.xlane.f32.xlu0 %v2177_v12  ;;  %2181 = vadd.xlane.f32.xlu1 %v2180_v57  ;;  %v2189_v21 = vsel %vm188_vm2, %v2167_v18, 0.0 }
 0xdaf   :  { %v2183_v26 = vsel %vm188_vm2, %v2165_v3, 0.0 }
 0xdb2   :  { %2187 = vadd.xlane.f32.xlu1 %v2186_v24  ;;  %2184 = vadd.xlane.f32.xlu0 %v2183_v26 }
 0xdb6   :  { %2190 = vadd.xlane.f32.xlu0 %v2189_v21 }
 0xe33   :  { %v2170_v20 = vpop.xlane.xlu0 %2169 }
 0xe34   :  { %v2193_v28 = vmul.f32 0.03125, %v2170_v20  ;;  %v5373_v20 = vld [vmem:[%s8299_s9] ss:$0 sm:$0xff] }
 0xe35   :  { %v2173_v29 = vpop.xlane.xlu1 %2172 }
 0xe36   :  { %v7342_v25 = vsub.f32 %v2160_v0, %v2193_v28  ;;  %v2194_v30 = vmul.f32 0.03125, %v2173_v29 }
 0xe37   :  { %v2176_v27 = vpop.xlane.xlu0 %2175 }
 0xe38   :  { %v7344_v31 = vsub.f32 %v2161_v63, %v2194_v30  ;;  %v2195_v32 = vmul.f32 0.03125, %v2176_v27  ;;  %v2209_v38 = vmul.f32 %v7342_v25, %v7342_v25 }
 0xe3a   :  { %v7348_v40 = vsub.f32 %v2162_v2, %v2195_v32  ;;  %v2217_v41 = vsel %vm188_vm2, %v2209_v38, 0.0  ;;  %v2210_v42 = vmul.f32 %v7344_v31, %v7344_v31 }
 0xe3b   :  { %v2179_v43 = vpop.xlane.xlu0 %2178  ;;  %2218 = vadd.xlane.f32.xlu1 %v2217_v41  ;;  %v2182_v44 = vpop.xlane.xlu1 %2181 }
 0xe3c   :  { %v2196_v45 = vmul.f32 0.03125, %v2179_v43  ;;  %v2197_v47 = vmul.f32 0.03125, %v2182_v44  ;;  %v2220_v48 = vsel %vm188_vm2, %v2210_v42, 0.0  ;;  %v2211_v49 = vmul.f32 %v7348_v40, %v7348_v40 }
 0xe3d   :  { %2221 = vadd.xlane.f32.xlu0 %v2220_v48 }
 0xe3e   :  { %v7356_v50 = vsub.f32 %v2163_v36, %v2196_v45  ;;  %v7358_v51 = vsub.f32 %v2164_v14, %v2197_v47  ;;  %v2223_v52 = vsel %vm188_vm2, %v2211_v49, 0.0  ;;  %v6294_v36 = vld [vmem:[%s8301_s11] sm:$0xff]  }
 0xe3f   :  { %2224 = vadd.xlane.f32.xlu1 %v2223_v52  ;;  %v2188_v53 = vpop.xlane.xlu1 %2187  ;;  %v2185_v54 = vpop.xlane.xlu0 %2184  ;;  %5926 = vmatprep.subr.bf16.mxu0 %v6294_v36  ;;  %v5374_v45 = vld [vmem:[%s8300_s10] ss:$0 sm:$0xff] }
 0xe40   :  { %v2199_v55 = vmul.f32 0.03125, %v2188_v53  ;;  %v2198_v33 = vmul.f32 0.03125, %v2185_v54  ;;  %v2213_v62 = vmul.f32 %v7358_v51, %v7358_v51  ;;  %v2212_v6 = vmul.f32 %v7356_v50, %v7356_v50  ;;  %5927 = vmatpush3.bf16.msra.mxu0 %v6294_v36 }
 0xe41   :  { %5928 = vmatprep.subr.bf16.mxu0 %v6295_v37 }
 0xe42   :  { %v7365_v9 = vsub.f32 %v2166_v22, %v2199_v55  ;;  %v7367_v61 = vsub.f32 %v2165_v3, %v2198_v33  ;;  %v2229_v0 = vsel %vm188_vm2, %v2213_v62, 0.0  ;;  %v2226_v1 = vsel %vm188_vm2, %v2212_v6, 0.0 }
 0xe43   :  { %2230 = vadd.xlane.f32.xlu1 %v2229_v0  ;;  %2227 = vadd.xlane.f32.xlu0 %v2226_v1  ;;  %v2191_v58 = vpop.xlane.xlu0 %2190 }
 0xe44   :  { %v2200_v34 = vmul.f32 0.03125, %v2191_v58  ;;  %v2215_v2 = vmul.f32 %v7365_v9, %v7365_v9  ;;  %v2214_v8 = vmul.f32 %v7367_v61, %v7367_v61  ;;  %5929 = vmatpush3.bf16.msra.mxu0 %v6295_v37 }
 0xe46   :  { %v7375_v63 = vsub.f32 %v2167_v18, %v2200_v34  ;;  %v2235_v5 = vsel %vm188_vm2, %v2215_v2, 0.0  ;;  %v2232_v7 = vsel %vm188_vm2, %v2214_v8, 0.0 }
 0xe47   :  { %2236 = vadd.xlane.f32.xlu1 %v2235_v5  ;;  %2233 = vadd.xlane.f32.xlu0 %v2232_v7 }
 0xe48   :  { %v2216_v10 = vmul.f32 %v7375_v63, %v7375_v63 }
 0xe4a   :  { %v2238_v35 = vsel %vm188_vm2, %v2216_v10, 0.0 }
 0xe4b   :  { %2239 = vadd.xlane.f32.xlu0 %v2238_v35 }
 0xec8   :  { %v2219_v39 = vpop.xlane.xlu1 %2218 }
 0xec9   :  { %v2241_v46 = vmul.f32 0.03125, %v2219_v39  ;;  %v6296_v39 = vld [vmem:[%s8303_s13] sm:$0xff]  }
 0xeca   :  { %v2222_v56 = vpop.xlane.xlu0 %2221  ;;  %5938 = vmatprep.subr.bf16.mxu0 %v6296_v39 }
 0xecb   :  { %v2249_v59 = vadd.f32 1e-05, %v2241_v46  ;;  %v2242_v60 = vmul.f32 0.03125, %v2222_v56  ;;  %v6297_v46 = vld [vmem:[%s8303_s13 + $0x8] sm:$0xff]   ;;  %v6298_v56 = vld [vmem:[%s8303_s13 + $0x10] sm:$0xff]  }
 0xecc   :  { %v2225_v11 = vpop.xlane.xlu1 %2224 }
 0xecd   :  { %6446 = vrsqrt.f32 %v2249_v59  ;;  %v2250_v14 = vadd.f32 1e-05, %v2242_v60  ;;  %v2243_v17 = vmul.f32 0.03125, %v2225_v11  ;;  %v6299_v59 = vld [vmem:[%s8303_s13 + $0x18] sm:$0xff]   ;;  %v6300_v60 = vld [vmem:[%s8303_s13 + $0x20] sm:$0xff]   ;;  %v6301_v11 = vld [vmem:[%s8303_s13 + $0x28] sm:$0xff]  }
 0xecf   :  { %6448 = vrsqrt.f32 %v2250_v14  ;;  %v2251_v12 = vadd.f32 1e-05, %v2243_v17  ;;  %v6302_v14 = vld [vmem:[%s8303_s13 + $0x30] sm:$0xff]   ;;  %v6303_v17 = vld [vmem:[%s8303_s13 + $0x38] sm:$0xff]  }
 0xed0   :  { %v2231_v23 = vpop.xlane.xlu1 %2230  ;;  %v2228_v22 = vpop.xlane.xlu0 %2227 }
 0xed1   :  { %6450 = vrsqrt.f32 %v2251_v12  ;;  %v2245_v4 = vmul.f32 0.03125, %v2231_v23  ;;  %v2244_v15 = vmul.f32 0.03125, %v2228_v22  ;;  %v5375_v12 = vld [vmem:[%s8302_s12] ss:$0 sm:$0xff] }
 0xed3   :  { %v2253_v3 = vadd.f32 1e-05, %v2245_v4  ;;  %v2252_v57 = vadd.f32 1e-05, %v2244_v15 }
 0xed4   :  { %v2237_v16 = vpop.xlane.xlu1 %2236  ;;  %v2234_v18 = vpop.xlane.xlu0 %2233 }
 0xed5   :  { %6452 = vrsqrt.f32 %v2253_v3  ;;  %v2247_v24 = vmul.f32 0.03125, %v2237_v16  ;;  %v2246_v26 = vmul.f32 0.03125, %v2234_v18 }
 0xed6   :  { %6454 = vrsqrt.f32 %v2252_v57 }
 0xed7   :  { %v6447_v21 = vpop.eup %6446  ;;  %v2255_v28 = vadd.f32 1e-05, %v2247_v24  ;;  %v2254_v29 = vadd.f32 1e-05, %v2246_v26 }
 0xed8   :  { %v2240_v30 = vpop.xlane.xlu0 %2239  ;;  %v2265_v27 = vmul.f32 %v6447_v21, %v7342_v25 }
 0xed9   :  { %v6449_v32 = vpop.eup %6448  ;;  %6456 = vrsqrt.f32 %v2255_v28  ;;  %v2248_v38 = vmul.f32 0.03125, %v2240_v30 }
 0xeda   :  { %6458 = vrsqrt.f32 %v2254_v29  ;;  %v2266_v41 = vmul.f32 %v6449_v32, %v7344_v31  ;;  %v2280_v42 = vmul.f32 %v5373_v20, %v2265_v27 }
 0xedb   :  { %v6451_v43 = vpop.eup %6450  ;;  %v2256_v44 = vadd.f32 1e-05, %v2248_v38 }
 0xedc   :  { %v2281_v47 = vmul.f32 %v5373_v20, %v2266_v41  ;;  %v2267_v48 = vmul.f32 %v6451_v43, %v7348_v40  ;;  %v7397_v49 = vadd.f32 %v5374_v45, %v2280_v42 }
 0xedd   :  { %6460 = vrsqrt.f32 %v2256_v44 }
 0xede   :  { %v7399_v25 = vadd.f32 %v5374_v45, %v2281_v47  ;;  %v2282_v54 = vmul.f32 %v5373_v20, %v2267_v48 }
 0xedf   :  { %v6453_v52 = vpop.eup %6452 }
 0xee0   :  { %v6455_v53 = vpop.eup %6454  ;;  %v2303_v31 = vpack.c.bf16 %v7399_v25, %v7397_v49  ;;  %v2269_v33 = vmul.f32 %v6453_v52, %v7358_v51  ;;  %v7407_v1 = vadd.f32 %v5374_v45, %v2282_v54 }
 0xee1   :  { %v2268_v55 = vmul.f32 %v6455_v53, %v7356_v50 }
 0xee2   :  { %5930 = vmatprep.mubr.msk.bf16.mxu0 %vm188_vm2, %v2303_v31  ;;  %v2284_v2 = vmul.f32 %v5373_v20, %v2269_v33 }
 0xee3   :  { %v6457_v62 = vpop.eup %6456  ;;  %v2283_v6 = vmul.f32 %v5373_v20, %v2268_v55 }
 0xee4   :  { %v6459_v40 = vpop.eup %6458  ;;  %v2271_v0 = vmul.f32 %v6457_v62, %v7365_v9  ;;  %v7416_v10 = vadd.f32 %v5374_v45, %v2284_v2 }
 0xee5   :  { %v7409_v58 = vadd.f32 %v5374_v45, %v2283_v6  ;;  %v2270_v34 = vmul.f32 %v6459_v40, %v7367_v61 }
 0xee6   :  { %v2286_v7 = vmul.f32 %v5373_v20, %v2271_v0 }
 0xee7   :  { %v6461_v8 = vpop.eup %6460  ;;  %v2304_v50 = vpack.c.bf16 %v7409_v58, %v7407_v1  ;;  %v2285_v5 = vmul.f32 %v5373_v20, %v2270_v34 }
 0xee8   :  { %v2272_v51 = vmul.f32 %v6461_v8, %v7375_v63  ;;  %v7422_v61 = vadd.f32 %v5374_v45, %v2286_v7 }
 0xee9   :  { %5931 = vmatmul.mubr.msk.bf16.vlgmr.msra.gmra.mrb[48].mxu0 %vm188_vm2, %v2304_v50  ;;  %v7418_v9 = vadd.f32 %v5374_v45, %v2285_v5 }
 0xeea   :  { %v2287_v35 = vmul.f32 %v5373_v20, %v2272_v51  ;;  %5939 = vmatpush3.bf16.msra.mxu0 %v6296_v39 }
 0xeeb   :  { %v2305_v36 = vpack.c.bf16 %v7418_v9, %v7416_v10  ;;  %5940 = vmatprep.subr.bf16.mxu0 %v6297_v46 }
 0xeec   :  { %v7424_v37 = vadd.f32 %v5374_v45, %v2287_v35 }
 0xeed   :  { %5934 = vmatprep.mubr.msk.bf16.mxu0 %vm188_vm2, %v2305_v36 }
 0xeee   :  { %v2306_v63 = vpack.c.bf16 %v7424_v37, %v7422_v61  ;;  %5941 = vmatpush3.bf16.msra.mxu0 %v6297_v46 }
 0xeef   :  { %5942 = vmatprep.subr.bf16.mxu0 %v6298_v56 }
 0xef1   :  { %5935 = vmatmul.mubr.msk.bf16.gmra.mrb[52].mxu0 %vm188_vm2, %v2306_v63 }
 0xef2   :  { %5943 = vmatpush3.bf16.msra.mxu0 %v6298_v56 }
 0xef3   :  { %5944 = vmatprep.subr.bf16.mxu0 %v6299_v59 }
 0xef6   :  { %5945 = vmatpush3.bf16.msra.mxu0 %v6299_v59 }
 0xef7   :  { %5946 = vmatprep.subr.bf16.mxu0 %v6300_v60 }
 0xefa   :  { %5947 = vmatpush3.bf16.msra.mxu0 %v6300_v60 }
 0xefb   :  { %5948 = vmatprep.subr.bf16.mxu0 %v6301_v11 }
 0xefe   :  { %5949 = vmatpush3.bf16.msra.mxu0 %v6301_v11 }
 0xeff   :  { %5950 = vmatprep.subr.bf16.mxu0 %v6302_v14 }
 0xf02   :  { %5951 = vmatpush3.bf16.msra.mxu0 %v6302_v14 }
 0xf03   :  { %5952 = vmatprep.subr.bf16.mxu0 %v6303_v17 }
 0xf06   :  { %5953 = vmatpush3.bf16.msra.mxu0 %v6303_v17 }
 0xfbc   :  { %v5932_v23 = vpop.f32.mrb[48].mxu0 }
 0xfbd   :  { %v7457_v22 = vadd.f32 %v5932_v23, %v5375_v12  ;;  %v2376_v4 = vpop.f32.mrb[49].mxu0 }
 0xfbe   :  { %v7459_v15 = vadd.f32 %v5375_v12, %v2376_v4  ;;  %v5933_v3 = vpop.f32.mrb[50].mxu0 }
 0xfbf   :  { %v2409_v57 = vmul.f32 %v7457_v22, %v7457_v22  ;;  %v7463_v16 = vadd.f32 %v5933_v3, %v5375_v12  ;;  %v2379_v18 = vpop.f32.mrb[51].mxu0 }
 0xfc0   :  { %v2407_v24 = vmul.f32 %v7459_v15, %v7459_v15  ;;  %v7467_v26 = vadd.f32 %v5375_v12, %v2379_v18 }
 0xfc1   :  { %v2425_v21 = vmul.f32 0.044715, %v2409_v57  ;;  %v2410_v20 = vmul.f32 %v7463_v16, %v7463_v16 }
 0xfc2   :  { %v2423_v28 = vmul.f32 0.044715, %v2407_v24  ;;  %v2408_v29 = vmul.f32 %v7467_v26, %v7467_v26 }
 0xfc3   :  { %v2433_v30 = vmul.f32 %v2425_v21, %v7457_v22  ;;  %v2426_v27 = vmul.f32 0.044715, %v2410_v20 }
 0xfc4   :  { %v2431_v32 = vmul.f32 %v2423_v28, %v7459_v15  ;;  %v2424_v38 = vmul.f32 0.044715, %v2408_v29  ;;  %v5936_v41 = vpop.f32.mrb[52].mxu0  ;;  %v2417_v28 = vmul.f32 0.5, %v7457_v22  ;;  %v2418_v29 = vmul.f32 0.5, %v7463_v16 }
 0xfc5   :  { %v2441_v42 = vadd.f32 %v2433_v30, %v7457_v22  ;;  %v2434_v43 = vmul.f32 %v2426_v27, %v7463_v16  ;;  %v7477_v44 = vadd.f32 %v5936_v41, %v5375_v12  ;;  %v2392_v45 = vpop.f32.mrb[53].mxu0  ;;  %v2415_v27 = vmul.f32 0.5, %v7459_v15 }
 0xfc6   :  { %v2439_v47 = vadd.f32 %v2431_v32, %v7459_v15  ;;  %v2432_v48 = vmul.f32 %v2424_v38, %v7467_v26  ;;  %v7481_v52 = vadd.f32 %v5375_v12, %v2392_v45  ;;  %v5937_v53 = vpop.f32.mrb[54].mxu0  ;;  %v2416_v32 = vmul.f32 0.5, %v7467_v26 }
 0xfc7   :  { %v2449_v31 = vmul.f32 0.7978846, %v2441_v42  ;;  %v2442_v54 = vadd.f32 %v2434_v43, %v7463_v16  ;;  %v2413_v55 = vmul.f32 %v7477_v44, %v7477_v44  ;;  %v2404_v33 = vadd.f32 %v5937_v53, %v5375_v12  ;;  %v2395_v62 = vpop.f32.mrb[55].mxu0 }
 0xfc8   :  { %v2447_v6 = vmul.f32 0.7978846, %v2439_v47  ;;  %v2440_v40 = vadd.f32 %v2432_v48, %v7467_v26  ;;  %v2411_v0 = vmul.f32 %v7481_v52, %v7481_v52  ;;  %v2396_v34 = vadd.f32 %v5375_v12, %v2395_v62 }
 0xfc9   :  { %6462 = vtanh.f32 %v2449_v31  ;;  %v2450_v2 = vmul.f32 0.7978846, %v2442_v54  ;;  %v2429_v8 = vmul.f32 0.044715, %v2413_v55  ;;  %v2414_v50 = vmul.f32 %v2404_v33, %v2404_v33 }
 0xfca   :  { %6464 = vtanh.f32 %v2447_v6  ;;  %v2448_v5 = vmul.f32 0.7978846, %v2440_v40  ;;  %v2427_v51 = vmul.f32 0.044715, %v2411_v0  ;;  %v2412_v7 = vmul.f32 %v2396_v34, %v2396_v34 }
 0xfcb   :  { %6466 = vtanh.f32 %v2450_v2  ;;  %v2437_v35 = vmul.f32 %v2429_v8, %v7477_v44  ;;  %v2430_v36 = vmul.f32 0.044715, %v2414_v50  ;;  %v2421_v16 = vmul.f32 0.5, %v7477_v44 }
 0xfcc   :  { %6468 = vtanh.f32 %v2448_v5  ;;  %v2435_v63 = vmul.f32 %v2427_v51, %v7481_v52  ;;  %v2428_v39 = vmul.f32 0.044715, %v2412_v7  ;;  %v2422_v15 = vmul.f32 0.5, %v2404_v33 }
 0xfcd   :  { %v2445_v46 = vadd.f32 %v2437_v35, %v7477_v44  ;;  %v2438_v56 = vmul.f32 %v2430_v36, %v2404_v33  ;;  %v2419_v26 = vmul.f32 0.5, %v7481_v52  ;;  %v2420_v40 = vmul.f32 0.5, %v2396_v34  ;;  %v5382_v35 = vld [vmem:[%s8304_s14] ss:$0 sm:$0xff] }
 0xfce   :  { %v2443_v59 = vadd.f32 %v2435_v63, %v7481_v52  ;;  %v2436_v60 = vmul.f32 %v2428_v39, %v2396_v34 }
 0xfcf   :  { %v2453_v11 = vmul.f32 0.7978846, %v2445_v46  ;;  %v2446_v14 = vadd.f32 %v2438_v56, %v2404_v33 }
 0xfd0   :  { %v2451_v17 = vmul.f32 0.7978846, %v2443_v59  ;;  %v2444_v12 = vadd.f32 %v2436_v60, %v2396_v34 }
 0xfd1   :  { %6470 = vtanh.f32 %v2453_v11  ;;  %v2454_v23 = vmul.f32 0.7978846, %v2446_v14 }
 0xfd2   :  { %6472 = vtanh.f32 %v2451_v17  ;;  %v2452_v4 = vmul.f32 0.7978846, %v2444_v12 }
 0xfd3   :  { %v6463_v3 = vpop.eup %6462  ;;  %6474 = vtanh.f32 %v2454_v23 }
 0xfd4   :  { %v6465_v57 = vpop.eup %6464  ;;  %v2465_v18 = vadd.f32 1.0, %v6463_v3  ;;  %6476 = vtanh.f32 %v2452_v4 }
 0xfd5   :  { %v6467_v24 = vpop.eup %6466  ;;  %v2463_v21 = vadd.f32 1.0, %v6465_v57 }
 0xfd6   :  { %v6469_v20 = vpop.eup %6468  ;;  %v2466_v30 = vadd.f32 1.0, %v6467_v24  ;;  %v2473_v41 = vmul.f32 %v2465_v18, %v2417_v28 }
 0xfd7   :  { %v2464_v38 = vadd.f32 1.0, %v6469_v20  ;;  %v2471_v43 = vmul.f32 %v2463_v21, %v2415_v27 }
 0xfd8   :  { %v2474_v42 = vmul.f32 %v2466_v30, %v2418_v29 }
 0xfd9   :  { %v2472_v45 = vmul.f32 %v2464_v38, %v2416_v32 }
 0xfda   :  { %v2480_v47 = vpack.c.bf16 %v2474_v42, %v2473_v41 }
 0xfdb   :  { %v6471_v48 = vpop.eup %6470  ;;  %v2479_v53 = vpack.c.bf16 %v2472_v45, %v2471_v43 }
 0xfdc   :  { %v6473_v31 = vpop.eup %6472  ;;  %v2469_v54 = vadd.f32 1.0, %v6471_v48 }
 0xfdd   :  { %v6475_v55 = vpop.eup %6474  ;;  %5954 = vmatprep.mubr.bf16.mxu0 %v2479_v53  ;;  %v2467_v22 = vadd.f32 1.0, %v6473_v31 }
 0xfde   :  { %v6477_v62 = vpop.eup %6476  ;;  %5955 = vmatmul.mubr.bf16.vlgmr.msra.gmra.mrb[56].mxu0 %v2480_v47  ;;  %v2470_v6 = vadd.f32 1.0, %v6475_v55  ;;  %v2477_v2 = vmul.f32 %v2469_v54, %v2421_v16 }
 0xfdf   :  { %v2468_v0 = vadd.f32 1.0, %v6477_v62  ;;  %v2475_v50 = vmul.f32 %v2467_v22, %v2419_v26 }
 0xfe0   :  { %v2478_v8 = vmul.f32 %v2470_v6, %v2422_v15 }
 0xfe1   :  { %v2476_v5 = vmul.f32 %v2468_v0, %v2420_v40 }
 0xfe2   :  { %v2482_v51 = vpack.c.bf16 %v2478_v8, %v2477_v2 }
 0xfe3   :  { %v2481_v7 = vpack.c.bf16 %v2476_v5, %v2475_v50 }
 0xfe5   :  { %5958 = vmatprep.mubr.bf16.mxu0 %v2481_v7 }
 0xfe6   :  { %5959 = vmatmul.mubr.bf16.gmra.mrb[60].mxu0 %v2482_v51 }
0x10b1   :  { %v5956_v36 = vpop.f32.mrb[56].mxu0 }
0x10b2   :  { %v2588_v44 = vpop.f32.mrb[57].mxu0  ;;  %v2597_v33 = vadd.f32 %v5956_v36, %v5382_v35 }
0x10b3   :  { %v2589_v63 = vadd.f32 %v5382_v35, %v2588_v44  ;;  %v5957_v39 = vpop.f32.mrb[58].mxu0 }
0x10b4   :  { %v2591_v52 = vpop.f32.mrb[59].mxu0  ;;  %v2600_v46 = vadd.f32 %v5957_v39, %v5382_v35  ;;  %v2621_v59 = vadd.f32 %v2597_v33, %v7407_v1 }
0x10b5   :  { %v2619_v34 = vadd.f32 %v2589_v63, %v7397_v49  ;;  %v2592_v56 = vadd.f32 %v5382_v35, %v2591_v52 }
0x10b6   :  { %v2622_v14 = vadd.f32 %v2600_v46, %v7409_v58  ;;  %v2633_v49 = vsel %vm188_vm2, %v2621_v59, 0.0 }
0x10b7   :  { %v2620_v60 = vadd.f32 %v2592_v56, %v7399_v25  ;;  %v2627_v11 = vsel %vm188_vm2, %v2619_v34, 0.0 }
0x10b8   :  { %2628 = vadd.xlane.f32.xlu1 %v2627_v11  ;;  %v2636_v21 = vsel %vm188_vm2, %v2622_v14, 0.0  ;;  %v6305_v11 = vld [vmem:[%s8295_s5 + $0x18] sm:$0xff]  }
0x10b9   :  { %v5960_v17 = vpop.f32.mrb[60].mxu0  ;;  %v2630_v12 = vsel %vm188_vm2, %v2620_v60, 0.0 }
0x10ba   :  { %2631 = vadd.xlane.f32.xlu0 %v2630_v12  ;;  %v2604_v23 = vpop.f32.mrb[61].mxu0  ;;  %v2613_v4 = vadd.f32 %v5960_v17, %v5382_v35 }
0x10bb   :  { %v2605_v3 = vadd.f32 %v5382_v35, %v2604_v23  ;;  %v5961_v57 = vpop.f32.mrb[62].mxu0 }
0x10bc   :  { %2634 = vadd.xlane.f32.xlu1 %v2633_v49  ;;  %v2607_v18 = vpop.f32.mrb[63].mxu0  ;;  %v2616_v25 = vadd.f32 %v5961_v57, %v5382_v35  ;;  %v2625_v58 = vadd.f32 %v2613_v4, %v7422_v61 }
0x10bd   :  { %v2623_v1 = vadd.f32 %v2605_v3, %v7416_v10  ;;  %v2608_v24 = vadd.f32 %v5382_v35, %v2607_v18 }
0x10be   :  { %2637 = vadd.xlane.f32.xlu0 %v2636_v21  ;;  %v2626_v29 = vadd.f32 %v2616_v25, %v7424_v37  ;;  %v2645_v27 = vsel %vm188_vm2, %v2625_v58, 0.0 }
0x10bf   :  { %v2624_v20 = vadd.f32 %v2608_v24, %v7418_v9  ;;  %v2639_v28 = vsel %vm188_vm2, %v2623_v1, 0.0 }
0x10c0   :  { %2640 = vadd.xlane.f32.xlu1 %v2639_v28  ;;  %v2648_v10 = vsel %vm188_vm2, %v2626_v29, 0.0 }
0x10c1   :  { %v2642_v30 = vsel %vm188_vm2, %v2624_v20, 0.0 }
0x10c2   :  { %2643 = vadd.xlane.f32.xlu0 %v2642_v30 }
0x10c4   :  { %2646 = vadd.xlane.f32.xlu1 %v2645_v27 }
0x10c6   :  { %2649 = vadd.xlane.f32.xlu0 %v2648_v10 }
0x1145   :  { %v2629_v32 = vpop.xlane.xlu1 %2628 }
0x1146   :  { %v2651_v38 = vmul.f32 0.03125, %v2629_v32 }
0x1147   :  { %v2632_v41 = vpop.xlane.xlu0 %2631 }
0x1148   :  { %v7518_v61 = vsub.f32 %v2619_v34, %v2651_v38  ;;  %v2652_v9 = vmul.f32 0.03125, %v2632_v41  ;;  %v5391_v41 = vld [vmem:[%s8305_s15] ss:$0 sm:$0xff] }
0x1149   :  { %v2635_v42 = vpop.xlane.xlu1 %2634 }
0x114a   :  { %v7520_v43 = vsub.f32 %v2620_v60, %v2652_v9  ;;  %v2653_v45 = vmul.f32 0.03125, %v2635_v42  ;;  %v2667_v37 = vmul.f32 %v7518_v61, %v7518_v61  ;;  %v6304_v60 = vld [vmem:[%s8295_s5 + $0x10] sm:$0xff]  }
0x114b   :  { %v2638_v47 = vpop.xlane.xlu0 %2637  ;;  %5962 = vmatprep.subr.bf16.mxu1 %v6304_v60 }
0x114c   :  { %v7524_v48 = vsub.f32 %v2621_v59, %v2653_v45  ;;  %v2654_v53 = vmul.f32 0.03125, %v2638_v47  ;;  %v2675_v31 = vsel %vm188_vm2, %v2667_v37, 0.0  ;;  %v2668_v54 = vmul.f32 %v7520_v43, %v7520_v43  ;;  %5963 = vmatpush3.bf16.msra.mxu1 %v6304_v60 }
0x114d   :  { %2676 = vadd.xlane.f32.xlu1 %v2675_v31  ;;  %v2641_v55 = vpop.xlane.xlu1 %2640  ;;  %5964 = vmatprep.subr.bf16.mxu1 %v6305_v11 }
0x114e   :  { %v7529_v22 = vsub.f32 %v2622_v14, %v2654_v53  ;;  %v2655_v62 = vmul.f32 0.03125, %v2641_v55  ;;  %v2678_v16 = vsel %vm188_vm2, %v2668_v54, 0.0  ;;  %v2669_v15 = vmul.f32 %v7524_v48, %v7524_v48  ;;  %v5392_v55 = vld [vmem:[%s8306_s16] ss:$0 sm:$0xff] }
0x114f   :  { %2679 = vadd.xlane.f32.xlu0 %v2678_v16  ;;  %v2644_v6 = vpop.xlane.xlu0 %2643 }
0x1150   :  { %v7534_v26 = vsub.f32 %v2623_v1, %v2655_v62  ;;  %v2656_v40 = vmul.f32 0.03125, %v2644_v6  ;;  %v2681_v0 = vsel %vm188_vm2, %v2669_v15, 0.0  ;;  %v2670_v2 = vmul.f32 %v7529_v22, %v7529_v22  ;;  %5965 = vmatpush3.bf16.msra.mxu1 %v6305_v11 }
0x1151   :  { %2682 = vadd.xlane.f32.xlu1 %v2681_v0  ;;  %v2647_v8 = vpop.xlane.xlu1 %2646 }
0x1152   :  { %v7539_v50 = vsub.f32 %v2624_v20, %v2656_v40  ;;  %v2657_v5 = vmul.f32 0.03125, %v2647_v8  ;;  %v2684_v51 = vsel %vm188_vm2, %v2670_v2, 0.0  ;;  %v2671_v7 = vmul.f32 %v7534_v26, %v7534_v26 }
0x1153   :  { %2685 = vadd.xlane.f32.xlu0 %v2684_v51  ;;  %v2650_v35 = vpop.xlane.xlu0 %2649 }
0x1154   :  { %v7544_v36 = vsub.f32 %v2625_v58, %v2657_v5  ;;  %v2658_v44 = vmul.f32 0.03125, %v2650_v35  ;;  %v2687_v33 = vsel %vm188_vm2, %v2671_v7, 0.0  ;;  %v2672_v63 = vmul.f32 %v7539_v50, %v7539_v50 }
0x1155   :  { %2688 = vadd.xlane.f32.xlu1 %v2687_v33 }
0x1156   :  { %v7549_v39 = vsub.f32 %v2626_v29, %v2658_v44  ;;  %v2690_v52 = vsel %vm188_vm2, %v2672_v63, 0.0  ;;  %v2673_v34 = vmul.f32 %v7544_v36, %v7544_v36 }
0x1157   :  { %2691 = vadd.xlane.f32.xlu0 %v2690_v52 }
0x1158   :  { %v2693_v46 = vsel %vm188_vm2, %v2673_v34, 0.0  ;;  %v2674_v56 = vmul.f32 %v7549_v39, %v7549_v39 }
0x1159   :  { %2694 = vadd.xlane.f32.xlu1 %v2693_v46 }
0x115a   :  { %v2696_v59 = vsel %vm188_vm2, %v2674_v56, 0.0 }
0x115b   :  { %2697 = vadd.xlane.f32.xlu0 %v2696_v59 }
0x11da   :  { %v2677_v14 = vpop.xlane.xlu1 %2676 }
0x11db   :  { %v2699_v17 = vmul.f32 0.03125, %v2677_v14 }
0x11dc   :  { %v2680_v12 = vpop.xlane.xlu0 %2679 }
0x11dd   :  { %v2707_v23 = vadd.f32 1e-05, %v2699_v17  ;;  %v2700_v4 = vmul.f32 0.03125, %v2680_v12 }
0x11de   :  { %v2683_v3 = vpop.xlane.xlu1 %2682 }
0x11df   :  { %6478 = vrsqrt.f32 %v2707_v23  ;;  %v2708_v57 = vadd.f32 1e-05, %v2700_v4  ;;  %v2701_v49 = vmul.f32 0.03125, %v2683_v3 }
0x11e0   :  { %v2686_v18 = vpop.xlane.xlu0 %2685 }
0x11e1   :  { %6480 = vrsqrt.f32 %v2708_v57  ;;  %v2709_v1 = vadd.f32 1e-05, %v2701_v49  ;;  %v2702_v25 = vmul.f32 0.03125, %v2686_v18 }
0x11e2   :  { %v2689_v24 = vpop.xlane.xlu1 %2688 }
0x11e3   :  { %6482 = vrsqrt.f32 %v2709_v1  ;;  %v2710_v21 = vadd.f32 1e-05, %v2702_v25  ;;  %v2703_v58 = vmul.f32 0.03125, %v2689_v24 }
0x11e4   :  { %v2692_v20 = vpop.xlane.xlu0 %2691 }
0x11e5   :  { %6484 = vrsqrt.f32 %v2710_v21  ;;  %v2711_v28 = vadd.f32 1e-05, %v2703_v58  ;;  %v2704_v29 = vmul.f32 0.03125, %v2692_v20 }
0x11e6   :  { %v2695_v30 = vpop.xlane.xlu1 %2694 }
0x11e7   :  { %6486 = vrsqrt.f32 %v2711_v28  ;;  %v2712_v27 = vadd.f32 1e-05, %v2704_v29  ;;  %v2705_v10 = vmul.f32 0.03125, %v2695_v30 }
0x11e8   :  { %v2698_v32 = vpop.xlane.xlu0 %2697 }
0x11e9   :  { %v6479_v38 = vpop.eup %6478  ;;  %6488 = vrsqrt.f32 %v2712_v27  ;;  %v2713_v9 = vadd.f32 1e-05, %v2705_v10  ;;  %v2706_v42 = vmul.f32 0.03125, %v2698_v32 }
0x11ea   :  { %v2723_v45 = vmul.f32 %v6479_v38, %v7518_v61 }
0x11eb   :  { %v6481_v37 = vpop.eup %6480  ;;  %6490 = vrsqrt.f32 %v2713_v9  ;;  %v2714_v47 = vadd.f32 1e-05, %v2706_v42 }
0x11ec   :  { %v2724_v53 = vmul.f32 %v6481_v37, %v7520_v43  ;;  %v2738_v31 = vmul.f32 %v5391_v41, %v2723_v45 }
0x11ed   :  { %v6483_v54 = vpop.eup %6482  ;;  %6492 = vrsqrt.f32 %v2714_v47 }
0x11ee   :  { %v2725_v62 = vmul.f32 %v6483_v54, %v7524_v48  ;;  %v2739_v16 = vmul.f32 %v5391_v41, %v2724_v53  ;;  %v7574_v61 = vadd.f32 %v5392_v55, %v2738_v31 }
0x11ef   :  { %v6485_v15 = vpop.eup %6484 }
0x11f0   :  { %v2740_v6 = vmul.f32 %v5391_v41, %v2725_v62  ;;  %v2726_v40 = vmul.f32 %v6485_v15, %v7529_v22  ;;  %v7576_v0 = vadd.f32 %v5392_v55, %v2739_v16 }
0x11f1   :  { %v6487_v2 = vpop.eup %6486 }
0x11f2   :  { %v2741_v43 = vmul.f32 %v5391_v41, %v2726_v40  ;;  %v2761_v8 = vpack.c.bf16 %v7576_v0, %v7574_v61  ;;  %v2727_v5 = vmul.f32 %v6487_v2, %v7534_v26  ;;  %v7581_v7 = vadd.f32 %v5392_v55, %v2740_v6 }
0x11f3   :  { %v6489_v51 = vpop.eup %6488 }
0x11f4   :  { %v7583_v48 = vadd.f32 %v5392_v55, %v2741_v43  ;;  %5966 = vmatprep.mubr.msk.bf16.mxu1 %vm188_vm2, %v2761_v8  ;;  %v2728_v22 = vmul.f32 %v6489_v51, %v7539_v50  ;;  %v2742_v35 = vmul.f32 %v5391_v41, %v2727_v5 }
0x11f5   :  { %v6491_v44 = vpop.eup %6490 }
0x11f6   :  { %v2762_v33 = vpack.c.bf16 %v7583_v48, %v7581_v7  ;;  %v2743_v63 = vmul.f32 %v5391_v41, %v2728_v22  ;;  %v2729_v52 = vmul.f32 %v6491_v44, %v7544_v36  ;;  %v7591_v26 = vadd.f32 %v5392_v55, %v2742_v35 }
0x11f7   :  { %v6493_v34 = vpop.eup %6492 }
0x11f8   :  { %5967 = vmatmul.mubr.msk.bf16.vlgmr.msra.gmra.mrb[36].mxu1 %vm188_vm2, %v2762_v33  ;;  %v7593_v46 = vadd.f32 %v5392_v55, %v2743_v63  ;;  %v2730_v56 = vmul.f32 %v6493_v34, %v7549_v39  ;;  %v2744_v59 = vmul.f32 %v5391_v41, %v2729_v52  ;;  %v5398_v39 = vld [vmem:[%s8296_s6 + $0x1] ss:$0 sm:$0xff]  ;;  %s6703_s6 = smov [#allocation3]  }
0x11fa   :  { %v2763_v50 = vpack.c.bf16 %v7593_v46, %v7591_v26  ;;  %v2745_v60 = vmul.f32 %v5391_v41, %v2730_v56  ;;  %v7599_v11 = vadd.f32 %v5392_v55, %v2744_v59 }
0x11fc   :  { %5970 = vmatprep.mubr.msk.bf16.mxu1 %vm188_vm2, %v2763_v50  ;;  %v7601_v14 = vadd.f32 %v5392_v55, %v2745_v60 }
0x11fe   :  { %v2764_v36 = vpack.c.bf16 %v7601_v14, %v7599_v11 }
0x1200   :  { %5971 = vmatmul.mubr.msk.bf16.gmra.mrb[40].mxu1 %vm188_vm2, %v2764_v36 }
0x12cb   :  { %v5968_v17 = vpop.f32.mrb[36].mxu1 }
0x12cc   :  { %v2836_v12 = vpop.f32.mrb[37].mxu1  ;;  %v2845_v4 = vadd.f32 %v5968_v17, %v5398_v39 }
0x12cd   :  { %v5969_v23 = vpop.f32.mrb[38].mxu1  ;;  %v2837_v49 = vadd.f32 %v5398_v39, %v2836_v12 }
0x12ce   :  { %v2848_v3 = vadd.f32 %v5969_v23, %v5398_v39  ;;  %v2839_v57 = vpop.f32.mrb[39].mxu1 }
0x12cf   :  { %v2840_v18 = vadd.f32 %v5398_v39, %v2839_v57 }
0x12d0   :  { %v7609_v1 = vpack.c.bf16 %v2848_v3, %v2845_v4 }
0x12d1   :  { %v7611_v25 = vpack.c.bf16 %v2840_v18, %v2837_v49 }
0x12d2   :  { %2880 = vrot.lane.b32.xlu0 %v7609_v1, %s6691_s20 }
0x12d3   :  { %2878 = vrot.lane.b32.xlu1 %v7611_v25, %s6691_s20  ;;  %v5972_v24 = vpop.f32.mrb[40].mxu1  ;;  %5978 = vmatprep.mubr.msk.bf16.mxu1 %vm327_vm5, %v7611_v25 }
0x12d4   :  { %v2852_v21 = vpop.f32.mrb[41].mxu1  ;;  %v2861_v20 = vadd.f32 %v5972_v24, %v5398_v39 }
0x12d5   :  { %v5973_v58 = vpop.f32.mrb[42].mxu1  ;;  %v2853_v30 = vadd.f32 %v5398_v39, %v2852_v21 }
0x12d6   :  { %v2864_v28 = vadd.f32 %v5973_v58, %v5398_v39  ;;  %v2855_v29 = vpop.f32.mrb[43].mxu1 }
0x12d7   :  { %v2856_v27 = vadd.f32 %v5398_v39, %v2855_v29 }
0x12d8   :  { %v7619_v10 = vpack.c.bf16 %v2864_v28, %v2861_v20 }
0x12d9   :  { %v7621_v32 = vpack.c.bf16 %v2856_v27, %v2853_v30 }
0x12db   :  { %2945 = vrot.lane.b32.xlu1 %v7621_v32, %s6691_s20  ;;  %5986 = vmatprep.mubr.msk.bf16.mxu0 %vm327_vm5, %v7621_v32 }
0x12df   :  { %2947 = vrot.lane.b32.xlu1 %v7619_v10, %s6691_s20 }
0x1344   :  { %v2881_v9 = vpop.permute.xlu0 %2880 }
0x1345   :  { %v2879_v38 = vpop.permute.xlu1 %2878  ;;  %v2892_v45 = vsel %vm327_vm5, %v2881_v9, 0 }
0x1346   :  { %6254 = vmatprep.subr.msk.bf16.mxu1 %vm327_vm5, %v2879_v38  ;;  %v2889_v41 = vsel %vm327_vm5, %v2879_v38, 0 }
0x1347   :  { %5975 = vmatpush3.bf16.xpose.msra.mxu1 %v2889_v41 }
0x1348   :  { %6255 = vmatprep.subr.msk.bf16.mxu1 %vm327_vm5, %v2881_v9 }
0x134d   :  { %v2946_v42 = vpop.permute.xlu1 %2945 }
0x134e   :  { %6256 = vmatprep.subr.msk.bf16.mxu0 %vm327_vm5, %v2946_v42  ;;  %v2956_v37 = vsel %vm327_vm5, %v2946_v42, 0 }
0x134f   :  { %5977 = vmatpush3.bf16.xpose.msra.mxu1 %v2892_v45  ;;  %5983 = vmatpush3.bf16.xpose.msra.mxu0 %v2956_v37 }
0x1351   :  { %v2948_v47 = vpop.permute.xlu1 %2947 }
0x1352   :  { %6257 = vmatprep.subr.msk.bf16.mxu0 %vm327_vm5, %v2948_v47  ;;  %v2959_v53 = vsel %vm327_vm5, %v2948_v47, 0 }
0x1356   :  { %5979 = vmatmul.mubr.msk.bf16.vlgmr.msra.gmra.mrb[44].mxu1 %vm327_vm5, %v7609_v1 }
0x1357   :  { %5985 = vmatpush3.bf16.xpose.msra.mxu0 %v2959_v53 }
0x135e   :  { %5987 = vmatmul.mubr.msk.bf16.vlgmr.msra.gmra.mrb[64].mxu0 %vm327_vm5, %v7619_v10 }
0x1429   :  { %v5980_v31 = vpop.f32.mrb[44].mxu1 }
0x142a   :  { %v2928_v54 = vpop.f32.mrb[45].mxu1  ;;  %v3012_v55 = vmul.f32 0.35355338, %v5980_v31 }
0x142b   :  { %v3010_v62 = vmul.f32 0.35355338, %v2928_v54  ;;  %v5981_v16 = vpop.f32.mrb[46].mxu1 }
0x142c   :  { %v2931_v15 = vpop.f32.mrb[47].mxu1  ;;  %v3013_v2 = vmul.f32 0.35355338, %v5981_v16  ;;  %v3020_v8 = vsel %vm208_vm6, %v3012_v55, -1e+30 }
0x142d   :  { %v3018_v6 = vsel %vm208_vm6, %v3010_v62, -1e+30  ;;  %v3011_v40 = vmul.f32 0.35355338, %v2931_v15  ;;  %v3032_v33 = vsel %vm188_vm2, %v3020_v8, -inf }
0x142e   :  { %v3026_v43 = vsel %vm188_vm2, %v3018_v6, -inf  ;;  %v3021_v35 = vsel %vm208_vm6, %v3013_v2, -1e+30 }
0x142f   :  { %v3019_v5 = vsel %vm208_vm6, %v3011_v40, -1e+30  ;;  %3027 = vmax.xlane.f32.xlu0 %v3026_v43  ;;  %v3035_v60 = vsel %vm188_vm2, %v3021_v35, -inf }
0x1430   :  { %v3029_v51 = vsel %vm188_vm2, %v3019_v5, -inf }
0x1431   :  { %3030 = vmax.xlane.f32.xlu1 %v3029_v51  ;;  %v5988_v22 = vpop.f32.mrb[64].mxu0 }
0x1432   :  { %v2995_v44 = vpop.f32.mrb[65].mxu0  ;;  %v3016_v63 = vmul.f32 0.35355338, %v5988_v22 }
0x1433   :  { %v3014_v52 = vmul.f32 0.35355338, %v2995_v44  ;;  %3033 = vmax.xlane.f32.xlu0 %v3032_v33  ;;  %v5989_v34 = vpop.f32.mrb[66].mxu0 }
0x1434   :  { %v2998_v56 = vpop.f32.mrb[67].mxu0  ;;  %v3024_v17 = vsel %vm208_vm6, %v3016_v63, -1e+30  ;;  %v3017_v39 = vmul.f32 0.35355338, %v5989_v34 }
0x1435   :  { %v3022_v59 = vsel %vm208_vm6, %v3014_v52, -1e+30  ;;  %v3015_v50 = vmul.f32 0.35355338, %v2998_v56  ;;  %v3044_v23 = vsel %vm188_vm2, %v3024_v17, -inf }
0x1436   :  { %v3038_v36 = vsel %vm188_vm2, %v3022_v59, -inf  ;;  %v3025_v3 = vsel %vm208_vm6, %v3017_v39, -1e+30 }
0x1437   :  { %v3023_v12 = vsel %vm208_vm6, %v3015_v50, -1e+30  ;;  %3036 = vmax.xlane.f32.xlu0 %v3035_v60  ;;  %3039 = vmax.xlane.f32.xlu1 %v3038_v36  ;;  %v3047_v57 = vsel %vm188_vm2, %v3025_v3, -inf }
0x1438   :  { %v3041_v4 = vsel %vm188_vm2, %v3023_v12, -inf }
0x143b   :  { %3045 = vmax.xlane.f32.xlu1 %v3044_v23  ;;  %3042 = vmax.xlane.f32.xlu0 %v3041_v4 }
0x143f   :  { %3048 = vmax.xlane.f32.xlu0 %v3047_v57 }
0x14bc   :  { %v3028_v49 = vpop.xlane.xlu0 %3027 }
0x14bd   :  { %v3050_v18 = vsub.f32 %v3018_v6, %v3028_v49 }
0x14be   :  { %v3031_v24 = vpop.xlane.xlu1 %3030 }
0x14bf   :  { %v3058_v21 = vmul.f32 1.442695, %v3050_v18  ;;  %v3051_v58 = vsub.f32 %v3019_v5, %v3031_v24 }
0x14c0   :  { %v3034_v20 = vpop.xlane.xlu0 %3033 }
0x14c1   :  { %6494 = vpow2.f32 %v3058_v21  ;;  %v3060_v28 = vmul.f32 1.442695, %v3051_v58  ;;  %v3052_v29 = vsub.f32 %v3020_v8, %v3034_v20 }
0x14c3   :  { %6496 = vpow2.f32 %v3060_v28  ;;  %v3062_v30 = vmul.f32 1.442695, %v3052_v29 }
0x14c4   :  { %v3037_v27 = vpop.xlane.xlu0 %3036  ;;  %v3040_v55 = vpop.xlane.xlu1 %3039 }
0x14c5   :  { %6498 = vpow2.f32 %v3062_v30  ;;  %v3053_v38 = vsub.f32 %v3021_v35, %v3037_v27  ;;  %v3054_v2 = vsub.f32 %v3022_v59, %v3040_v55 }
0x14c7   :  { %v3064_v41 = vmul.f32 1.442695, %v3053_v38  ;;  %v3066_v51 = vmul.f32 1.442695, %v3054_v2 }
0x14c8   :  { %v3043_v62 = vpop.xlane.xlu0 %3042  ;;  %v3046_v16 = vpop.xlane.xlu1 %3045 }
0x14c9   :  { %6500 = vpow2.f32 %v3064_v41  ;;  %v3056_v6 = vsub.f32 %v3024_v17, %v3046_v16  ;;  %v3055_v8 = vsub.f32 %v3023_v12, %v3043_v62 }
0x14cb   :  { %v7665_v9 = vpop.eup %6494  ;;  %v3070_v43 = vmul.f32 1.442695, %v3056_v6  ;;  %v3068_v22 = vmul.f32 1.442695, %v3055_v8 }
0x14cc   :  { %v3074_v42 = vsel %vm188_vm2, %v7665_v9, 0.0  ;;  %v3049_v15 = vpop.xlane.xlu0 %3048 }
0x14cd   :  { %v7669_v45 = vpop.eup %6496  ;;  %3075 = vadd.xlane.f32.xlu1 %v3074_v42  ;;  %v3057_v40 = vsub.f32 %v3025_v3, %v3049_v15  ;;  %6502 = vpow2.f32 %v3070_v43 }
0x14ce   :  { %v3077_v37 = vsel %vm188_vm2, %v7669_v45, 0.0 }
0x14cf   :  { %v7673_v47 = vpop.eup %6498  ;;  %3078 = vadd.xlane.f32.xlu0 %v3077_v37  ;;  %v3072_v5 = vmul.f32 1.442695, %v3057_v40 }
0x14d0   :  { %v3080_v53 = vsel %vm188_vm2, %v7673_v47, 0.0 }
0x14d1   :  { %3081 = vadd.xlane.f32.xlu1 %v3080_v53  ;;  %6504 = vpow2.f32 %v3072_v5 }
0x14d2   :  { %6506 = vpow2.f32 %v3066_v51 }
0x14d3   :  { %v7677_v31 = vpop.eup %6500  ;;  %6508 = vpow2.f32 %v3068_v22 }
0x14d4   :  { %v3083_v54 = vsel %vm188_vm2, %v7677_v31, 0.0 }
0x14d5   :  { %3084 = vadd.xlane.f32.xlu0 %v3083_v54 }
0x14d7   :  { %v7687_v35 = vpop.eup %6502 }
0x14d8   :  { %v3092_v52 = vsel %vm188_vm2, %v7687_v35, 0.0 }
0x14db   :  { %v7689_v44 = vpop.eup %6504 }
0x14dc   :  { %v7691_v33 = vpop.eup %6506  ;;  %v3095_v63 = vsel %vm188_vm2, %v7689_v44, 0.0 }
0x14dd   :  { %v7697_v34 = vpop.eup %6508  ;;  %v3086_v59 = vsel %vm188_vm2, %v7691_v33, 0.0 }
0x14de   :  { %v3089_v56 = vsel %vm188_vm2, %v7697_v34, 0.0 }
0x14e2   :  { %3118 = vrot.lane.b32.xlu1 %v7611_v25, %s6692_s2 }
0x14e6   :  { %3179 = vrot.lane.b32.xlu1 %v7621_v32, %s6692_s2 }
0x14eb   :  { %3120 = vrot.lane.b32.xlu0 %v7609_v1, %s6692_s2 }
0x150a   :  { %3096 = vadd.xlane.f32.xlu0 %v3095_v63  ;;  %3093 = vadd.xlane.f32.xlu1 %v3092_v52 }
0x150e   :  { %3090 = vadd.xlane.f32.xlu0 %v3089_v56  ;;  %3087 = vadd.xlane.f32.xlu1 %v3086_v59 }
0x151f   :  { %3181 = vrot.lane.b32.xlu1 %v7619_v10, %s6692_s2 }
0x1523   :  { %3319 = vrot.lane.b32.xlu1 %v7619_v10, %s6693_s23 }
0x1524   :  { %3317 = vrot.lane.b32.xlu0 %v7621_v32, %s6693_s23 }
0x1527   :  { %3315 = vrot.lane.b32.xlu1 %v7619_v10, %s6694_s24 }
0x1528   :  { %3313 = vrot.lane.b32.xlu0 %v7621_v32, %s6694_s24 }
0x152b   :  { %3250 = vrot.lane.b32.xlu1 %v7609_v1, %s6693_s23 }
0x152c   :  { %3248 = vrot.lane.b32.xlu0 %v7611_v25, %s6693_s23 }
0x152f   :  { %3246 = vrot.lane.b32.xlu1 %v7609_v1, %s6694_s24 }
0x1530   :  { %3244 = vrot.lane.b32.xlu0 %v7611_v25, %s6694_s24  ;;  %s8326_s24 = smov 72  }
0x155a   :  { %v3076_v50 = vpop.xlane.xlu1 %3075 }
0x155b   :  { %6510 = vrcp.f32 %v3076_v50 }
0x155c   :  { %v3079_v60 = vpop.xlane.xlu0 %3078 }
0x155d   :  { %6512 = vrcp.f32 %v3079_v60 }
0x155e   :  { %v3082_v36 = vpop.xlane.xlu1 %3081 }
0x155f   :  { %6514 = vrcp.f32 %v3082_v36 }
0x1562   :  { %v3085_v17 = vpop.xlane.xlu0 %3084  ;;  %v3119_v39 = vpop.permute.xlu1 %3118 }
0x1563   :  { %6516 = vrcp.f32 %v3085_v17  ;;  %5990 = vmatprep.subr.bf16.mxu1 %v3119_v39 }
0x1564   :  { %5991 = vmatpush3.bf16.msra.mxu1 %v3119_v39 }
0x1565   :  { %v6511_v12 = vpop.eup %6510 }
0x1566   :  { %v3121_v23 = vpop.permute.xlu0 %3120  ;;  %v3180_v3 = vpop.permute.xlu1 %3179  ;;  %v3099_v57 = vmul.f32 %v6511_v12, %v7665_v9 }
0x1567   :  { %v6513_v4 = vpop.eup %6512  ;;  %5992 = vmatprep.subr.bf16.mxu1 %v3121_v23 }
0x1568   :  { %5993 = vmatpush3.bf16.msra.mxu1 %v3121_v23  ;;  %v3101_v49 = vmul.f32 %v6513_v4, %v7669_v45 }
0x1569   :  { %5998 = vmatprep.subr.bf16.mxu1 %v3180_v3  ;;  %v6515_v24 = vpop.eup %6514 }
0x156a   :  { %v3114_v18 = vpack.c.bf16 %v3101_v49, %v3099_v57  ;;  %v3103_v58 = vmul.f32 %v6515_v24, %v7673_v47 }
0x156c   :  { %5994 = vmatprep.mubr.msk.bf16.mxu1 %vm188_vm2, %v3114_v18 }
0x156d   :  { %v6517_v21 = vpop.eup %6516 }
0x156e   :  { %v3105_v20 = vmul.f32 %v6517_v21, %v7677_v31 }
0x1570   :  { %v3115_v28 = vpack.c.bf16 %v3105_v20, %v3103_v58 }
0x1572   :  { %5995 = vmatmul.mubr.msk.bf16.vlgmr.msra.gmra.mrb[48].mxu1 %vm188_vm2, %v3115_v28 }
0x1573   :  { %5999 = vmatpush3.bf16.msra.mxu1 %v3180_v3 }
0x1597   :  { %v3097_v29 = vpop.xlane.xlu0 %3096  ;;  %v3094_v30 = vpop.xlane.xlu1 %3093 }
0x1598   :  { %6518 = vrcp.f32 %v3097_v29 }
0x1599   :  { %6520 = vrcp.f32 %v3094_v30 }
0x159b   :  { %v3091_v27 = vpop.xlane.xlu0 %3090  ;;  %v3088_v38 = vpop.xlane.xlu1 %3087 }
0x159c   :  { %6522 = vrcp.f32 %v3091_v27 }
0x159d   :  { %6524 = vrcp.f32 %v3088_v38 }
0x159f   :  { %v3318_v41 = vpop.permute.xlu0 %3317  ;;  %v3182_v9 = vpop.permute.xlu1 %3181 }
0x15a0   :  { %6000 = vmatprep.subr.bf16.mxu1 %v3182_v9  ;;  %v3328_v51 = vsel %vm327_vm5, %v3318_v41, 0 }
0x15a1   :  { %6001 = vmatpush3.bf16.msra.mxu1 %v3182_v9 }
0x15a2   :  { %6260 = vmatprep.subr.msk.bf16.mxu1 %vm327_vm5, %v3318_v41  ;;  %v6519_v42 = vpop.eup %6518 }
0x15a3   :  { %v3314_v45 = vpop.permute.xlu0 %3313  ;;  %v3320_v37 = vpop.permute.xlu1 %3319  ;;  %v3113_v54 = vmul.f32 %v6519_v42, %v7689_v44 }
0x15a4   :  { %v6521_v47 = vpop.eup %6520 }
0x15a5   :  { %v3111_v55 = vmul.f32 %v6521_v47, %v7687_v35  ;;  %v3331_v35 = vsel %vm327_vm5, %v3320_v37, 0 }
0x15a6   :  { %v6523_v53 = vpop.eup %6522 }
0x15a7   :  { %v6525_v31 = vpop.eup %6524  ;;  %v3249_v62 = vpop.permute.xlu0 %3248  ;;  %v3109_v15 = vmul.f32 %v6523_v53, %v7697_v34  ;;  %v3117_v5 = vpack.c.bf16 %v3113_v54, %v3111_v55 }
0x15a8   :  { %v3316_v16 = vpop.permute.xlu1 %3315  ;;  %6258 = vmatprep.subr.msk.bf16.mxu0 %vm327_vm5, %v3249_v62  ;;  %v3259_v6 = vsel %vm327_vm5, %v3249_v62, 0  ;;  %v3107_v40 = vmul.f32 %v6525_v31, %v7691_v33 }
0x15a9   :  { %6007 = vmatpush3.bf16.xpose.msra.mxu0 %v3259_v6 }
0x15aa   :  { %v3116_v2 = vpack.c.bf16 %v3109_v15, %v3107_v40 }
0x15ab   :  { %v3245_v43 = vpop.permute.xlu0 %3244 }
0x15ac   :  { %v3251_v8 = vpop.permute.xlu1 %3250  ;;  %6002 = vmatprep.mubr.msk.bf16.mxu1 %vm188_vm2, %v3116_v2  ;;  %6010 = vmatprep.mubr.msk.bf16.mxu0 %vm327_vm5, %v3245_v43 }
0x15ad   :  { %6259 = vmatprep.subr.msk.bf16.mxu0 %vm327_vm5, %v3251_v8  ;;  %6003 = vmatmul.mubr.msk.bf16.vlgmr.msra.gmra.mrb[52].mxu1 %vm188_vm2, %v3117_v5  ;;  %v3262_v22 = vsel %vm327_vm5, %v3251_v8, 0 }
0x15ae   :  { %6015 = vmatpush3.bf16.xpose.msra.mxu1 %v3328_v51  ;;  %6018 = vmatprep.mubr.msk.bf16.mxu1 %vm327_vm5, %v3314_v45 }
0x15af   :  { %6261 = vmatprep.subr.msk.bf16.mxu1 %vm327_vm5, %v3320_v37 }
0x15b0   :  { %v3247_v44 = vpop.permute.xlu1 %3246 }
0x15b1   :  { %6009 = vmatpush3.bf16.xpose.msra.mxu0 %v3262_v22 }
0x15b6   :  { %6017 = vmatpush3.bf16.xpose.msra.mxu1 %v3331_v35 }
0x15b8   :  { %6011 = vmatmul.mubr.msk.bf16.vlgmr.msra.gmra.mrb[68].mxu0 %vm327_vm5, %v3247_v44 }
0x15bd   :  { %6019 = vmatmul.mubr.msk.bf16.vlgmr.msra.gmra.mrb[56].mxu1 %vm327_vm5, %v3316_v16 }
0x1645   :  { %v7745_v33 = vpop.f32.mrb[48].mxu1 }
0x1646   :  { %v7747_v63 = vpop.f32.mrb[49].mxu1 }
0x1647   :  { %v7749_v52 = vpop.f32.mrb[50].mxu1 }
0x1648   :  { %v3241_v34 = vpack.c.bf16 %v7749_v52, %v7745_v33  ;;  %v7753_v56 = vpop.f32.mrb[51].mxu1 }
0x1649   :  { %v3240_v59 = vpack.c.bf16 %v7753_v56, %v7747_v63 }
0x1680   :  { %v7757_v50 = vpop.f32.mrb[52].mxu1 }
0x1681   :  { %v7759_v60 = vpop.f32.mrb[53].mxu1 }
0x1682   :  { %v7761_v36 = vpop.f32.mrb[54].mxu1 }
0x1683   :  { %v3243_v17 = vpack.c.bf16 %v7761_v36, %v7757_v50  ;;  %v7765_v39 = vpop.f32.mrb[55].mxu1 }
0x1684   :  { %v3242_v12 = vpack.c.bf16 %v7765_v39, %v7759_v60 }
0x168b   :  { %v7769_v23 = vpop.f32.mrb[68].mxu0 }
0x168c   :  { %v7771_v4 = vpop.f32.mrb[69].mxu0 }
0x168d   :  { %v7773_v3 = vpop.f32.mrb[70].mxu0 }
0x168e   :  { %v3301_v57 = vpop.f32.mrb[71].mxu0 }
0x1690   :  { %v6020_v49 = vpop.f32.mrb[56].mxu1 }
0x1691   :  { %v3367_v18 = vpop.f32.mrb[57].mxu1  ;;  %v3388_v24 = vmul.f32 0.35355338, %v6020_v49 }
0x1692   :  { %v3386_v21 = vmul.f32 0.35355338, %v3367_v18  ;;  %v6021_v58 = vpop.f32.mrb[58].mxu1 }
0x1693   :  { %v3370_v20 = vpop.f32.mrb[59].mxu1  ;;  %v3396_v27 = vsel %vm208_vm6, %v3388_v24, -1e+30  ;;  %v3389_v38 = vmul.f32 0.35355338, %v6021_v58 }
0x1694   :  { %v3394_v28 = vsel %vm208_vm6, %v3386_v21, -1e+30  ;;  %v3387_v29 = vmul.f32 0.35355338, %v3370_v20  ;;  %v3416_v42 = vsel %vm188_vm2, %v3396_v27, -inf }
0x1695   :  { %v3410_v30 = vsel %vm188_vm2, %v3394_v28, -inf  ;;  %v3397_v45 = vsel %vm208_vm6, %v3389_v38, -1e+30  ;;  %v3382_v21 = vmul.f32 0.35355338, %v7771_v4 }
0x1696   :  { %v3395_v41 = vsel %vm208_vm6, %v3387_v29, -1e+30  ;;  %3411 = vmax.xlane.f32.xlu0 %v3410_v30  ;;  %v3419_v37 = vsel %vm188_vm2, %v3397_v45, -inf  ;;  %v3383_v58 = vmul.f32 0.35355338, %v3301_v57 }
0x1697   :  { %v3413_v9 = vsel %vm188_vm2, %v3395_v41, -inf  ;;  %v3384_v20 = vmul.f32 0.35355338, %v7769_v23  ;;  %v3385_v23 = vmul.f32 0.35355338, %v7773_v3 }
0x1698   :  { %3414 = vmax.xlane.f32.xlu1 %v3413_v9  ;;  %v7819_v29 = vsel %vm208_vm6, %v3383_v58, -1e+30 }
0x1699   :  { %v3401_v30 = vsel %vm188_vm2, %v7819_v29, -inf  ;;  %v7827_v4 = vsel %vm208_vm6, %v3384_v20, -1e+30  ;;  %v7834_v38 = vsel %vm208_vm6, %v3385_v23, -1e+30 }
0x169a   :  { %3417 = vmax.xlane.f32.xlu0 %v3416_v42  ;;  %v3404_v57 = vsel %vm188_vm2, %v7827_v4, -inf }
0x169e   :  { %3420 = vmax.xlane.f32.xlu0 %v3419_v37 }
0x16a9   :  { %3551 = vrot.lane.b32.xlu1 %v7621_v32, %s6695_s25 }
0x1723   :  { %v3412_v47 = vpop.xlane.xlu0 %3411 }
0x1724   :  { %v3426_v31 = vsub.f32 %v3394_v28, %v3412_v47  ;;  %v7815_v28 = vsel %vm208_vm6, %v3382_v21, -1e+30 }
0x1725   :  { %v3415_v53 = vpop.xlane.xlu1 %3414 }
0x1726   :  { %v3438_v16 = vmul.f32 1.442695, %v3426_v31  ;;  %v3427_v15 = vsub.f32 %v3395_v41, %v3415_v53  ;;  %v3407_v41 = vsel %vm188_vm2, %v7834_v38, -inf }
0x1727   :  { %v3418_v54 = vpop.xlane.xlu0 %3417 }
0x1728   :  { %v3428_v55 = vsub.f32 %v3396_v27, %v3418_v54  ;;  %v3440_v43 = vmul.f32 1.442695, %v3427_v15  ;;  %v3398_v27 = vsel %vm188_vm2, %v7815_v28, -inf }
0x1729   :  { %v3552_v62 = vpop.permute.xlu1 %3551 }
0x172a   :  { %v3442_v6 = vmul.f32 1.442695, %v3428_v55  ;;  %6030 = vmatprep.subr.bf16.mxu1 %v3552_v62 }
0x172b   :  { %v3421_v40 = vpop.xlane.xlu0 %3420  ;;  %6031 = vmatpush3.bf16.msra.mxu1 %v3552_v62 }
0x172c   :  { %6526 = vpow2.f32 %v3442_v6  ;;  %v3429_v2 = vsub.f32 %v3397_v45, %v3421_v40 }
0x172d   :  { %6528 = vpow2.f32 %v3438_v16 }
0x172e   :  { %v3444_v8 = vmul.f32 1.442695, %v3429_v2 }
0x1730   :  { %6530 = vpow2.f32 %v3444_v8 }
0x1731   :  { %6532 = vpow2.f32 %v3440_v43 }
0x1736   :  { %v6527_v5 = vpop.eup %6526 }
0x1737   :  { %v3464_v51 = vsel %vm188_vm2, %v6527_v5, 0.0  ;;  %v6529_v22 = vpop.eup %6528 }
0x1738   :  { %3465 = vadd.xlane.f32.xlu1 %v3464_v51  ;;  %v3458_v49 = vsel %vm188_vm2, %v6529_v22, 0.0 }
0x173a   :  { %v6531_v35 = vpop.eup %6530 }
0x173b   :  { %v3467_v44 = vsel %vm188_vm2, %v6531_v35, 0.0  ;;  %v6533_v18 = vpop.eup %6532 }
0x173c   :  { %3468 = vadd.xlane.f32.xlu0 %v3467_v44  ;;  %3459 = vadd.xlane.f32.xlu1 %v3458_v49  ;;  %v3461_v24 = vsel %vm188_vm2, %v6533_v18, 0.0 }
0x1740   :  { %3462 = vadd.xlane.f32.xlu0 %v3461_v24 }
0x174d   :  { %3780 = vrot.lane.b32.xlu1 %v7611_v25, %s6696_s3 }
0x1751   :  { %3782 = vrot.lane.b32.xlu1 %v7609_v1, %s6696_s3 }
0x1755   :  { %3849 = vrot.lane.b32.xlu1 %v7621_v32, %s6696_s3 }
0x1756   :  { %3553 = vrot.lane.b32.xlu0 %v7619_v10, %s6695_s25 }
0x1759   :  { %3851 = vrot.lane.b32.xlu1 %v7619_v10, %s6696_s3 }
0x175a   :  { %3776 = vrot.lane.b32.xlu0 %v7611_v25, %s6697_s26 }
0x175d   :  { %3847 = vrot.lane.b32.xlu1 %v7619_v10, %s6697_s26 }
0x175e   :  { %3778 = vrot.lane.b32.xlu0 %v7609_v1, %s6697_s26 }
0x1762   :  { %3845 = vrot.lane.b32.xlu0 %v7621_v32, %s6697_s26 }
0x1781   :  { %3402 = vmax.xlane.f32.xlu1 %v3401_v30  ;;  %3399 = vmax.xlane.f32.xlu0 %v3398_v27 }
0x1785   :  { %3405 = vmax.xlane.f32.xlu0 %v3404_v57 }
0x1789   :  { %3408 = vmax.xlane.f32.xlu0 %v3407_v41 }
0x17c5   :  { %v3466_v9 = vpop.xlane.xlu1 %3465 }
0x17c9   :  { %v3469_v42 = vpop.xlane.xlu0 %3468  ;;  %v3460_v45 = vpop.xlane.xlu1 %3459 }
0x17ca   :  { %6534 = vrcp.f32 %v3469_v42 }
0x17cb   :  { %6536 = vrcp.f32 %v3460_v45 }
0x17cc   :  { %6538 = vrcp.f32 %v3466_v9 }
0x17cd   :  { %v3463_v3 = vpop.xlane.xlu0 %3462  ;;  %v3781_v47 = vpop.permute.xlu1 %3780 }
0x17ce   :  { %6540 = vrcp.f32 %v3463_v3  ;;  %v3791_v43 = vsel %vm327_vm5, %v3781_v47, 0 }
0x17d1   :  { %v3554_v37 = vpop.permute.xlu0 %3553  ;;  %v3783_v51 = vpop.permute.xlu1 %3782 }
0x17d2   :  { %6032 = vmatprep.subr.bf16.mxu1 %v3554_v37 }
0x17d3   :  { %6033 = vmatpush3.bf16.msra.mxu1 %v3554_v37 }
0x17d4   :  { %6264 = vmatprep.subr.msk.bf16.mxu1 %vm327_vm5, %v3781_v47  ;;  %v6535_v53 = vpop.eup %6534 }
0x17d5   :  { %v6537_v31 = vpop.eup %6536  ;;  %v3485_v62 = vmul.f32 %v6535_v53, %v6531_v35  ;;  %v3777_v8 = vpop.permute.xlu0 %3776  ;;  %v3794_v35 = vsel %vm327_vm5, %v3783_v51, 0 }
0x17d6   :  { %v6539_v54 = vpop.eup %6538  ;;  %v3479_v16 = vmul.f32 %v6537_v31, %v6529_v22  ;;  %v3850_v22 = vpop.permute.xlu1 %3849 }
0x17d7   :  { %v3483_v6 = vmul.f32 %v6539_v54, %v6527_v5  ;;  %v3860_v44 = vsel %vm327_vm5, %v3850_v22, 0 }
0x17d8   :  { %v6541_v55 = vpop.eup %6540 }
0x17d9   :  { %v3481_v15 = vmul.f32 %v6541_v55, %v6533_v18  ;;  %v3489_v2 = vpack.c.bf16 %v3485_v62, %v3483_v6  ;;  %v3779_v5 = vpop.permute.xlu0 %3778 }
0x17da   :  { %v3852_v18 = vpop.permute.xlu1 %3851 }
0x17db   :  { %v3488_v40 = vpack.c.bf16 %v3481_v15, %v3479_v16  ;;  %v3863_v24 = vsel %vm327_vm5, %v3852_v18, 0 }
0x17dd   :  { %6034 = vmatprep.mubr.msk.bf16.mxu1 %vm188_vm2, %v3488_v40  ;;  %v3846_v49 = vpop.permute.xlu0 %3845 }
0x17de   :  { %6035 = vmatmul.mubr.msk.bf16.vlgmr.msra.gmra.mrb[60].mxu1 %vm188_vm2, %v3489_v2  ;;  %v3848_v21 = vpop.permute.xlu1 %3847 }
0x17df   :  { %6059 = vmatpush3.bf16.xpose.msra.mxu1 %v3791_v43  ;;  %6062 = vmatprep.mubr.msk.bf16.mxu1 %vm327_vm5, %v3777_v8 }
0x17e0   :  { %6265 = vmatprep.subr.msk.bf16.mxu1 %vm327_vm5, %v3783_v51 }
0x17e7   :  { %6061 = vmatpush3.bf16.xpose.msra.mxu1 %v3794_v35 }
0x17e8   :  { %6266 = vmatprep.subr.msk.bf16.mxu1 %vm327_vm5, %v3850_v22 }
0x17ee   :  { %6063 = vmatmul.mubr.msk.bf16.vlgmr.msra.gmra.mrb[64].mxu1 %vm327_vm5, %v3779_v5 }
0x17ef   :  { %6067 = vmatpush3.bf16.xpose.msra.mxu1 %v3860_v44  ;;  %6070 = vmatprep.mubr.msk.bf16.mxu1 %vm327_vm5, %v3846_v49 }
0x17f0   :  { %6267 = vmatprep.subr.msk.bf16.mxu1 %vm327_vm5, %v3852_v18 }
0x17f7   :  { %6069 = vmatpush3.bf16.xpose.msra.mxu1 %v3863_v24 }
0x17fe   :  { %6071 = vmatmul.mubr.msk.bf16.vlgmr.msra.gmra.mrb[68].mxu1 %vm327_vm5, %v3848_v21 }
0x180e   :  { %v3400_v58 = vpop.xlane.xlu0 %3399  ;;  %v3403_v20 = vpop.xlane.xlu1 %3402 }
0x180f   :  { %v3422_v30 = vsub.f32 %v7815_v28, %v3400_v58  ;;  %v3423_v27 = vsub.f32 %v7819_v29, %v3403_v20 }
0x1811   :  { %v3430_v23 = vmul.f32 1.442695, %v3422_v30  ;;  %v3432_v57 = vmul.f32 1.442695, %v3423_v27 }
0x1812   :  { %v3406_v41 = vpop.xlane.xlu0 %3405 }
0x1813   :  { %6542 = vpow2.f32 %v3430_v23  ;;  %v3424_v9 = vsub.f32 %v7827_v4, %v3406_v41 }
0x1814   :  { %6544 = vpow2.f32 %v3432_v57 }
0x1815   :  { %v3434_v42 = vmul.f32 1.442695, %v3424_v9 }
0x1816   :  { %v3409_v45 = vpop.xlane.xlu0 %3408 }
0x1817   :  { %6546 = vpow2.f32 %v3434_v42  ;;  %v3425_v3 = vsub.f32 %v7834_v38, %v3409_v45 }
0x1819   :  { %v3436_v37 = vmul.f32 1.442695, %v3425_v3 }
0x181b   :  { %6548 = vpow2.f32 %v3436_v37 }
0x181d   :  { %v6543_v47 = vpop.eup %6542 }
0x181e   :  { %v6545_v53 = vpop.eup %6544  ;;  %v3446_v28 = vsel %vm188_vm2, %v6543_v47, 0.0 }
0x181f   :  { %3447 = vadd.xlane.f32.xlu1 %v3446_v28  ;;  %v3449_v29 = vsel %vm188_vm2, %v6545_v53, 0.0 }
0x1820   :  { %3450 = vadd.xlane.f32.xlu0 %v3449_v29 }
0x1821   :  { %v6547_v31 = vpop.eup %6546 }
0x1822   :  { %v3452_v54 = vsel %vm188_vm2, %v6547_v31, 0.0 }
0x1823   :  { %3453 = vadd.xlane.f32.xlu1 %v3452_v54 }
0x1825   :  { %v6549_v4 = vpop.eup %6548 }
0x1826   :  { %v3455_v55 = vsel %vm188_vm2, %v6549_v4, 0.0 }
0x1827   :  { %3456 = vadd.xlane.f32.xlu0 %v3455_v55 }
0x1834   :  { %3490 = vrot.lane.b32.xlu1 %v7611_v25, %s6695_s25 }
0x183d   :  { %3492 = vrot.lane.b32.xlu0 %v7609_v1, %s6695_s25  ;;  %s8327_s25 = smov 104  }
0x18ac   :  { %v3448_v38 = vpop.xlane.xlu1 %3447 }
0x18ad   :  { %v3451_v62 = vpop.xlane.xlu0 %3450  ;;  %6550 = vrcp.f32 %v3448_v38 }
0x18ae   :  { %6552 = vrcp.f32 %v3451_v62 }
0x18b0   :  { %v3454_v16 = vpop.xlane.xlu1 %3453 }
0x18b1   :  { %v7864_v15 = vpop.f32.mrb[60].mxu1  ;;  %6554 = vrcp.f32 %v3454_v16 }
0x18b2   :  { %v7866_v6 = vpop.f32.mrb[61].mxu1 }
0x18b3   :  { %v7868_v40 = vpop.f32.mrb[62].mxu1 }
0x18b4   :  { %v3615_v2 = vpack.c.bf16 %v7868_v40, %v7864_v15  ;;  %v7872_v43 = vpop.f32.mrb[63].mxu1  ;;  %v3457_v8 = vpop.xlane.xlu0 %3456 }
0x18b5   :  { %v3614_v51 = vpack.c.bf16 %v7872_v43, %v7866_v6  ;;  %6556 = vrcp.f32 %v3457_v8  ;;  %v3491_v35 = vpop.permute.xlu1 %3490 }
0x18b6   :  { %6022 = vmatprep.subr.bf16.mxu0 %v3491_v35 }
0x18b7   :  { %v6551_v22 = vpop.eup %6550  ;;  %6023 = vmatpush3.bf16.msra.mxu0 %v3491_v35 }
0x18b8   :  { %v6553_v5 = vpop.eup %6552  ;;  %v3493_v44 = vpop.permute.xlu0 %3492  ;;  %v3471_v49 = vmul.f32 %v6551_v22, %v6543_v47 }
0x18b9   :  { %6024 = vmatprep.subr.bf16.mxu0 %v3493_v44  ;;  %v3473_v18 = vmul.f32 %v6553_v5, %v6545_v53 }
0x18bb   :  { %6025 = vmatpush3.bf16.msra.mxu0 %v3493_v44  ;;  %v3486_v24 = vpack.c.bf16 %v3473_v18, %v3471_v49  ;;  %v6555_v21 = vpop.eup %6554 }
0x18bc   :  { %v3475_v20 = vmul.f32 %v6555_v21, %v6547_v31 }
0x18bd   :  { %6026 = vmatprep.mubr.msk.bf16.mxu0 %vm188_vm2, %v3486_v24 }
0x18bf   :  { %v6557_v58 = vpop.eup %6556 }
0x18c0   :  { %v3477_v30 = vmul.f32 %v6557_v58, %v6549_v4 }
0x18c1   :  { %v6064_v27 = vpop.f32.mrb[64].mxu1 }
0x18c2   :  { %v3830_v23 = vpop.f32.mrb[65].mxu1  ;;  %v3487_v57 = vpack.c.bf16 %v3477_v30, %v3475_v20  ;;  %v3916_v41 = vmul.f32 0.35355338, %v6064_v27 }
0x18c3   :  { %v3914_v9 = vmul.f32 0.35355338, %v3830_v23  ;;  %v6065_v42 = vpop.f32.mrb[66].mxu1  ;;  %v5406_v23 = vld [vmem:[%s8297_s7 + $0x14] sm:$0xf] }
0x18c4   :  { %v3833_v45 = vpop.f32.mrb[67].mxu1  ;;  %6027 = vmatmul.mubr.msk.bf16.vlgmr.msra.gmra.mrb[72].mxu0 %vm188_vm2, %v3487_v57  ;;  %v3917_v37 = vmul.f32 0.35355338, %v6065_v42  ;;  %v3924_v28 = vsel %vm208_vm6, %v3916_v41, -1e+30  ;;  %6262 = vmatprep.subr.msk.bf16.mxu0 %vm1076_vm7, %v5406_v23  ;;  %v3629_v57 = vsel %vm1076_vm7, %v5406_v23, 0 }
0x18c5   :  { %v3922_v3 = vsel %vm208_vm6, %v3914_v9, -1e+30  ;;  %v3915_v47 = vmul.f32 0.35355338, %v3833_v45  ;;  %v3936_v4 = vsel %vm188_vm2, %v3924_v28, -inf  ;;  %6039 = vmatpush3.bf16.msra.mxu0 %v3629_v57 }
0x18c6   :  { %v3930_v53 = vsel %vm188_vm2, %v3922_v3, -inf  ;;  %v3925_v54 = vsel %vm208_vm6, %v3917_v37, -1e+30  ;;  %v7912_v41 = vld [vmem:[%s8297_s7 + $0x10] sm:$0xf] }
0x18c7   :  { %v3923_v29 = vsel %vm208_vm6, %v3915_v47, -1e+30  ;;  %3931 = vmax.xlane.f32.xlu1 %v3930_v53  ;;  %v3939_v55 = vsel %vm188_vm2, %v3925_v54, -inf  ;;  %6263 = vmatprep.subr.msk.bf16.mxu0 %vm1076_vm7, %v7912_v41 }
0x18c8   :  { %v3933_v31 = vsel %vm188_vm2, %v3923_v29, -inf }
0x18c9   :  { %3934 = vmax.xlane.f32.xlu0 %v3933_v31 }
0x18cb   :  { %3937 = vmax.xlane.f32.xlu1 %v3936_v4 }
0x18cd   :  { %3940 = vmax.xlane.f32.xlu0 %v3939_v55 }
0x18d1   :  { %v6072_v38 = vpop.f32.mrb[68].mxu1 }
0x18d2   :  { %v3899_v62 = vpop.f32.mrb[69].mxu1  ;;  %v3920_v16 = vmul.f32 0.35355338, %v6072_v38 }
0x18d3   :  { %v3918_v8 = vmul.f32 0.35355338, %v3899_v62  ;;  %v6073_v35 = vpop.f32.mrb[70].mxu1 }
0x18d4   :  { %v3902_v22 = vpop.f32.mrb[71].mxu1  ;;  %v3921_v44 = vmul.f32 0.35355338, %v6073_v35  ;;  %v3928_v24 = vsel %vm208_vm6, %v3920_v16, -1e+30 }
0x18d5   :  { %v3926_v5 = vsel %vm208_vm6, %v3918_v8, -1e+30  ;;  %v3919_v49 = vmul.f32 0.35355338, %v3902_v22  ;;  %v3948_v30 = vsel %vm188_vm2, %v3928_v24, -inf }
0x18d6   :  { %v3942_v18 = vsel %vm188_vm2, %v3926_v5, -inf  ;;  %v3929_v20 = vsel %vm208_vm6, %v3921_v44, -1e+30 }
0x18d7   :  { %v3927_v21 = vsel %vm208_vm6, %v3919_v49, -1e+30  ;;  %3943 = vmax.xlane.f32.xlu1 %v3942_v18  ;;  %v3951_v27 = vsel %vm188_vm2, %v3929_v20, -inf }
0x18d8   :  { %v3945_v58 = vsel %vm188_vm2, %v3927_v21, -inf }
0x18d9   :  { %3946 = vmax.xlane.f32.xlu0 %v3945_v58 }
0x18db   :  { %3949 = vmax.xlane.f32.xlu1 %v3948_v30 }
0x18dd   :  { %3952 = vmax.xlane.f32.xlu0 %v3951_v27 }
0x18ec   :  { %4022 = vrot.lane.b32.xlu1 %v7611_v25, %s6698_s27 }
0x1954   :  { %v3932_v9 = vpop.xlane.xlu1 %3931 }
0x1955   :  { %v3954_v42 = vsub.f32 %v3922_v3, %v3932_v9 }
0x1956   :  { %v3935_v45 = vpop.xlane.xlu0 %3934 }
0x1957   :  { %v3955_v47 = vsub.f32 %v3923_v29, %v3935_v45  ;;  %v3962_v31 = vmul.f32 1.442695, %v3954_v42 }
0x1958   :  { %v3938_v37 = vpop.xlane.xlu1 %3937 }
0x1959   :  { %v3956_v53 = vsub.f32 %v3924_v28, %v3938_v37  ;;  %v3964_v62 = vmul.f32 1.442695, %v3955_v47 }
0x195a   :  { %v3941_v4 = vpop.xlane.xlu0 %3940 }
0x195b   :  { %v3966_v55 = vmul.f32 1.442695, %v3956_v53  ;;  %v3957_v38 = vsub.f32 %v3925_v54, %v3941_v4 }
0x195d   :  { %6558 = vpow2.f32 %v3966_v55  ;;  %v3968_v16 = vmul.f32 1.442695, %v3957_v38 }
0x195e   :  { %6560 = vpow2.f32 %v3962_v31 }
0x195f   :  { %6562 = vpow2.f32 %v3968_v16 }
0x1960   :  { %6564 = vpow2.f32 %v3964_v62 }
0x1964   :  { %v3944_v8 = vpop.xlane.xlu1 %3943 }
0x1965   :  { %v3958_v35 = vsub.f32 %v3926_v5, %v3944_v8 }
0x1966   :  { %v3947_v22 = vpop.xlane.xlu0 %3946 }
0x1967   :  { %v7916_v44 = vpop.eup %6558  ;;  %v3959_v54 = vsub.f32 %v3927_v21, %v3947_v22  ;;  %v3970_v58 = vmul.f32 1.442695, %v3958_v35 }
0x1968   :  { %v7918_v3 = vpop.eup %6560  ;;  %v3950_v49 = vpop.xlane.xlu1 %3949  ;;  %v3984_v28 = vsel %vm188_vm2, %v7916_v44, 0.0 }
0x1969   :  { %v7922_v29 = vpop.eup %6562  ;;  %v3960_v18 = vsub.f32 %v3928_v24, %v3950_v49  ;;  %3985 = vadd.xlane.f32.xlu1 %v3984_v28  ;;  %v3978_v9 = vsel %vm188_vm2, %v7918_v3, 0.0  ;;  %v3972_v42 = vmul.f32 1.442695, %v3959_v54  ;;  %v3709_v49 = vsel %vm1076_vm7, %v7912_v41, 0  ;;  %v5407_v41 = vld [vmem:[%s8297_s7 + $0x18] sm:$0xf] }
0x196a   :  { %v3953_v30 = vpop.xlane.xlu0 %3952  ;;  %v3987_v27 = vsel %vm188_vm2, %v7922_v29, 0.0  ;;  %v7926_v5 = vpop.eup %6564 }
0x196b   :  { %v3974_v23 = vmul.f32 1.442695, %v3960_v18  ;;  %v3961_v57 = vsub.f32 %v3929_v20, %v3953_v30  ;;  %3988 = vadd.xlane.f32.xlu0 %v3987_v27  ;;  %v3981_v24 = vsel %vm188_vm2, %v7926_v5, 0.0 }
0x196c   :  { %v4023_v28 = vpop.permute.xlu1 %4022 }
0x196d   :  { %6566 = vpow2.f32 %v3974_v23  ;;  %v3976_v45 = vmul.f32 1.442695, %v3961_v57  ;;  %3979 = vadd.xlane.f32.xlu1 %v3978_v9 }
0x196e   :  { %6568 = vpow2.f32 %v3970_v58  ;;  %v4161_v58 = vsel %vm1076_vm7, %v5407_v41, 0 }
0x196f   :  { %6570 = vpow2.f32 %v3976_v45  ;;  %3982 = vadd.xlane.f32.xlu0 %v3981_v24 }
0x1970   :  { %6572 = vpow2.f32 %v3972_v42 }
0x1977   :  { %v7932_v21 = vpop.eup %6566 }
0x1978   :  { %v7934_v37 = vpop.eup %6568  ;;  %v3996_v20 = vsel %vm188_vm2, %v7932_v21, 0.0 }
0x1979   :  { %v7938_v47 = vpop.eup %6570  ;;  %3997 = vadd.xlane.f32.xlu1 %v3996_v20  ;;  %v3990_v4 = vsel %vm188_vm2, %v7934_v37, 0.0 }
0x197a   :  { %v3999_v53 = vsel %vm188_vm2, %v7938_v47, 0.0  ;;  %v7942_v31 = vpop.eup %6572 }
0x197b   :  { %4000 = vadd.xlane.f32.xlu0 %v3999_v53  ;;  %v3993_v55 = vsel %vm188_vm2, %v7942_v31, 0.0 }
0x197d   :  { %3991 = vadd.xlane.f32.xlu1 %v3990_v4 }
0x197f   :  { %3994 = vadd.xlane.f32.xlu0 %v3993_v55 }
0x198e   :  { %4083 = vrot.lane.b32.xlu1 %v7621_v32, %s6698_s27 }
0x1992   :  { %4085 = vrot.lane.b32.xlu1 %v7619_v10, %s6698_s27 }
0x1995   :  { %4024 = vrot.lane.b32.xlu0 %v7609_v1, %s6698_s27  ;;  %s8328_s27 = smov 40  }
0x1996   :  { %4242 = vrot.lane.b32.xlu1 %v7609_v1, %s8326_s24 }
0x1997   :  { %v6028_v38 = vpop.f32.mrb[72].mxu0 }
0x1998   :  { %v3536_v62 = vpop.f32.mrb[73].mxu0 }
0x1999   :  { %4240 = vrot.lane.b32.xlu0 %v7611_v25, %s8326_s24  ;;  %v6029_v16 = vpop.f32.mrb[74].mxu0 }
0x199a   :  { %v3613_v8 = vpack.c.bf16 %v6029_v16, %v6028_v38  ;;  %4236 = vrot.lane.b32.xlu1 %v7611_v25, %s8327_s25  ;;  %v3539_v35 = vpop.f32.mrb[75].mxu0 }
0x199b   :  { %v3612_v22 = vpack.c.bf16 %v3539_v35, %v3536_v62 }
0x199d   :  { %4309 = vrot.lane.b32.xlu0 %v7621_v32, %s8326_s24  ;;  %6040 = vmatprep.mubr.msk.bf16.mxu0 %vm327_vm5, %v3612_v22 }
0x199e   :  { %4311 = vrot.lane.b32.xlu1 %v7619_v10, %s8326_s24  ;;  %6041 = vmatmul.mubr.msk.bf16.vlgmr.msra.gmra.mrb[76].mxu0 %vm327_vm5, %v3613_v8 }
0x199f   :  { %6049 = vmatpush3.bf16.msra.mxu0 %v3709_v49  ;;  %6044 = vmatprep.mubr.msk.bf16.mxu0 %vm327_vm5, %v3614_v51 }
0x19a0   :  { %6074 = vmatprep.subr.bf16.mxu0 %v4023_v28 }
0x19a1   :  { %4238 = vrot.lane.b32.xlu0 %v7609_v1, %s8327_s25 }
0x19a2   :  { %4307 = vrot.lane.b32.xlu1 %v7619_v10, %s8327_s25 }
0x19a5   :  { %4305 = vrot.lane.b32.xlu0 %v7621_v32, %s8327_s25 }
0x19a6   :  { %6045 = vmatmul.mubr.msk.bf16.gmra.mrb[80].mxu0 %vm327_vm5, %v3615_v2 }
0x19a7   :  { %6050 = vmatprep.mubr.msk.bf16.mxu0 %vm327_vm5, %v3240_v59 }
0x19ae   :  { %6051 = vmatmul.mubr.msk.bf16.vlgmr.msra.gmra.mrb[76].mxu0 %vm327_vm5, %v3241_v34 }
0x19af   :  { %6075 = vmatpush3.bf16.msra.mxu0 %v4023_v28  ;;  %6054 = vmatprep.mubr.msk.bf16.mxu0 %vm327_vm5, %v3242_v12 }
0x19b6   :  { %6055 = vmatmul.mubr.msk.bf16.gmra.mrb[80].mxu0 %vm327_vm5, %v3243_v17 }
0x19f6   :  { %v3986_v15 = vpop.xlane.xlu1 %3985 }
0x19f8   :  { %v3989_v63 = vpop.xlane.xlu0 %3988 }
0x19fa   :  { %v3980_v56 = vpop.xlane.xlu1 %3979 }
0x19fb   :  { %6574 = vrcp.f32 %v3980_v56 }
0x19fc   :  { %v3983_v59 = vpop.xlane.xlu0 %3982 }
0x19fd   :  { %6576 = vrcp.f32 %v3983_v59 }
0x19fe   :  { %6578 = vrcp.f32 %v3989_v63 }
0x19ff   :  { %6580 = vrcp.f32 %v3986_v15 }
0x1a05   :  { %v6575_v33 = vpop.eup %6574 }
0x1a06   :  { %v3998_v52 = vpop.xlane.xlu1 %3997  ;;  %v4003_v60 = vmul.f32 %v6575_v33, %v7918_v3 }
0x1a07   :  { %v6577_v34 = vpop.eup %6576 }
0x1a08   :  { %v4001_v6 = vpop.xlane.xlu0 %4000  ;;  %v4005_v39 = vmul.f32 %v6577_v34, %v7926_v5  ;;  %v6579_v17 = vpop.eup %6578 }
0x1a09   :  { %6582 = vrcp.f32 %v4001_v6  ;;  %v6581_v40 = vpop.eup %6580  ;;  %v4009_v43 = vmul.f32 %v6579_v17, %v7922_v29 }
0x1a0a   :  { %v3992_v50 = vpop.xlane.xlu1 %3991  ;;  %v4018_v36 = vpack.c.bf16 %v4005_v39, %v4003_v60  ;;  %v4007_v3 = vmul.f32 %v6581_v40, %v7916_v44 }
0x1a0b   :  { %6584 = vrcp.f32 %v3992_v50 }
0x1a0c   :  { %6586 = vrcp.f32 %v3998_v52  ;;  %v3995_v12 = vpop.xlane.xlu0 %3994  ;;  %6078 = vmatprep.mubr.msk.bf16.mxu0 %vm188_vm2, %v4018_v36  ;;  %v4019_v18 = vpack.c.bf16 %v4009_v43, %v4007_v3 }
0x1a0d   :  { %6588 = vrcp.f32 %v3995_v12 }
0x1a0e   :  { %v4084_v2 = vpop.permute.xlu1 %4083 }
0x1a0f   :  { %6082 = vmatprep.subr.bf16.mxu1 %v4084_v2 }
0x1a10   :  { %v4025_v51 = vpop.permute.xlu0 %4024  ;;  %6083 = vmatpush3.bf16.msra.mxu1 %v4084_v2 }
0x1a11   :  { %6076 = vmatprep.subr.bf16.mxu0 %v4025_v51 }
0x1a12   :  { %6077 = vmatpush3.bf16.msra.mxu0 %v4025_v51  ;;  %v4086_v54 = vpop.permute.xlu1 %4085 }
0x1a13   :  { %6084 = vmatprep.subr.bf16.mxu1 %v4086_v54  ;;  %6268 = vmatprep.subr.msk.bf16.mxu0 %vm1076_vm7, %v5407_v41  ;;  %v6583_v30 = vpop.eup %6582 }
0x1a14   :  { %v4241_v29 = vpop.permute.xlu0 %4240  ;;  %6085 = vmatpush3.bf16.msra.mxu1 %v4086_v54  ;;  %v4017_v23 = vmul.f32 %v6583_v30, %v7938_v47 }
0x1a15   :  { %v6585_v27 = vpop.eup %6584  ;;  %6079 = vmatmul.mubr.msk.bf16.vlgmr.msra.gmra.mrb[84].mxu0 %vm188_vm2, %v4019_v18  ;;  %6269 = vmatprep.subr.msk.bf16.mxu1 %vm327_vm5, %v4241_v29  ;;  %v4251_v4 = vsel %vm327_vm5, %v4241_v29, 0 }
0x1a16   :  { %v6587_v5 = vpop.eup %6586  ;;  %6091 = vmatpush3.bf16.msra.mxu0 %v4161_v58  ;;  %v4243_v57 = vpop.permute.xlu1 %4242  ;;  %v4011_v42 = vmul.f32 %v6585_v27, %v7934_v37 }
0x1a17   :  { %v6589_v44 = vpop.eup %6588  ;;  %v4015_v24 = vmul.f32 %v6587_v5, %v7932_v21  ;;  %v4254_v37 = vsel %vm327_vm5, %v4243_v57, 0 }
0x1a18   :  { %v4310_v9 = vpop.permute.xlu0 %4309  ;;  %v4013_v45 = vmul.f32 %v6589_v44, %v7942_v31 }
0x1a19   :  { %6271 = vmatprep.subr.msk.bf16.mxu0 %vm327_vm5, %v4310_v9  ;;  %v4021_v53 = vpack.c.bf16 %v4017_v23, %v4015_v24  ;;  %v4320_v35 = vsel %vm327_vm5, %v4310_v9, 0 }
0x1a1a   :  { %v4020_v20 = vpack.c.bf16 %v4013_v45, %v4011_v42  ;;  %v4237_v55 = vpop.permute.xlu1 %4236 }
0x1a1c   :  { %6086 = vmatprep.mubr.msk.bf16.mxu1 %vm188_vm2, %v4020_v20  ;;  %v4239_v21 = vpop.permute.xlu0 %4238 }
0x1a1d   :  { %6087 = vmatmul.mubr.msk.bf16.vlgmr.msra.gmra.mrb[72].mxu1 %vm188_vm2, %v4021_v53 }
0x1a1e   :  { %6101 = vmatpush3.bf16.xpose.msra.mxu1 %v4251_v4  ;;  %6104 = vmatprep.mubr.msk.bf16.mxu1 %vm327_vm5, %v4237_v55  ;;  %v4312_v22 = vpop.permute.xlu1 %4311 }
0x1a1f   :  { %6270 = vmatprep.subr.msk.bf16.mxu1 %vm327_vm5, %v4243_v57  ;;  %v4323_v33 = vsel %vm327_vm5, %v4312_v22, 0 }
0x1a20   :  { %v4306_v52 = vpop.permute.xlu0 %4305 }
0x1a22   :  { %v4308_v34 = vpop.permute.xlu1 %4307 }
0x1a26   :  { %6103 = vmatpush3.bf16.xpose.msra.mxu1 %v4254_v37 }
0x1a2d   :  { %6105 = vmatmul.mubr.msk.bf16.vlgmr.msra.gmra.mrb[76].mxu1 %vm327_vm5, %v4239_v21 }
0x1ae8   :  { %v6080_v47 = vpop.f32.mrb[84].mxu0 }
0x1ae9   :  { %v4068_v31 = vpop.f32.mrb[85].mxu0 }
0x1aea   :  { %v6081_v38 = vpop.f32.mrb[86].mxu0 }
0x1aeb   :  { %v4145_v62 = vpack.c.bf16 %v6081_v38, %v6080_v47  ;;  %v4071_v16 = vpop.f32.mrb[87].mxu0 }
0x1aec   :  { %v4144_v8 = vpack.c.bf16 %v4071_v16, %v4068_v31 }
0x1aee   :  { %6092 = vmatprep.mubr.msk.bf16.mxu0 %vm327_vm5, %v4144_v8 }
0x1aef   :  { %6093 = vmatmul.mubr.msk.bf16.vlgmr.msra.gmra.mrb[76].mxu0 %vm327_vm5, %v4145_v62 }
0x1af0   :  { %6109 = vmatpush3.bf16.xpose.msra.mxu0 %v4320_v35  ;;  %v6088_v49 = vpop.f32.mrb[72].mxu1 }
0x1af1   :  { %6272 = vmatprep.subr.msk.bf16.mxu0 %vm327_vm5, %v4312_v22  ;;  %v4129_v28 = vpop.f32.mrb[73].mxu1 }
0x1af2   :  { %v6089_v15 = vpop.f32.mrb[74].mxu1 }
0x1af3   :  { %v4147_v63 = vpack.c.bf16 %v6089_v15, %v6088_v49  ;;  %v4132_v56 = vpop.f32.mrb[75].mxu1 }
0x1af4   :  { %v4146_v59 = vpack.c.bf16 %v4132_v56, %v4129_v28 }
0x1af6   :  { %6096 = vmatprep.mubr.msk.bf16.mxu0 %vm327_vm5, %v4146_v59 }
0x1af7   :  { %6097 = vmatmul.mubr.msk.bf16.gmra.mrb[80].mxu0 %vm327_vm5, %v4147_v63 }
0x1af8   :  { %6111 = vmatpush3.bf16.xpose.msra.mxu0 %v4323_v33  ;;  %6112 = vmatprep.mubr.msk.bf16.mxu0 %vm327_vm5, %v4306_v52 }
0x1aff   :  { %6113 = vmatmul.mubr.msk.bf16.vlgmr.msra.gmra.mrb[88].mxu0 %vm327_vm5, %v4308_v34 }
0x1b00   :  { %v6106_v6 = vpop.f32.mrb[76].mxu1 }
0x1b01   :  { %v4290_v60 = vpop.f32.mrb[77].mxu1  ;;  %v4376_v39 = vmul.f32 0.35355338, %v6106_v6 }
0x1b02   :  { %v4374_v50 = vmul.f32 0.35355338, %v4290_v60  ;;  %v6107_v36 = vpop.f32.mrb[78].mxu1 }
0x1b03   :  { %v4293_v17 = vpop.f32.mrb[79].mxu1  ;;  %v4384_v43 = vsel %vm208_vm6, %v4376_v39, -1e+30  ;;  %v4377_v51 = vmul.f32 0.35355338, %v6107_v36 }
0x1b04   :  { %v4382_v12 = vsel %vm208_vm6, %v4374_v50, -1e+30  ;;  %v4375_v40 = vmul.f32 0.35355338, %v4293_v17  ;;  %v4396_v54 = vsel %vm188_vm2, %v4384_v43, -inf }
0x1b05   :  { %v4390_v2 = vsel %vm188_vm2, %v4382_v12, -inf  ;;  %v4385_v18 = vsel %vm208_vm6, %v4377_v51, -1e+30 }
0x1b06   :  { %v4383_v41 = vsel %vm208_vm6, %v4375_v40, -1e+30  ;;  %4391 = vmax.xlane.f32.xlu0 %v4390_v2  ;;  %v4399_v58 = vsel %vm188_vm2, %v4385_v18, -inf }
0x1b07   :  { %v4393_v3 = vsel %vm188_vm2, %v4383_v41, -inf }
0x1b08   :  { %4394 = vmax.xlane.f32.xlu1 %v4393_v3 }
0x1b0a   :  { %4397 = vmax.xlane.f32.xlu0 %v4396_v54 }
0x1b0e   :  { %4400 = vmax.xlane.f32.xlu0 %v4399_v58 }
0x1b93   :  { %v4392_v30 = vpop.xlane.xlu0 %4391 }
0x1b94   :  { %v4414_v5 = vsub.f32 %v4382_v12, %v4392_v30 }
0x1b95   :  { %v4395_v27 = vpop.xlane.xlu1 %4394 }
0x1b96   :  { %v4415_v44 = vsub.f32 %v4383_v41, %v4395_v27  ;;  %v4422_v57 = vmul.f32 1.442695, %v4414_v5 }
0x1b97   :  { %v4398_v29 = vpop.xlane.xlu0 %4397 }
0x1b98   :  { %v4416_v9 = vsub.f32 %v4384_v43, %v4398_v29  ;;  %v4424_v45 = vmul.f32 1.442695, %v4415_v44  ;;  %6590 = vpow2.f32 %v4422_v57 }
0x1b9a   :  { %v4426_v24 = vmul.f32 1.442695, %v4416_v9  ;;  %6592 = vpow2.f32 %v4424_v45 }
0x1b9b   :  { %v4401_v23 = vpop.xlane.xlu0 %4400 }
0x1b9c   :  { %v4417_v42 = vsub.f32 %v4385_v18, %v4401_v23  ;;  %6594 = vpow2.f32 %v4426_v24 }
0x1b9e   :  { %v4428_v53 = vmul.f32 1.442695, %v4417_v42 }
0x1ba0   :  { %6596 = vpow2.f32 %v4428_v53 }
0x1ba2   :  { %v6591_v15 = vpop.eup %6590 }
0x1ba3   :  { %v4438_v59 = vsel %vm188_vm2, %v6591_v15, 0.0 }
0x1ba4   :  { %v6593_v56 = vpop.eup %6592 }
0x1ba5   :  { %v4441_v52 = vsel %vm188_vm2, %v6593_v56, 0.0 }
0x1ba6   :  { %v8056_v33 = vpop.eup %6594 }
0x1ba7   :  { %v4444_v19 = vsel %vm188_vm2, %v8056_v33, 0.0 }
0x1baa   :  { %v8059_v34 = vpop.eup %6596 }
0x1bab   :  { %v4447_v6 = vsel %vm188_vm2, %v8059_v34, 0.0 }
0x1bd2   :  { %v6114_v20 = vpop.f32.mrb[88].mxu0 }
0x1bd3   :  { %v4359_v4 = vpop.f32.mrb[89].mxu0  ;;  %v4380_v55 = vmul.f32 0.35355338, %v6114_v20 }
0x1bd4   :  { %v4378_v37 = vmul.f32 0.35355338, %v4359_v4  ;;  %v6115_v21 = vpop.f32.mrb[90].mxu0 }
0x1bd5   :  { %v4362_v47 = vpop.f32.mrb[91].mxu0  ;;  %v4381_v38 = vmul.f32 0.35355338, %v6115_v21  ;;  %v4388_v8 = vsel %vm208_vm6, %v4380_v55, -1e+30 }
0x1bd6   :  { %v4386_v31 = vsel %vm208_vm6, %v4378_v37, -1e+30  ;;  %v4379_v62 = vmul.f32 0.35355338, %v4362_v47  ;;  %v4408_v28 = vsel %vm188_vm2, %v4388_v8, -inf }
0x1bd7   :  { %v4402_v16 = vsel %vm188_vm2, %v4386_v31, -inf  ;;  %v4389_v49 = vsel %vm208_vm6, %v4381_v38, -1e+30 }
0x1bd8   :  { %v4387_v35 = vsel %vm208_vm6, %v4379_v62, -1e+30  ;;  %4403 = vmax.xlane.f32.xlu1 %v4402_v16  ;;  %v4411_v63 = vsel %vm188_vm2, %v4389_v49, -inf }
0x1bd9   :  { %v4405_v22 = vsel %vm188_vm2, %v4387_v35, -inf }
0x1bda   :  { %4406 = vmax.xlane.f32.xlu0 %v4405_v22 }
0x1bdc   :  { %4409 = vmax.xlane.f32.xlu1 %v4408_v28 }
0x1bde   :  { %4412 = vmax.xlane.f32.xlu0 %v4411_v63 }
0x1be0   :  { %4439 = vadd.xlane.f32.xlu1 %v4438_v59 }
0x1be2   :  { %4442 = vadd.xlane.f32.xlu0 %v4441_v52 }
0x1be4   :  { %4445 = vadd.xlane.f32.xlu1 %v4444_v19 }
0x1be6   :  { %4448 = vadd.xlane.f32.xlu0 %v4447_v6 }
0x1bf5   :  { %4482 = vrot.lane.b32.xlu1 %v7611_v25, %s8328_s27 }
0x1c65   :  { %v4404_v60 = vpop.xlane.xlu1 %4403 }
0x1c66   :  { %v4418_v39 = vsub.f32 %v4386_v31, %v4404_v60 }
0x1c67   :  { %v4407_v50 = vpop.xlane.xlu0 %4406 }
0x1c68   :  { %v4430_v36 = vmul.f32 1.442695, %v4418_v39  ;;  %v4419_v12 = vsub.f32 %v4387_v35, %v4407_v50 }
0x1c69   :  { %v4410_v17 = vpop.xlane.xlu1 %4409 }
0x1c6a   :  { %v4420_v40 = vsub.f32 %v4388_v8, %v4410_v17  ;;  %6598 = vpow2.f32 %v4430_v36  ;;  %v4432_v3 = vmul.f32 1.442695, %v4419_v12 }
0x1c6b   :  { %v4413_v2 = vpop.xlane.xlu0 %4412 }
0x1c6c   :  { %v4434_v43 = vmul.f32 1.442695, %v4420_v40  ;;  %v4421_v51 = vsub.f32 %v4389_v49, %v4413_v2 }
0x1c6d   :  { %v4440_v41 = vpop.xlane.xlu1 %4439 }
0x1c6e   :  { %6600 = vpow2.f32 %v4434_v43  ;;  %v4436_v54 = vmul.f32 1.442695, %v4421_v51 }
0x1c6f   :  { %6602 = vrcp.f32 %v4440_v41  ;;  %v4443_v18 = vpop.xlane.xlu0 %4442 }
0x1c70   :  { %6604 = vpow2.f32 %v4436_v54 }
0x1c71   :  { %6606 = vrcp.f32 %v4443_v18  ;;  %v4446_v25 = vpop.xlane.xlu1 %4445 }
0x1c72   :  { %6608 = vpow2.f32 %v4432_v3  ;;  %v5458_v3 = vld [vmem:[%s8298_s8 + $0x1] ss:$0 sm:$0xff] }
0x1c73   :  { %v4449_v4 = vpop.xlane.xlu0 %4448 }
0x1c74   :  { %v6599_v30 = vpop.eup %6598  ;;  %6610 = vrcp.f32 %v4449_v4 }
0x1c75   :  { %v4483_v58 = vpop.permute.xlu1 %4482  ;;  %v4450_v24 = vsel %vm188_vm2, %v6599_v30, 0.0  ;;  %6612 = vrcp.f32 %v4446_v25 }
0x1c76   :  { %6116 = vmatprep.subr.bf16.mxu1 %v4483_v58 }
0x1c77   :  { %6117 = vmatpush3.bf16.msra.mxu1 %v4483_v58 }
0x1c78   :  { %v6601_v29 = vpop.eup %6600 }
0x1c79   :  { %v6603_v27 = vpop.eup %6602  ;;  %v4456_v5 = vsel %vm188_vm2, %v6601_v29, 0.0 }
0x1c7a   :  { %v6605_v44 = vpop.eup %6604  ;;  %4457 = vadd.xlane.f32.xlu1 %v4456_v5  ;;  %v4463_v42 = vmul.f32 %v6603_v27, %v6591_v15 }
0x1c7b   :  { %v6607_v23 = vpop.eup %6606  ;;  %v4459_v57 = vsel %vm188_vm2, %v6605_v44, 0.0 }
0x1c7c   :  { %v6609_v9 = vpop.eup %6608  ;;  %4460 = vadd.xlane.f32.xlu0 %v4459_v57  ;;  %v4465_v45 = vmul.f32 %v6607_v23, %v6593_v56 }
0x1c7d   :  { %v4453_v53 = vsel %vm188_vm2, %v6609_v9, 0.0 }
0x1c7e   :  { %4451 = vadd.xlane.f32.xlu1 %v4450_v24  ;;  %v4478_v20 = vpack.c.bf16 %v4465_v45, %v4463_v42  ;;  %v6611_v47 = vpop.eup %6610 }
0x1c7f   :  { %v6613_v38 = vpop.eup %6612  ;;  %v4469_v62 = vmul.f32 %v6611_v47, %v8059_v34 }
0x1c80   :  { %6120 = vmatprep.mubr.msk.bf16.mxu1 %vm188_vm2, %v4478_v20  ;;  %4454 = vadd.xlane.f32.xlu0 %v4453_v53 }
0x1c8f   :  { %4543 = vrot.lane.b32.xlu1 %v7621_v32, %s8328_s27 }
0x1c93   :  { %4545 = vrot.lane.b32.xlu1 %v7619_v10, %s8328_s27 }
0x1c96   :  { %4484 = vrot.lane.b32.xlu0 %v7609_v1, %s8328_s27  ;;  %v4467_v1 = vmul.f32 %v6613_v38, %v8056_v33  ;;  %v5408_v33 = vld [vmem:[%s8297_s7 + $0x1c] sm:$0xf] }
0x1c97   :  { %v4621_v19 = vsel %vm1076_vm7, %v5408_v33, 0 }
0x1c98   :  { %v4479_v8 = vpack.c.bf16 %v4469_v62, %v4467_v1 }
0x1d07   :  { %v4458_v55 = vpop.xlane.xlu1 %4457 }
0x1d09   :  { %v4461_v37 = vpop.xlane.xlu0 %4460 }
0x1d0a   :  { %6614 = vrcp.f32 %v4461_v37 }
0x1d0b   :  { %v4452_v21 = vpop.xlane.xlu1 %4451 }
0x1d0c   :  { %6616 = vrcp.f32 %v4452_v21 }
0x1d0d   :  { %6618 = vrcp.f32 %v4458_v55  ;;  %v4455_v31 = vpop.xlane.xlu0 %4454 }
0x1d0e   :  { %6620 = vrcp.f32 %v4455_v31 }
0x1d0f   :  { %v4544_v32 = vpop.permute.xlu1 %4543 }
0x1d10   :  { %6124 = vmatprep.subr.bf16.mxu0 %v4544_v32 }
0x1d11   :  { %v4485_v10 = vpop.permute.xlu0 %4484  ;;  %6125 = vmatpush3.bf16.msra.mxu0 %v4544_v32 }
0x1d12   :  { %6118 = vmatprep.subr.bf16.mxu1 %v4485_v10 }
0x1d13   :  { %6119 = vmatpush3.bf16.msra.mxu1 %v4485_v10  ;;  %v4546_v16 = vpop.permute.xlu1 %4545 }
0x1d14   :  { %6126 = vmatprep.subr.bf16.mxu0 %v4546_v16  ;;  %v6615_v35 = vpop.eup %6614 }
0x1d15   :  { %6127 = vmatpush3.bf16.msra.mxu0 %v4546_v16  ;;  %v4477_v15 = vmul.f32 %v6615_v35, %v6605_v44 }
0x1d16   :  { %v6617_v22 = vpop.eup %6616  ;;  %6121 = vmatmul.mubr.msk.bf16.vlgmr.msra.gmra.mrb[80].mxu1 %vm188_vm2, %v4479_v8  ;;  %6273 = vmatprep.subr.msk.bf16.mxu0 %vm1076_vm7, %v5408_v33 }
0x1d17   :  { %v6619_v49 = vpop.eup %6618  ;;  %v4471_v63 = vmul.f32 %v6617_v22, %v6599_v30 }
0x1d18   :  { %v6621_v28 = vpop.eup %6620  ;;  %v4475_v59 = vmul.f32 %v6619_v49, %v6601_v29 }
0x1d19   :  { %v4473_v56 = vmul.f32 %v6621_v28, %v6609_v9 }
0x1d1a   :  { %v4481_v34 = vpack.c.bf16 %v4477_v15, %v4475_v59 }
0x1d1b   :  { %v4480_v52 = vpack.c.bf16 %v4473_v56, %v4471_v63 }
0x1d1d   :  { %6128 = vmatprep.mubr.msk.bf16.mxu0 %vm188_vm2, %v4480_v52 }
0x1d1e   :  { %6129 = vmatmul.mubr.msk.bf16.vlgmr.msra.gmra.mrb[92].mxu0 %vm188_vm2, %v4481_v34 }
0x1d1f   :  { %6133 = vmatpush3.bf16.msra.mxu0 %v4621_v19 }
0x1d20   :  { %6178 = vmatprep.subr.bf16.mxu0 %v6690_v13 }
0x1de9   :  { %v6122_v6 = vpop.f32.mrb[80].mxu1 }
0x1dea   :  { %v4528_v60 = vpop.f32.mrb[81].mxu1 }
0x1deb   :  { %v6123_v39 = vpop.f32.mrb[82].mxu1 }
0x1dec   :  { %v4605_v50 = vpack.c.bf16 %v6123_v39, %v6122_v6  ;;  %v4531_v36 = vpop.f32.mrb[83].mxu1 }
0x1ded   :  { %v4604_v17 = vpack.c.bf16 %v4531_v36, %v4528_v60 }
0x1def   :  { %6134 = vmatprep.mubr.msk.bf16.mxu0 %vm327_vm5, %v4604_v17 }
0x1df0   :  { %6135 = vmatmul.mubr.msk.bf16.vlgmr.msra.gmra.mrb[76].mxu0 %vm327_vm5, %v4605_v50 }
0x1df1   :  { %v6130_v12 = vpop.f32.mrb[92].mxu0 }
0x1df2   :  { %v4589_v40 = vpop.f32.mrb[93].mxu0 }
0x1df3   :  { %v6131_v2 = vpop.f32.mrb[94].mxu0 }
0x1df4   :  { %v4607_v43 = vpack.c.bf16 %v6131_v2, %v6130_v12  ;;  %v4592_v51 = vpop.f32.mrb[95].mxu0 }
0x1df5   :  { %v4606_v41 = vpack.c.bf16 %v4592_v51, %v4589_v40 }
0x1df7   :  { %6138 = vmatprep.mubr.msk.bf16.mxu0 %vm327_vm5, %v4606_v41 }
0x1df8   :  { %6139 = vmatmul.mubr.msk.bf16.gmra.mrb[80].mxu0 %vm327_vm5, %v4607_v43 }
0x1df9   :  { %6182 = vmatprep.mubr.msk.bf16.mxu0 %vm6702_vm8, %v6690_v13 }
0x1ec3   :  { %v6136_v54 = vpop.f32.mrb[76].mxu0 }
0x1ec4   :  { %v4657_v18 = vpop.f32.mrb[77].mxu0  ;;  %v4706_v25 = vadd.f32 %v6136_v54, %v5458_v3 }
0x1ec5   :  { %v4704_v58 = vadd.f32 %v5458_v3, %v4657_v18  ;;  %v6137_v30 = vpop.f32.mrb[78].mxu0 }
0x1ec6   :  { %v4660_v29 = vpop.f32.mrb[79].mxu0  ;;  %v4707_v44 = vadd.f32 %v6137_v30, %v5458_v3  ;;  %v4714_v23 = vadd.f32 %v4706_v25, %v7581_v7 }
0x1ec7   :  { %v4712_v27 = vadd.f32 %v4704_v58, %v7574_v61  ;;  %v4705_v5 = vadd.f32 %v5458_v3, %v4660_v29 }
0x1ec8   :  { %v4715_v24 = vadd.f32 %v4707_v44, %v7583_v48  ;;  %v4726_v61 = vsel %vm188_vm2, %v4714_v23, 0.0 }
0x1ec9   :  { %v4713_v57 = vadd.f32 %v4705_v5, %v7576_v0  ;;  %v4720_v9 = vsel %vm188_vm2, %v4712_v27, 0.0 }
0x1eca   :  { %4721 = vadd.xlane.f32.xlu0 %v4720_v9  ;;  %v4729_v21 = vsel %vm188_vm2, %v4715_v24, 0.0 }
0x1ecb   :  { %v6140_v42 = vpop.f32.mrb[80].mxu0  ;;  %v4723_v45 = vsel %vm188_vm2, %v4713_v57, 0.0 }
0x1ecc   :  { %4724 = vadd.xlane.f32.xlu1 %v4723_v45  ;;  %v4673_v20 = vpop.f32.mrb[81].mxu0  ;;  %v4710_v53 = vadd.f32 %v6140_v42, %v5458_v3 }
0x1ecd   :  { %v4708_v4 = vadd.f32 %v5458_v3, %v4673_v20  ;;  %v6141_v55 = vpop.f32.mrb[82].mxu0 }
0x1ece   :  { %4727 = vadd.xlane.f32.xlu0 %v4726_v61  ;;  %v4676_v37 = vpop.f32.mrb[83].mxu0  ;;  %v4718_v47 = vadd.f32 %v4710_v53, %v7599_v11  ;;  %v4711_v31 = vadd.f32 %v6141_v55, %v5458_v3 }
0x1ecf   :  { %v4716_v7 = vadd.f32 %v4708_v4, %v7591_v26  ;;  %v4709_v0 = vadd.f32 %v5458_v3, %v4676_v37 }
0x1ed0   :  { %v4719_v32 = vadd.f32 %v4711_v31, %v7601_v14  ;;  %v4738_v62 = vsel %vm188_vm2, %v4718_v47, 0.0 }
0x1ed1   :  { %v4717_v38 = vadd.f32 %v4709_v0, %v7593_v46  ;;  %v4732_v48 = vsel %vm188_vm2, %v4716_v7, 0.0 }
0x1ed2   :  { %4730 = vadd.xlane.f32.xlu0 %v4729_v21  ;;  %4733 = vadd.xlane.f32.xlu1 %v4732_v48  ;;  %v4741_v26 = vsel %vm188_vm2, %v4719_v32, 0.0 }
0x1ed3   :  { %v4735_v10 = vsel %vm188_vm2, %v4717_v38, 0.0 }
0x1ed6   :  { %4739 = vadd.xlane.f32.xlu1 %v4738_v62  ;;  %4736 = vadd.xlane.f32.xlu0 %v4735_v10 }
0x1eda   :  { %4742 = vadd.xlane.f32.xlu0 %v4741_v26  ;;  %v5460_v26 = vld [vmem:[%s8299_s9 + $0x1] ss:$0 sm:$0xff] }
0x1f57   :  { %v4722_v1 = vpop.xlane.xlu0 %4721 }
0x1f58   :  { %v4744_v11 = vmul.f32 0.03125, %v4722_v1 }
0x1f59   :  { %v4725_v16 = vpop.xlane.xlu1 %4724 }
0x1f5a   :  { %v8112_v8 = vsub.f32 %v4712_v27, %v4744_v11  ;;  %v4745_v46 = vmul.f32 0.03125, %v4725_v16 }
0x1f5b   :  { %v4728_v35 = vpop.xlane.xlu0 %4727 }
0x1f5c   :  { %v8114_v22 = vsub.f32 %v4713_v57, %v4745_v46  ;;  %v4746_v49 = vmul.f32 0.03125, %v4728_v35  ;;  %v4760_v14 = vmul.f32 %v8112_v8, %v8112_v8  ;;  %v6307_v57 = vld [vmem:[%s8301_s11 + $0x18] sm:$0xff]  }
0x1f5e   :  { %v8118_v28 = vsub.f32 %v4714_v23, %v4746_v49  ;;  %v4768_v15 = vsel %vm188_vm2, %v4760_v14, 0.0  ;;  %v4761_v63 = vmul.f32 %v8114_v22, %v8114_v22  ;;  %v6306_v23 = vld [vmem:[%s8301_s11 + $0x10] sm:$0xff]  }
0x1f5f   :  { %v4731_v56 = vpop.xlane.xlu0 %4730  ;;  %4769 = vadd.xlane.f32.xlu1 %v4768_v15  ;;  %v4734_v59 = vpop.xlane.xlu1 %4733  ;;  %6142 = vmatprep.subr.bf16.mxu1 %v6306_v23 }
0x1f60   :  { %v4747_v52 = vmul.f32 0.03125, %v4731_v56  ;;  %v4748_v34 = vmul.f32 0.03125, %v4734_v59  ;;  %v4771_v33 = vsel %vm188_vm2, %v4761_v63, 0.0  ;;  %v4762_v19 = vmul.f32 %v8118_v28, %v8118_v28  ;;  %6143 = vmatpush3.bf16.msra.mxu1 %v6306_v23  ;;  %v5462_v59 = vld [vmem:[%s8300_s10 + $0x1] ss:$0 sm:$0xff] }
0x1f61   :  { %4772 = vadd.xlane.f32.xlu0 %v4771_v33  ;;  %6144 = vmatprep.subr.bf16.mxu1 %v6307_v57 }
0x1f62   :  { %v8126_v6 = vsub.f32 %v4715_v24, %v4747_v52  ;;  %v8128_v60 = vsub.f32 %v4716_v7, %v4748_v34  ;;  %v4774_v39 = vsel %vm188_vm2, %v4762_v19, 0.0 }
0x1f63   :  { %4775 = vadd.xlane.f32.xlu1 %v4774_v39  ;;  %v4740_v50 = vpop.xlane.xlu1 %4739  ;;  %v4737_v36 = vpop.xlane.xlu0 %4736 }
0x1f64   :  { %v4750_v17 = vmul.f32 0.03125, %v4740_v50  ;;  %v4749_v12 = vmul.f32 0.03125, %v4737_v36  ;;  %v4764_v40 = vmul.f32 %v8128_v60, %v8128_v60  ;;  %v4763_v2 = vmul.f32 %v8126_v6, %v8126_v6  ;;  %6145 = vmatpush3.bf16.msra.mxu1 %v6307_v57 }
0x1f66   :  { %v8135_v43 = vsub.f32 %v4718_v47, %v4750_v17  ;;  %v8137_v51 = vsub.f32 %v4717_v38, %v4749_v12  ;;  %v4780_v41 = vsel %vm188_vm2, %v4764_v40, 0.0  ;;  %v4777_v3 = vsel %vm188_vm2, %v4763_v2, 0.0 }
0x1f67   :  { %4781 = vadd.xlane.f32.xlu1 %v4780_v41  ;;  %4778 = vadd.xlane.f32.xlu0 %v4777_v3  ;;  %v4743_v54 = vpop.xlane.xlu0 %4742 }
0x1f68   :  { %v4751_v18 = vmul.f32 0.03125, %v4743_v54  ;;  %v4766_v25 = vmul.f32 %v8135_v43, %v8135_v43  ;;  %v4765_v58 = vmul.f32 %v8137_v51, %v8137_v51 }
0x1f6a   :  { %v8145_v30 = vsub.f32 %v4719_v32, %v4751_v18  ;;  %v4786_v29 = vsel %vm188_vm2, %v4766_v25, 0.0  ;;  %v4783_v27 = vsel %vm188_vm2, %v4765_v58, 0.0 }
0x1f6b   :  { %4787 = vadd.xlane.f32.xlu1 %v4786_v29  ;;  %4784 = vadd.xlane.f32.xlu0 %v4783_v27 }
0x1f6c   :  { %v4767_v5 = vmul.f32 %v8145_v30, %v8145_v30 }
0x1f6e   :  { %v4789_v44 = vsel %vm188_vm2, %v4767_v5, 0.0 }
0x1f6f   :  { %4790 = vadd.xlane.f32.xlu0 %v4789_v44 }
0x1fec   :  { %v4770_v9 = vpop.xlane.xlu1 %4769 }
0x1fed   :  { %v4792_v42 = vmul.f32 0.03125, %v4770_v9  ;;  %v6309_v9 = vld [vmem:[%s8303_s13 + $0x48] sm:$0xff]  }
0x1fee   :  { %v4773_v45 = vpop.xlane.xlu0 %4772 }
0x1fef   :  { %v4800_v24 = vadd.f32 1e-05, %v4792_v42  ;;  %v4793_v20 = vmul.f32 0.03125, %v4773_v45  ;;  %v6310_v42 = vld [vmem:[%s8303_s13 + $0x50] sm:$0xff]   ;;  %v6311_v45 = vld [vmem:[%s8303_s13 + $0x58] sm:$0xff]  }
0x1ff0   :  { %v4776_v53 = vpop.xlane.xlu1 %4775 }
0x1ff1   :  { %6622 = vrsqrt.f32 %v4800_v24  ;;  %v4801_v4 = vadd.f32 1e-05, %v4793_v20  ;;  %v4794_v55 = vmul.f32 0.03125, %v4776_v53  ;;  %v6312_v24 = vld [vmem:[%s8303_s13 + $0x60] sm:$0xff]   ;;  %v6313_v20 = vld [vmem:[%s8303_s13 + $0x68] sm:$0xff]   ;;  %v6314_v53 = vld [vmem:[%s8303_s13 + $0x70] sm:$0xff]  }
0x1ff3   :  { %6624 = vrsqrt.f32 %v4801_v4  ;;  %v4802_v61 = vadd.f32 1e-05, %v4794_v55  ;;  %v6315_v4 = vld [vmem:[%s8303_s13 + $0x78] sm:$0xff]   ;;  %v5468_v55 = vld [vmem:[%s8302_s12 + $0x1] ss:$0 sm:$0xff] }
0x1ff4   :  { %v4782_v37 = vpop.xlane.xlu1 %4781  ;;  %v4779_v7 = vpop.xlane.xlu0 %4778 }
0x1ff5   :  { %6626 = vrsqrt.f32 %v4802_v61  ;;  %v4796_v0 = vmul.f32 0.03125, %v4782_v37  ;;  %v4795_v21 = vmul.f32 0.03125, %v4779_v7 }
0x1ff7   :  { %v4804_v47 = vadd.f32 1e-05, %v4796_v0  ;;  %v4803_v31 = vadd.f32 1e-05, %v4795_v21 }
0x1ff8   :  { %v4788_v38 = vpop.xlane.xlu1 %4787  ;;  %v4785_v48 = vpop.xlane.xlu0 %4784 }
0x1ff9   :  { %6628 = vrsqrt.f32 %v4804_v47  ;;  %v4798_v32 = vmul.f32 0.03125, %v4788_v38  ;;  %v4797_v62 = vmul.f32 0.03125, %v4785_v48 }
0x1ffa   :  { %6630 = vrsqrt.f32 %v4803_v31 }
0x1ffb   :  { %v6623_v10 = vpop.eup %6622  ;;  %v4806_v1 = vadd.f32 1e-05, %v4798_v32  ;;  %v4805_v11 = vadd.f32 1e-05, %v4797_v62 }
0x1ffc   :  { %v4816_v16 = vmul.f32 %v6623_v10, %v8112_v8  ;;  %v4791_v46 = vpop.xlane.xlu0 %4790 }
0x1ffd   :  { %v6625_v35 = vpop.eup %6624  ;;  %6632 = vrsqrt.f32 %v4806_v1  ;;  %v4799_v49 = vmul.f32 0.03125, %v4791_v46 }
0x1ffe   :  { %v4817_v14 = vmul.f32 %v6625_v35, %v8114_v22  ;;  %6634 = vrsqrt.f32 %v4805_v11  ;;  %v4832_v15 = vmul.f32 %v5460_v26, %v4816_v16 }
0x1fff   :  { %v6627_v63 = vpop.eup %6626  ;;  %v4807_v56 = vadd.f32 1e-05, %v4799_v49 }
0x2000   :  { %v4833_v52 = vmul.f32 %v5460_v26, %v4817_v14  ;;  %v4818_v34 = vmul.f32 %v6627_v63, %v8118_v28  ;;  %v8167_v33 = vadd.f32 %v5462_v59, %v4832_v15 }
0x2001   :  { %6636 = vrsqrt.f32 %v4807_v56 }
0x2002   :  { %v4849_v8 = vadd.f32 %v5462_v59, %v4833_v52  ;;  %v4834_v22 = vmul.f32 %v5460_v26, %v4818_v34 }
0x2003   :  { %v6629_v19 = vpop.eup %6628 }
0x2004   :  { %v6631_v39 = vpop.eup %6630  ;;  %v4856_v50 = vpack.c.bf16 %v4849_v8, %v8167_v33  ;;  %v4820_v36 = vmul.f32 %v6629_v19, %v8128_v60  ;;  %v4850_v3 = vadd.f32 %v5462_v59, %v4834_v22 }
0x2005   :  { %v4819_v17 = vmul.f32 %v6631_v39, %v8126_v6 }
0x2006   :  { %6146 = vmatprep.mubr.msk.bf16.mxu1 %vm188_vm2, %v4856_v50  ;;  %v4836_v18 = vmul.f32 %v5460_v26, %v4820_v36 }
0x2007   :  { %v6633_v12 = vpop.eup %6632  ;;  %v4835_v40 = vmul.f32 %v5460_v26, %v4819_v17 }
0x2008   :  { %v6635_v2 = vpop.eup %6634  ;;  %v4822_v28 = vmul.f32 %v6633_v12, %v8135_v43  ;;  %v8177_v6 = vadd.f32 %v5462_v59, %v4836_v18 }
0x2009   :  { %v4821_v41 = vmul.f32 %v6635_v2, %v8137_v51  ;;  %v4851_v54 = vadd.f32 %v5462_v59, %v4835_v40 }
0x200a   :  { %v4838_v60 = vmul.f32 %v5460_v26, %v4822_v28 }
0x200b   :  { %v6637_v25 = vpop.eup %6636  ;;  %v4857_v58 = vpack.c.bf16 %v4851_v54, %v4850_v3  ;;  %v4837_v29 = vmul.f32 %v5460_v26, %v4821_v41 }
0x200c   :  { %v4823_v27 = vmul.f32 %v6637_v25, %v8145_v30  ;;  %v4854_v43 = vadd.f32 %v5462_v59, %v4838_v60  ;;  %v6308_v30 = vld [vmem:[%s8303_s13 + $0x40] sm:$0xff]  }
0x200d   :  { %6147 = vmatmul.mubr.msk.bf16.vlgmr.msra.gmra.mrb[84].mxu1 %vm188_vm2, %v4857_v58  ;;  %v4853_v5 = vadd.f32 %v5462_v59, %v4837_v29  ;;  %6154 = vmatprep.subr.bf16.mxu1 %v6308_v30 }
0x200e   :  { %v4839_v44 = vmul.f32 %v5460_v26, %v4823_v27  ;;  %6155 = vmatpush3.bf16.msra.mxu1 %v6308_v30 }
0x200f   :  { %v4858_v23 = vpack.c.bf16 %v4853_v5, %v8177_v6  ;;  %6156 = vmatprep.subr.bf16.mxu1 %v6309_v9 }
0x2010   :  { %v4855_v57 = vadd.f32 %v5462_v59, %v4839_v44 }
0x2011   :  { %6150 = vmatprep.mubr.msk.bf16.mxu1 %vm188_vm2, %v4858_v23 }
0x2012   :  { %v4859_v51 = vpack.c.bf16 %v4855_v57, %v4854_v43  ;;  %6157 = vmatpush3.bf16.msra.mxu1 %v6309_v9 }
0x2013   :  { %6158 = vmatprep.subr.bf16.mxu1 %v6310_v42 }
0x2015   :  { %6151 = vmatmul.mubr.msk.bf16.gmra.mrb[88].mxu1 %vm188_vm2, %v4859_v51 }
0x2016   :  { %6159 = vmatpush3.bf16.msra.mxu1 %v6310_v42 }
0x2017   :  { %6160 = vmatprep.subr.bf16.mxu1 %v6311_v45 }
0x201a   :  { %6161 = vmatpush3.bf16.msra.mxu1 %v6311_v45 }
0x201b   :  { %6162 = vmatprep.subr.bf16.mxu1 %v6312_v24 }
0x201e   :  { %6163 = vmatpush3.bf16.msra.mxu1 %v6312_v24 }
0x201f   :  { %6164 = vmatprep.subr.bf16.mxu1 %v6313_v20 }
0x2022   :  { %6165 = vmatpush3.bf16.msra.mxu1 %v6313_v20 }
0x2023   :  { %6166 = vmatprep.subr.bf16.mxu1 %v6314_v53 }
0x2026   :  { %6167 = vmatpush3.bf16.msra.mxu1 %v6314_v53 }
0x2027   :  { %6168 = vmatprep.subr.bf16.mxu1 %v6315_v4 }
0x202a   :  { %6169 = vmatpush3.bf16.msra.mxu1 %v6315_v4 }
0x20e0   :  { %v6148_v61 = vpop.f32.mrb[84].mxu1 }
0x20e1   :  { %v8209_v37 = vadd.f32 %v6148_v61, %v5468_v55  ;;  %v4931_v7 = vpop.f32.mrb[85].mxu1 }
0x20e2   :  { %v8211_v0 = vadd.f32 %v5468_v55, %v4931_v7  ;;  %v6149_v21 = vpop.f32.mrb[86].mxu1 }
0x20e3   :  { %v4964_v47 = vmul.f32 %v8209_v37, %v8209_v37  ;;  %v8215_v31 = vadd.f32 %v6149_v21, %v5468_v55  ;;  %v4934_v38 = vpop.f32.mrb[87].mxu1  ;;  %v4972_v7 = vmul.f32 0.5, %v8209_v37 }
0x20e4   :  { %v4962_v48 = vmul.f32 %v8211_v0, %v8211_v0  ;;  %v8219_v32 = vadd.f32 %v5468_v55, %v4934_v38  ;;  %v4970_v38 = vmul.f32 0.5, %v8211_v0 }
0x20e5   :  { %v4980_v62 = vmul.f32 0.044715, %v4964_v47  ;;  %v4965_v10 = vmul.f32 %v8215_v31, %v8215_v31  ;;  %v4973_v21 = vmul.f32 0.5, %v8215_v31 }
0x20e6   :  { %v4978_v26 = vmul.f32 0.044715, %v4962_v48  ;;  %v4963_v1 = vmul.f32 %v8219_v32, %v8219_v32  ;;  %v4971_v48 = vmul.f32 0.5, %v8219_v32 }
0x20e7   :  { %v4988_v11 = vmul.f32 %v4980_v62, %v8209_v37  ;;  %v4981_v16 = vmul.f32 0.044715, %v4965_v10 }
0x20e8   :  { %v4986_v46 = vmul.f32 %v4978_v26, %v8211_v0  ;;  %v4979_v35 = vmul.f32 0.044715, %v4963_v1  ;;  %v6152_v49 = vpop.f32.mrb[88].mxu1 }
0x20e9   :  { %v4996_v14 = vadd.f32 %v4988_v11, %v8209_v37  ;;  %v4989_v15 = vmul.f32 %v4981_v16, %v8215_v31  ;;  %v8229_v63 = vadd.f32 %v6152_v49, %v5468_v55  ;;  %v4947_v56 = vpop.f32.mrb[89].mxu1 }
0x20ea   :  { %v4994_v59 = vadd.f32 %v4986_v46, %v8211_v0  ;;  %v4987_v52 = vmul.f32 %v4979_v35, %v8219_v32  ;;  %v8233_v34 = vadd.f32 %v5468_v55, %v4947_v56  ;;  %v6153_v8 = vpop.f32.mrb[90].mxu1 }
0x20eb   :  { %v5004_v19 = vmul.f32 0.7978846, %v4996_v14  ;;  %v4997_v39 = vadd.f32 %v4989_v15, %v8215_v31  ;;  %v4968_v50 = vmul.f32 %v8229_v63, %v8229_v63  ;;  %v4959_v22 = vadd.f32 %v6153_v8, %v5468_v55  ;;  %v4950_v36 = vpop.f32.mrb[91].mxu1 }
0x20ec   :  { %v5002_v17 = vmul.f32 0.7978846, %v4994_v59  ;;  %v4995_v12 = vadd.f32 %v4987_v52, %v8219_v32  ;;  %v4966_v40 = vmul.f32 %v8233_v34, %v8233_v34  ;;  %v4951_v2 = vadd.f32 %v5468_v55, %v4950_v36 }
0x20ed   :  { %6638 = vtanh.f32 %v5004_v19  ;;  %v5005_v28 = vmul.f32 0.7978846, %v4997_v39  ;;  %v4984_v41 = vmul.f32 0.044715, %v4968_v50  ;;  %v4969_v3 = vmul.f32 %v4959_v22, %v4959_v22 }
0x20ee   :  { %6640 = vtanh.f32 %v5002_v17  ;;  %v5003_v54 = vmul.f32 0.7978846, %v4995_v12  ;;  %v4982_v18 = vmul.f32 0.044715, %v4966_v40  ;;  %v4967_v25 = vmul.f32 %v4951_v2, %v4951_v2  ;;  %v5492_v40 = vld [vmem:[%s8304_s14 + $0x1] ss:$0 sm:$0xff] }
0x20ef   :  { %6642 = vtanh.f32 %v5005_v28  ;;  %v4992_v58 = vmul.f32 %v4984_v41, %v8229_v63  ;;  %v4985_v29 = vmul.f32 0.044715, %v4969_v3  ;;  %v4976_v31 = vmul.f32 0.5, %v8229_v63 }
0x20f0   :  { %6644 = vtanh.f32 %v5003_v54  ;;  %v4990_v27 = vmul.f32 %v4982_v18, %v8233_v34  ;;  %v4983_v60 = vmul.f32 0.044715, %v4967_v25  ;;  %v4977_v0 = vmul.f32 0.5, %v4959_v22 }
0x20f1   :  { %v5000_v5 = vadd.f32 %v4992_v58, %v8229_v63  ;;  %v4993_v44 = vmul.f32 %v4985_v29, %v4959_v22  ;;  %v4974_v32 = vmul.f32 0.5, %v8233_v34  ;;  %v4975_v52 = vmul.f32 0.5, %v4951_v2 }
0x20f2   :  { %v4998_v23 = vadd.f32 %v4990_v27, %v8233_v34  ;;  %v4991_v43 = vmul.f32 %v4983_v60, %v4951_v2 }
0x20f3   :  { %v5008_v57 = vmul.f32 0.7978846, %v5000_v5  ;;  %v5001_v51 = vadd.f32 %v4993_v44, %v4959_v22 }
0x20f4   :  { %v5006_v30 = vmul.f32 0.7978846, %v4998_v23  ;;  %v4999_v9 = vadd.f32 %v4991_v43, %v4951_v2 }
0x20f5   :  { %6646 = vtanh.f32 %v5008_v57  ;;  %v5009_v42 = vmul.f32 0.7978846, %v5001_v51 }
0x20f6   :  { %6648 = vtanh.f32 %v5006_v30  ;;  %v5007_v45 = vmul.f32 0.7978846, %v4999_v9 }
0x20f7   :  { %v6639_v24 = vpop.eup %6638  ;;  %6650 = vtanh.f32 %v5009_v42 }
0x20f8   :  { %v6641_v20 = vpop.eup %6640  ;;  %v5020_v53 = vadd.f32 1.0, %v6639_v24  ;;  %6652 = vtanh.f32 %v5007_v45  ;;  %v6317_v45 = vld [vmem:[%s8307_s17 + $0x8] sm:$0xff]  }
0x20f9   :  { %v6643_v4 = vpop.eup %6642  ;;  %v5018_v55 = vadd.f32 1.0, %v6641_v20 }
0x20fa   :  { %v6645_v61 = vpop.eup %6644  ;;  %v5021_v47 = vadd.f32 1.0, %v6643_v4  ;;  %v5028_v10 = vmul.f32 %v5020_v53, %v4972_v7 }
0x20fb   :  { %v5019_v62 = vadd.f32 1.0, %v6645_v61  ;;  %v5026_v1 = vmul.f32 %v5018_v55, %v4970_v38 }
0x20fc   :  { %v5029_v26 = vmul.f32 %v5021_v47, %v4973_v21  ;;  %v5502_v47 = vld [vmem:[%s8305_s15 + $0x1] ss:$0 sm:$0xff] }
0x20fd   :  { %v5027_v11 = vmul.f32 %v5019_v62, %v4971_v48 }
0x20fe   :  { %v5035_v16 = vpack.c.bf16 %v5029_v26, %v5028_v10 }
0x20ff   :  { %v6647_v46 = vpop.eup %6646  ;;  %v5034_v35 = vpack.c.bf16 %v5027_v11, %v5026_v1 }
0x2100   :  { %v6649_v49 = vpop.eup %6648  ;;  %v5024_v14 = vadd.f32 1.0, %v6647_v46 }
0x2101   :  { %v6651_v15 = vpop.eup %6650  ;;  %6170 = vmatprep.mubr.bf16.mxu1 %v5034_v35  ;;  %v5022_v37 = vadd.f32 1.0, %v6649_v49 }
0x2102   :  { %v6653_v56 = vpop.eup %6652  ;;  %6171 = vmatmul.mubr.bf16.vlgmr.msra.gmra.mrb[92].mxu1 %v5035_v16  ;;  %v5025_v59 = vadd.f32 1.0, %v6651_v15  ;;  %v5032_v19 = vmul.f32 %v5024_v14, %v4976_v31 }
0x2103   :  { %v5023_v8 = vadd.f32 1.0, %v6653_v56  ;;  %v5030_v50 = vmul.f32 %v5022_v37, %v4974_v32  ;;  %v5505_v37 = vld [vmem:[%s8308_s18] ss:$0 sm:$0xff] }
0x2104   :  { %v5033_v39 = vmul.f32 %v5025_v59, %v4977_v0 }
0x2105   :  { %v5031_v36 = vmul.f32 %v5023_v8, %v4975_v52 }
0x2106   :  { %v5037_v17 = vpack.c.bf16 %v5033_v39, %v5032_v19 }
0x2107   :  { %v5036_v12 = vpack.c.bf16 %v5031_v36, %v5030_v50 }
0x2109   :  { %6174 = vmatprep.mubr.bf16.mxu1 %v5036_v12 }
0x210a   :  { %6175 = vmatmul.mubr.bf16.gmra.mrb[96].mxu1 %v5037_v17 }
0x21d5   :  { %v6172_v28 = vpop.f32.mrb[92].mxu1 }
0x21d6   :  { %v5145_v63 = vpop.f32.mrb[93].mxu1 }
0x21d7   :  { %v5146_v22 = vadd.f32 %v5492_v40, %v5145_v63  ;;  %v6173_v41 = vpop.f32.mrb[94].mxu1 }
0x21d8   :  { %v5148_v3 = vpop.f32.mrb[95].mxu1 }
0x21d9   :  { %v5170_v34 = vadd.f32 %v5146_v22, %v8167_v33 }
0x21db   :  { %v5172_v2 = vsel %vm188_vm2, %v5170_v34, 0.0 }
0x21dc   :  { %5173 = vadd.xlane.f32.xlu0 %v5172_v2 }
0x21dd   :  { %v6176_v54 = vpop.f32.mrb[96].mxu1 }
0x21de   :  { %v5158_v18 = vpop.f32.mrb[97].mxu1 }
0x21df   :  { %v5159_v25 = vadd.f32 %v5492_v40, %v5158_v18  ;;  %v6177_v58 = vpop.f32.mrb[98].mxu1 }
0x21e0   :  { %v5161_v29 = vpop.f32.mrb[99].mxu1 }
0x21e1   :  { %v5171_v27 = vadd.f32 %v5159_v25, %v8177_v6  ;;  %v6316_v6 = vld [vmem:[%s8307_s17] sm:$0xff]  }
0x21e2   :  { %6179 = vmatpush3.bf16.msra.mxu0 %v6316_v6 }
0x21e3   :  { %v5175_v60 = vsel %vm188_vm2, %v5171_v27, 0.0  ;;  %6180 = vmatprep.subr.bf16.mxu0 %v6690_v13  ;;  %v5504_v13 = vld [vmem:[%s8306_s16 + $0x1] ss:$0 sm:$0xff]  ;;  %s5302_s16 = sshll.u32 %s6703_s6, 4  ;;  %s5303_s16 = int_to_ptr.vmem [resolvable:$true] %s5302_s16 }
0x21e4   :  { %5176 = vadd.xlane.f32.xlu1 %v5175_v60  ;;  %s6666_s20 = scalar_lea.vmem %s5303_s16, 32  ;;  %p6671_p1 = scmp.lt.s32.totalorder %s5303_s16, %s5303_s16 }
0x21e5   :  { %p6667_p0 = scmp.ne.s32.totalorder %s5303_s16, %s6666_s20  ;;  %p6672_p2 = scmp.lt.s32.totalorder %s6666_s20, %s6666_s20 }
0x21e6   :  { %6181 = vmatpush3.bf16.msra.mxu0 %v6317_v45 }
0x21e7   :  { %p6673_p3 = por %p6672_p2, %p6671_p1 }
0x21e9   :  { %p6674_p4 = pnand %p6673_p3, %p6667_p0 }
0x2269   :  { %v5174_v5 = vpop.xlane.xlu0 %5173 }
0x226a   :  { %v5178_v44 = vmul.f32 0.03125, %v5174_v5 }
0x226c   :  { %v5180_v23 = vsub.f32 %v5170_v34, %v5178_v44 }
0x226e   :  { %v5182_v43 = vmul.f32 %v5180_v23, %v5180_v23 }
0x2270   :  { %v5184_v57 = vsel %vm188_vm2, %v5182_v43, 0.0 }
0x2271   :  { %5185 = vadd.xlane.f32.xlu0 %v5184_v57  ;;  %v5177_v33 = vpop.xlane.xlu1 %5176 }
0x2272   :  { %v5179_v51 = vmul.f32 0.03125, %v5177_v33 }
0x2274   :  { %v5181_v30 = vsub.f32 %v5171_v27, %v5179_v51 }
0x2276   :  { %v5183_v9 = vmul.f32 %v5181_v30, %v5181_v30 }
0x2278   :  { %v5187_v42 = vsel %vm188_vm2, %v5183_v9, 0.0 }
0x2279   :  { %5188 = vadd.xlane.f32.xlu1 %v5187_v42 }
0x22fe   :  { %v5186_v24 = vpop.xlane.xlu0 %5185 }
0x22ff   :  { %v5190_v20 = vmul.f32 0.03125, %v5186_v24 }
0x2301   :  { %v5192_v53 = vadd.f32 1e-05, %v5190_v20 }
0x2303   :  { %6654 = vrsqrt.f32 %v5192_v53 }
0x2306   :  { %v5189_v4 = vpop.xlane.xlu1 %5188 }
0x2307   :  { %v5191_v55 = vmul.f32 0.03125, %v5189_v4 }
0x2309   :  { %v5193_v61 = vadd.f32 1e-05, %v5191_v55 }
0x230b   :  { %6656 = vrsqrt.f32 %v5193_v61 }
0x230d   :  { %v6655_v7 = vpop.eup %6654 }
0x230e   :  { %v5196_v21 = vmul.f32 %v6655_v7, %v5180_v23 }
0x2310   :  { %v5206_v38 = vmul.f32 %v5502_v47, %v5196_v21 }
0x2312   :  { %v5216_v10 = vadd.f32 %v5504_v13, %v5206_v38 }
0x2314   :  { %v5218_v11 = vpack.c.bf16 %v5216_v10, %v5216_v10 }
0x2315   :  { %v6657_v48 = vpop.eup %6656 }
0x2316   :  { %v5197_v62 = vmul.f32 %v6657_v48, %v5181_v30  ;;  %v5233_v35 = vunpack.c.l.b16 %v5218_v11 }
0x2318   :  { %v5207_v26 = vmul.f32 %v5502_v47, %v5197_v62 }
0x231a   :  { %v5217_v1 = vadd.f32 %v5504_v13, %v5207_v26 }
0x231c   :  { %v5219_v16 = vpack.c.bf16 %v5217_v1, %v5217_v1 }
0x231e   :  { %v5234_v46 = vunpack.c.l.b16 %v5219_v16 }
0x2320   :  { %v5235_v49 = vrot.slane %v5234_v46, 7 }
0x2322   :  { %v5237_v14 = vsel %vm5236_vm9, %v5235_v49, %v5233_v35 }
0x2323   :  { %v5238_v15 = vpack.c.b16 %v5237_v14, %v5237_v14 }
0x2325   :  { %6183 = vmatmul.mubr.msk.bf16.vlgmr.msra.gmra.mrb[96].mxu0 %vm188_vm2, %v5238_v15 }
0x23f8   :  { %v5288_v56 = vpop.f32.mrb[96].mxu0 }
0x23f9   :  { %v5289_v31 = vadd.f32 %v5505_v37, %v5288_v56  ;;  %v6184_v0 = vpop.f32.mrb[97].mxu0 }
0x23fa   :  { %v5291_v59 = vpop.f32.mrb[98].mxu0 }
0x23fb   :  { %v6185_v32 = vpop.f32.mrb[99].mxu0  ;;  %5295 = vst.msk [vmem:[#allocation3] sm:$0x3] %vm5294_vm10, %v5289_v31 }
0x23fc   :  { %6677 = shalt.err (!%p6674_p4)
}
0x23fd   :  { %s6678_s18 = scalar_lea.hbm %s8309_s19, 32 }
0x23fe   :  { %p6679_p5 = scmp.ne.s32.totalorder %s8309_s19, %s6678_s18  ;;  %p6682_p6 = scmp.lt.u32.totalorder %s6678_s18, %s8309_s19 }
0x2400   :  { %p6684_p7 = pnand %p6682_p6, %p6679_p5 }
0x2402   :  { %6687 = shalt.err (!%p6684_p7)
}
0x2403   :  { %5305 = dma.vmem_to_hbm [thread:$0]  %s5303_s16, 32, %s8309_s19, [#allocation4]  }
0x2404   :  { %6688 = dma.done.wait [#allocation4], 32  }
0x2405   :  { %6689 = vsyncadd [#allocation4], 4294967264 }
0x2406   :  { %5309 = vsyncpa [#allocation4], 1 }

</bundles_post_ra>
